<compile_context>
chip_gen: v5e
topology: v5e:2x2
jax: 0.10.0
libtpu: 0.0.40
codegen_flags: <defaults>
</compile_context>

<pallas_src>
import functools

import jax
import jax.numpy as jnp
from jax.experimental import pallas as pl
from jax.experimental.pallas import tpu as pltpu


def _round_channels(c):
    """Lane-dense channel padding (256 alignment when C > 128 for v6e/v7x MXU)."""
    if c <= 128:
        return 128
    return ((c + 255) // 256) * 256


# ---------------------------------------------------------------------------
# Kernel 1: 3x3x3 conv (padding=1) as in-kernel tap-accumulated GEMMs.
#   grid = (B, D, kd); kd ("arbitrary", last) selects padded depth slice d + kd.
#   Weights (27, Cp, Cp) are VMEM-resident (constant index_map).
#   Accumulation lives in a persistent f32 VMEM scratch; at kd == last the bf16
#   conv output and the per-(b, d) InstanceNorm partial sums are written.
# ---------------------------------------------------------------------------
def _conv3x3_kernel(x_ref, w_ref, o_ref, st_ref, acc_ref, *, H, W):
    kd = pl.program_id(2)
    Cp = acc_ref.shape[-1]

    @pl.when(kd == 0)
    def _():
        acc_ref[...] = jnp.zeros_like(acc_ref)

    # 3x3 spatial taps of this depth tap, statically unrolled.  The kw window
    # slice is hoisted out of the kh loop (one sublane-offset copy per kw
    # instead of one per tap); the kh slice + reshape are tile-aligned views.
    for kw in range(3):
        xw = x_ref[:, kw:kw + W, :]                       # (Hp, W, Cp) bf16
        for kh in range(3):
            lhs = xw[kh:kh + H].reshape(H * W, Cp)        # (H*W, Cp) bf16
            tap = kd * 9 + kh * 3 + kw                    # dynamic in kd only
            acc_ref[...] += jnp.dot(lhs, w_ref[tap],
                                    preferred_element_type=jnp.float32)

    @pl.when(kd == pl.num_programs(2) - 1)
    def _():
        acc = acc_ref[...]
        o_ref[...] = acc.astype(o_ref.dtype)              # bf16 y
        # per-(b, d) InstanceNorm partial sums (f32), finished in JAX over D.
        st_ref[0:1, :] = jnp.sum(acc, axis=0, keepdims=True)
        st_ref[1:2, :] = jnp.sum(acc * acc, axis=0, keepdims=True)


def conv3x3(hp, wt, *, D, H, W, Cp):
    """hp: (B, D+2, H+2, W+2, Cp) bf16; wt: (27, Cp, Cp) bf16.
    Returns (y, stats):
      y     (B, D, H*W, Cp) bf16   conv output (no bias)
      stats (B, D, 2, Cp)  f32     [sum over H*W; sum of squares over H*W]."""
    B = hp.shape[0]
    Hp, Wp = H + 2, W + 2
    HW = H * W
    kernel = functools.partial(_conv3x3_kernel, H=H, W=W)
    return pl.pallas_call(
        kernel,
        out_shape=(
            jax.ShapeDtypeStruct((B, D, HW, Cp), jnp.bfloat16),
            jax.ShapeDtypeStruct((B, D, 2, Cp), jnp.float32),
        ),
        grid=(B, D, 3),
        in_specs=[
            # padded depth slice d + kd, full (Hp, Wp, Cp) halo slab
            pl.BlockSpec((None, None, Hp, Wp, Cp),
                         lambda b, d, kd: (b, d + kd, 0, 0, 0)),
            # all 27 weight taps, resident in VMEM (constant block index)
            pl.BlockSpec((27, Cp, Cp), lambda b, d, kd: (0, 0, 0)),
        ],
        out_specs=(
            pl.BlockSpec((None, None, HW, Cp), lambda b, d, kd: (b, d, 0, 0)),
            pl.BlockSpec((None, None, 2, Cp), lambda b, d, kd: (b, d, 0, 0)),
        ),
        scratch_shapes=[pltpu.VMEM((HW, Cp), jnp.float32)],   # f32 accumulator
        compiler_params=pltpu.CompilerParams(
            dimension_semantics=("parallel", "parallel", "arbitrary")),
    )(hp, wt)


# ---------------------------------------------------------------------------
# Kernel 2: fused InstanceNorm normalize + LeakyReLU(0.2) epilogue (lane-dense).
# ---------------------------------------------------------------------------
def _norm_leaky_kernel(y_ref, sc_ref, sh_ref, o_ref, *, slope):
    v = y_ref[...].astype(jnp.float32) * sc_ref[...] + sh_ref[...]
    o_ref[...] = jnp.maximum(v, slope * v)     # == LeakyReLU for 0 < slope < 1


def norm_leaky(y2, scale, shift, *, negative_slope, row_tile=1024):
    """y2: (B, R, Cp) bf16; scale/shift: (B, 1, Cp) f32. Returns (B, R, Cp) f32."""
    B, R, Cp = y2.shape
    tr = min(row_tile, R)
    if tr != R:
        tr = max(8, (tr // 8) * 8)             # keep sublane dim 8-aligned
    kernel = functools.partial(_norm_leaky_kernel, slope=negative_slope)
    return pl.pallas_call(
        kernel,
        out_shape=jax.ShapeDtypeStruct((B, R, Cp), jnp.float32),
        grid=(B, pl.cdiv(R, tr)),
        in_specs=[
            pl.BlockSpec((None, tr, Cp), lambda b, r: (b, r, 0)),
            pl.BlockSpec((None, 1, Cp), lambda b, r: (b, 0, 0)),
            pl.BlockSpec((None, 1, Cp), lambda b, r: (b, 0, 0)),
        ],
        out_specs=pl.BlockSpec((None, tr, Cp), lambda b, r: (b, r, 0)),
        compiler_params=pltpu.CompilerParams(
            dimension_semantics=("parallel", "parallel")),
    )(y2, scale, shift)


# ---------------------------------------------------------------------------
# Block_up forward (Pallas path).
# ---------------------------------------------------------------------------
def block_up_forward(x, conv_w, conv_b, *, negative_slope=0.2, eps=1e-5):
    """x: (B, C, D, H, W) f32; conv_w: (C, C, 3, 3, 3); conv_b: (C,).

    NOTE: conv_b is accepted for interface parity with the PyTorch module but
    is intentionally unused: InstanceNorm3d(affine=False) subtracts the
    per-channel mean and a per-channel constant does not change the variance,
    so the bias cancels exactly in the final output."""
    del conv_b
    B, C, D, H, W = x.shape
    assert conv_w.shape == (C, C, 3, 3, 3)
    Cp = _round_channels(C)
    HW = H * W

    # channels-last, channel-padded to full lanes, 1-voxel spatial halo, bf16.
    xcl = jnp.transpose(x, (0, 2, 3, 4, 1))                          # (B,D,H,W,C)
    xcl = jnp.pad(xcl, ((0, 0), (1, 1), (1, 1), (1, 1), (0, Cp - C)))
    hp = xcl.astype(jnp.bfloat16)                                    # (B,D+2,H+2,W+2,Cp)

    # weights (out,in,kd,kh,kw) -> (kd*9 + kh*3 + kw, in_p, out_p), bf16.
    wt = jnp.transpose(conv_w, (2, 3, 4, 1, 0)).reshape(27, C, C)
    wt = jnp.pad(wt, ((0, 0), (0, Cp - C), (0, Cp - C))).astype(jnp.bfloat16)

    # stage 1: Conv3d(k=3, pad=1) with fused per-(b,d) InstanceNorm partial sums
    y, stats = conv3x3(hp, wt, D=D, H=H, W=W, Cp=Cp)                 # bf16, f32

    # finish InstanceNorm3d statistics: per (batch, channel) over D*H*W,
    # biased variance.  Only the tiny D-axis reduction happens here.
    # (single-pass E[x^2]-E[x]^2 in f32; clamped -- see review concern.)
    n = float(D * HW)
    s = jnp.sum(stats[:, :, 0, :], axis=1)                           # (B, Cp)
    ss = jnp.sum(stats[:, :, 1, :], axis=1)                          # (B, Cp)
    mean = s / n
    var = jnp.maximum(ss / n - mean * mean, 0.0)
    inv = jax.lax.rsqrt(var + eps)
    scale = inv.reshape(B, 1, Cp)
    shift = (-mean * inv).reshape(B, 1, Cp)

    # stage 2: normalize + LeakyReLU (fused, lane-dense)
    out = norm_leaky(y.reshape(B, D * HW, Cp), scale, shift,
                     negative_slope=negative_slope)

    out = out.reshape(B, D, H, W, Cp)[..., :C]
    return jnp.transpose(out, (0, 4, 1, 2, 3))                       # NCDHW


# ---------------------------------------------------------------------------
# Pure-JAX reference: PyTorch semantics (conv + bias + f32 InstanceNorm +
# LeakyReLU); conv operands cast to bf16 to match the kernel's MXU precision,
# accumulation in f32.
# ---------------------------------------------------------------------------
def reference_forward(x, conv_w, conv_b, *, negative_slope=0.2, eps=1e-5):
    y = jax.lax.conv_general_dilated(
        x.astype(jnp.bfloat16), conv_w.astype(jnp.bfloat16),
        window_strides=(1, 1, 1), padding=[(1, 1)] * 3,
        dimension_numbers=("NCDHW", "OIDHW", "NCDHW"),
        preferred_element_type=jnp.float32)
    y = y + conv_b.reshape(1, -1, 1, 1, 1).astype(jnp.float32)
    mean = jnp.mean(y, axis=(2, 3, 4), keepdims=True)
    var = jnp.var(y, axis=(2, 3, 4), keepdims=True)                  # biased
    y = (y - mean) * jax.lax.rsqrt(var + eps)
    return jnp.where(y >= 0, y, negative_slope * y)


if __name__ == "__main__":
    B, dim, D, H, W = 2, 16, 16, 16, 16

    key = jax.random.PRNGKey(0)
    kx, kwk, kb = jax.random.split(key, 3)
    x = jax.random.normal(kx, (B, dim, D, H, W), jnp.float32)        # NCDHW
    conv_w = 0.1 * jax.random.normal(kwk, (dim, dim, 3, 3, 3), jnp.float32)
    conv_b = 0.1 * jax.random.normal(kb, (dim,), jnp.float32)

    fwd = jax.jit(block_up_forward)
    y = jax.block_until_ready(fwd(x, conv_w, conv_b))

    y_ref = jax.block_until_ready(reference_forward(x, conv_w, conv_b))

    assert y.shape == (B, dim, D, H, W), y.shape
    err = float(jnp.max(jnp.abs(y - y_ref)))
    # Error budget: the conv runs with bf16 operands (f32 accumulation) and the
    # conv intermediate y is stored as bf16 before the normalize stage (stats
    # stay f32).  The resulting output error is bounded by
    # ~2^-8 * max|y| * inv_std ~= 2e-2 at these shapes.
    assert err < 4e-2, f"mismatch vs reference, max abs err = {err}"
    print("KERNEL_OK")
</pallas_src>

<mosaic_0001>
module attributes {stable_mosaic.version = 11 : i64} {
  func.func @_norm_leaky_kernel(%arg0: i32, %arg1: i32, %arg2: memref<1x1024x128xbf16, #tpu.memory_space<vmem>>, %arg3: memref<1x1x128xf32, #tpu.memory_space<vmem>>, %arg4: memref<1x1x128xf32, #tpu.memory_space<vmem>>, %arg5: memref<1x1024x128xf32, #tpu.memory_space<vmem>>) attributes {dimension_semantics = [#tpu.dimension_semantics<parallel>, #tpu.dimension_semantics<parallel>], iteration_bounds = array<i64: 2, 4>, scalar_prefetch = 0 : i64, scratch_operands = 0 : i64, tpu.core_type = #tpu.core_type<tc>, window_params = [{transform_indices = @transform_0, window_bounds = array<i64: 1, 1024, 128>}, {transform_indices = @transform_1, window_bounds = array<i64: 1, 1, 128>}, {transform_indices = @transform_2, window_bounds = array<i64: 1, 1, 128>}, {transform_indices = @transform_3, window_bounds = array<i64: 1, 1024, 128>}]} {
    %c0 = arith.constant 0 : index
    %c0_0 = arith.constant 0 : index
    %c0_1 = arith.constant 0 : index
    %0 = vector.load %arg2[%c0, %c0_0, %c0_1] : memref<1x1024x128xbf16, #tpu.memory_space<vmem>>, vector<1x1024x128xbf16>
    %1 = vector.shape_cast %0 : vector<1x1024x128xbf16> to vector<1024x128xbf16>
    %2 = arith.extf %1 : vector<1024x128xbf16> to vector<1024x128xf32>
    %c0_2 = arith.constant 0 : index
    %c0_3 = arith.constant 0 : index
    %c0_4 = arith.constant 0 : index
    %3 = vector.load %arg3[%c0_2, %c0_3, %c0_4] : memref<1x1x128xf32, #tpu.memory_space<vmem>>, vector<1x1x128xf32>
    %4 = vector.shape_cast %3 : vector<1x1x128xf32> to vector<1x128xf32>
    %5 = vector.broadcast %4 : vector<1x128xf32> to vector<1024x128xf32>
    %6 = arith.mulf %2, %5 : vector<1024x128xf32>
    %c0_5 = arith.constant 0 : index
    %c0_6 = arith.constant 0 : index
    %c0_7 = arith.constant 0 : index
    %7 = vector.load %arg4[%c0_5, %c0_6, %c0_7] : memref<1x1x128xf32, #tpu.memory_space<vmem>>, vector<1x1x128xf32>
    %8 = vector.shape_cast %7 : vector<1x1x128xf32> to vector<1x128xf32>
    %9 = vector.broadcast %8 : vector<1x128xf32> to vector<1024x128xf32>
    %10 = arith.addf %6, %9 : vector<1024x128xf32>
    %cst = arith.constant 2.000000e-01 : f32
    %11 = vector.broadcast %cst : f32 to vector<1024x128xf32>
    %12 = arith.mulf %11, %10 : vector<1024x128xf32>
    %13 = arith.maximumf %10, %12 : vector<1024x128xf32>
    %c0_8 = arith.constant 0 : index
    %c0_9 = arith.constant 0 : index
    %c0_10 = arith.constant 0 : index
    %14 = vector.load %arg5[%c0_8, %c0_9, %c0_10] : memref<1x1024x128xf32, #tpu.memory_space<vmem>>, vector<1x1024x128xf32>
    %15 = vector.shape_cast %14 : vector<1x1024x128xf32> to vector<1024x128xf32>
    %16 = vector.shape_cast %13 : vector<1024x128xf32> to vector<1x1024x128xf32>
    tpu.vector_store %arg5[%c0_8, %c0_9, %c0_10], %16 {strides = array<i32>} : memref<1x1024x128xf32, #tpu.memory_space<vmem>>, vector<1x1024x128xf32>,
    return
  }
  func.func @transform_0(%arg0: i32, %arg1: i32) -> (i32, i32, i32) {
    %c0_i32 = arith.constant 0 : i32
    %c0_i32_0 = arith.constant 0 : i32
    return %arg0, %arg1, %c0_i32 : i32, i32, i32
  }
  func.func @transform_1(%arg0: i32, %arg1: i32) -> (i32, i32, i32) {
    %c0_i32 = arith.constant 0 : i32
    %c0_i32_0 = arith.constant 0 : i32
    %c0_i32_1 = arith.constant 0 : i32
    return %arg0, %c0_i32, %c0_i32_0 : i32, i32, i32
  }
  func.func @transform_2(%arg0: i32, %arg1: i32) -> (i32, i32, i32) {
    %c0_i32 = arith.constant 0 : i32
    %c0_i32_0 = arith.constant 0 : i32
    %c0_i32_1 = arith.constant 0 : i32
    return %arg0, %c0_i32, %c0_i32_0 : i32, i32, i32
  }
  func.func @transform_3(%arg0: i32, %arg1: i32) -> (i32, i32, i32) {
    %c0_i32 = arith.constant 0 : i32
    %c0_i32_0 = arith.constant 0 : i32
    return %arg0, %arg1, %c0_i32 : i32, i32, i32
  }
}

module attributes {stable_mosaic.version = 11 : i64} {
  func.func @_conv3x3_kernel(%arg0: i32, %arg1: i32, %arg2: i32, %arg3: memref<1x1x18x18x128xbf16, #tpu.memory_space<vmem>>, %arg4: memref<27x128x128xbf16, #tpu.memory_space<vmem>>, %arg5: memref<1x1x256x128xbf16, #tpu.memory_space<vmem>>, %arg6: memref<1x1x2x128xf32, #tpu.memory_space<vmem>>, %arg7: memref<256x128xf32, #tpu.memory_space<vmem>>) attributes {dimension_semantics = [#tpu.dimension_semantics<parallel>, #tpu.dimension_semantics<parallel>, #tpu.dimension_semantics<arbitrary>], iteration_bounds = array<i64: 2, 16, 3>, scalar_prefetch = 0 : i64, scratch_operands = 1 : i64, tpu.core_type = #tpu.core_type<tc>, window_params = [{transform_indices = @transform_0, window_bounds = array<i64: 1, 1, 18, 18, 128>}, {pipeline_mode = #tpu.pipeline_mode<synchronous>, transform_indices = @transform_1, window_bounds = array<i64: 27, 128, 128>}, {transform_indices = @transform_2, window_bounds = array<i64: 1, 1, 256, 128>}, {transform_indices = @transform_3, window_bounds = array<i64: 1, 1, 2, 128>}]} {
    %c0_i32 = arith.constant 0 : i32
    %0 = arith.cmpi eq, %arg2, %c0_i32 : i32
    %1 = arith.extui %0 : i1 to i32
    %c0_i32_0 = arith.constant 0 : i32
    %2 = arith.cmpi ne, %1, %c0_i32_0 : i32
    scf.if %2 {
      %cst_99 = arith.constant 0.000000e+00 : f32
      %120 = vector.broadcast %cst_99 : f32 to vector<256x128xf32>
      %c0_100 = arith.constant 0 : index
      %c0_101 = arith.constant 0 : index
      %121 = vector.load %arg7[%c0_100, %c0_101] : memref<256x128xf32, #tpu.memory_space<vmem>>, vector<256x128xf32>
      tpu.vector_store %arg7[%c0_100, %c0_101], %120 {strides = array<i32>} : memref<256x128xf32, #tpu.memory_space<vmem>>, vector<256x128xf32>,
    } else {
    }
    %c0 = arith.constant 0 : index
    %c0_1 = arith.constant 0 : index
    %c0_2 = arith.constant 0 : index
    %c0_3 = arith.constant 0 : index
    %c0_4 = arith.constant 0 : index
    %3 = vector.load %arg3[%c0, %c0_1, %c0_2, %c0_3, %c0_4] : memref<1x1x18x18x128xbf16, #tpu.memory_space<vmem>>, vector<1x1x18x16x128xbf16>
    %4 = vector.shape_cast %3 : vector<1x1x18x16x128xbf16> to vector<18x16x128xbf16>
    %5 = vector.extract_strided_slice %4 {offsets = [0, 0, 0], sizes = [16, 16, 128], strides = [1, 1, 1]} : vector<18x16x128xbf16> to vector<16x16x128xbf16>
    %6 = vector.shape_cast %5 : vector<16x16x128xbf16> to vector<256x128xbf16>
    %c9_i32 = arith.constant 9 : i32
    %7 = arith.muli %arg2, %c9_i32 : i32
    %c0_i32_5 = arith.constant 0 : i32
    %8 = arith.addi %7, %c0_i32_5 : i32
    %c0_i32_6 = arith.constant 0 : i32
    %9 = arith.addi %8, %c0_i32_6 : i32
    %c0_7 = arith.constant 0 : index
    %c0_8 = arith.constant 0 : index
    %10 = vector.load %arg7[%c0_7, %c0_8] : memref<256x128xf32, #tpu.memory_space<vmem>>, vector<256x128xf32>
    %11 = arith.index_cast %9 : i32 to index
    %c0_9 = arith.constant 0 : index
    %c0_10 = arith.constant 0 : index
    %12 = vector.load %arg4[%11, %c0_9, %c0_10] : memref<27x128x128xbf16, #tpu.memory_space<vmem>>, vector<1x128x128xbf16>
    %13 = vector.shape_cast %12 : vector<1x128x128xbf16> to vector<128x128xbf16>
    %cst = arith.constant dense<0.000000e+00> : vector<256x128xf32>
    %14 = tpu.matmul %6, %13, %cst {dimension_numbers = #tpu.dot_dimension_numbers<[1], [0], [0], [1], [0, 0, 1, 1], [], []>} : vector<256x128xbf16>, vector<128x128xbf16>, vector<256x128xf32> -> vector<256x128xf32>
    %15 = arith.addf %10, %14 : vector<256x128xf32>
    %c0_11 = arith.constant 0 : index
    %c0_12 = arith.constant 0 : index
    %16 = vector.load %arg7[%c0_11, %c0_12] : memref<256x128xf32, #tpu.memory_space<vmem>>, vector<256x128xf32>
    tpu.vector_store %arg7[%c0_11, %c0_12], %15 {strides = array<i32>} : memref<256x128xf32, #tpu.memory_space<vmem>>, vector<256x128xf32>,
    %17 = vector.extract_strided_slice %4 {offsets = [1, 0, 0], sizes = [16, 16, 128], strides = [1, 1, 1]} : vector<18x16x128xbf16> to vector<16x16x128xbf16>
    %18 = vector.shape_cast %17 : vector<16x16x128xbf16> to vector<256x128xbf16>
    %c9_i32_13 = arith.constant 9 : i32
    %19 = arith.muli %arg2, %c9_i32_13 : i32
    %c3_i32 = arith.constant 3 : i32
    %20 = arith.addi %19, %c3_i32 : i32
    %c0_i32_14 = arith.constant 0 : i32
    %21 = arith.addi %20, %c0_i32_14 : i32
    %c0_15 = arith.constant 0 : index
    %c0_16 = arith.constant 0 : index
    %22 = vector.load %arg7[%c0_15, %c0_16] : memref<256x128xf32, #tpu.memory_space<vmem>>, vector<256x128xf32>
    %23 = arith.index_cast %21 : i32 to index
    %c0_17 = arith.constant 0 : index
    %c0_18 = arith.constant 0 : index
    %24 = vector.load %arg4[%23, %c0_17, %c0_18] : memref<27x128x128xbf16, #tpu.memory_space<vmem>>, vector<1x128x128xbf16>
    %25 = vector.shape_cast %24 : vector<1x128x128xbf16> to vector<128x128xbf16>
    %cst_19 = arith.constant dense<0.000000e+00> : vector<256x128xf32>
    %26 = tpu.matmul %18, %25, %cst_19 {dimension_numbers = #tpu.dot_dimension_numbers<[1], [0], [0], [1], [0, 0, 1, 1], [], []>} : vector<256x128xbf16>, vector<128x128xbf16>, vector<256x128xf32> -> vector<256x128xf32>
    %27 = arith.addf %22, %26 : vector<256x128xf32>
    %c0_20 = arith.constant 0 : index
    %c0_21 = arith.constant 0 : index
    %28 = vector.load %arg7[%c0_20, %c0_21] : memref<256x128xf32, #tpu.memory_space<vmem>>, vector<256x128xf32>
    tpu.vector_store %arg7[%c0_20, %c0_21], %27 {strides = array<i32>} : memref<256x128xf32, #tpu.memory_space<vmem>>, vector<256x128xf32>,
    %29 = vector.extract_strided_slice %4 {offsets = [2, 0, 0], sizes = [16, 16, 128], strides = [1, 1, 1]} : vector<18x16x128xbf16> to vector<16x16x128xbf16>
    %30 = vector.shape_cast %29 : vector<16x16x128xbf16> to vector<256x128xbf16>
    %c9_i32_22 = arith.constant 9 : i32
    %31 = arith.muli %arg2, %c9_i32_22 : i32
    %c6_i32 = arith.constant 6 : i32
    %32 = arith.addi %31, %c6_i32 : i32
    %c0_i32_23 = arith.constant 0 : i32
    %33 = arith.addi %32, %c0_i32_23 : i32
    %c0_24 = arith.constant 0 : index
    %c0_25 = arith.constant 0 : index
    %34 = vector.load %arg7[%c0_24, %c0_25] : memref<256x128xf32, #tpu.memory_space<vmem>>, vector<256x128xf32>
    %35 = arith.index_cast %33 : i32 to index
    %c0_26 = arith.constant 0 : index
    %c0_27 = arith.constant 0 : index
    %36 = vector.load %arg4[%35, %c0_26, %c0_27] : memref<27x128x128xbf16, #tpu.memory_space<vmem>>, vector<1x128x128xbf16>
    %37 = vector.shape_cast %36 : vector<1x128x128xbf16> to vector<128x128xbf16>
    %cst_28 = arith.constant dense<0.000000e+00> : vector<256x128xf32>
    %38 = tpu.matmul %30, %37, %cst_28 {dimension_numbers = #tpu.dot_dimension_numbers<[1], [0], [0], [1], [0, 0, 1, 1], [], []>} : vector<256x128xbf16>, vector<128x128xbf16>, vector<256x128xf32> -> vector<256x128xf32>
    %39 = arith.addf %34, %38 : vector<256x128xf32>
    %c0_29 = arith.constant 0 : index
    %c0_30 = arith.constant 0 : index
    %40 = vector.load %arg7[%c0_29, %c0_30] : memref<256x128xf32, #tpu.memory_space<vmem>>, vector<256x128xf32>
    tpu.vector_store %arg7[%c0_29, %c0_30], %39 {strides = array<i32>} : memref<256x128xf32, #tpu.memory_space<vmem>>, vector<256x128xf32>,
    %c0_31 = arith.constant 0 : index
    %c0_32 = arith.constant 0 : index
    %c0_33 = arith.constant 0 : index
    %c1 = arith.constant 1 : index
    %c0_34 = arith.constant 0 : index
    %41 = vector.load %arg3[%c0_31, %c0_32, %c0_33, %c1, %c0_34] : memref<1x1x18x18x128xbf16, #tpu.memory_space<vmem>>, vector<1x1x18x16x128xbf16>
    %42 = vector.shape_cast %41 : vector<1x1x18x16x128xbf16> to vector<18x16x128xbf16>
    %43 = vector.extract_strided_slice %42 {offsets = [0, 0, 0], sizes = [16, 16, 128], strides = [1, 1, 1]} : vector<18x16x128xbf16> to vector<16x16x128xbf16>
    %44 = vector.shape_cast %43 : vector<16x16x128xbf16> to vector<256x128xbf16>
    %c9_i32_35 = arith.constant 9 : i32
    %45 = arith.muli %arg2, %c9_i32_35 : i32
    %c0_i32_36 = arith.constant 0 : i32
    %46 = arith.addi %45, %c0_i32_36 : i32
    %c1_i32 = arith.constant 1 : i32
    %47 = arith.addi %46, %c1_i32 : i32
    %c0_37 = arith.constant 0 : index
    %c0_38 = arith.constant 0 : index
    %48 = vector.load %arg7[%c0_37, %c0_38] : memref<256x128xf32, #tpu.memory_space<vmem>>, vector<256x128xf32>
    %49 = arith.index_cast %47 : i32 to index
    %c0_39 = arith.constant 0 : index
    %c0_40 = arith.constant 0 : index
    %50 = vector.load %arg4[%49, %c0_39, %c0_40] : memref<27x128x128xbf16, #tpu.memory_space<vmem>>, vector<1x128x128xbf16>
    %51 = vector.shape_cast %50 : vector<1x128x128xbf16> to vector<128x128xbf16>
    %cst_41 = arith.constant dense<0.000000e+00> : vector<256x128xf32>
    %52 = tpu.matmul %44, %51, %cst_41 {dimension_numbers = #tpu.dot_dimension_numbers<[1], [0], [0], [1], [0, 0, 1, 1], [], []>} : vector<256x128xbf16>, vector<128x128xbf16>, vector<256x128xf32> -> vector<256x128xf32>
    %53 = arith.addf %48, %52 : vector<256x128xf32>
    %c0_42 = arith.constant 0 : index
    %c0_43 = arith.constant 0 : index
    %54 = vector.load %arg7[%c0_42, %c0_43] : memref<256x128xf32, #tpu.memory_space<vmem>>, vector<256x128xf32>
    tpu.vector_store %arg7[%c0_42, %c0_43], %53 {strides = array<i32>} : memref<256x128xf32, #tpu.memory_space<vmem>>, vector<256x128xf32>,
    %55 = vector.extract_strided_slice %42 {offsets = [1, 0, 0], sizes = [16, 16, 128], strides = [1, 1, 1]} : vector<18x16x128xbf16> to vector<16x16x128xbf16>
    %56 = vector.shape_cast %55 : vector<16x16x128xbf16> to vector<256x128xbf16>
    %c9_i32_44 = arith.constant 9 : i32
    %57 = arith.muli %arg2, %c9_i32_44 : i32
    %c3_i32_45 = arith.constant 3 : i32
    %58 = arith.addi %57, %c3_i32_45 : i32
    %c1_i32_46 = arith.constant 1 : i32
    %59 = arith.addi %58, %c1_i32_46 : i32
    %c0_47 = arith.constant 0 : index
    %c0_48 = arith.constant 0 : index
    %60 = vector.load %arg7[%c0_47, %c0_48] : memref<256x128xf32, #tpu.memory_space<vmem>>, vector<256x128xf32>
    %61 = arith.index_cast %59 : i32 to index
    %c0_49 = arith.constant 0 : index
    %c0_50 = arith.constant 0 : index
    %62 = vector.load %arg4[%61, %c0_49, %c0_50] : memref<27x128x128xbf16, #tpu.memory_space<vmem>>, vector<1x128x128xbf16>
    %63 = vector.shape_cast %62 : vector<1x128x128xbf16> to vector<128x128xbf16>
    %cst_51 = arith.constant dense<0.000000e+00> : vector<256x128xf32>
    %64 = tpu.matmul %56, %63, %cst_51 {dimension_numbers = #tpu.dot_dimension_numbers<[1], [0], [0], [1], [0, 0, 1, 1], [], []>} : vector<256x128xbf16>, vector<128x128xbf16>, vector<256x128xf32> -> vector<256x128xf32>
    %65 = arith.addf %60, %64 : vector<256x128xf32>
    %c0_52 = arith.constant 0 : index
    %c0_53 = arith.constant 0 : index
    %66 = vector.load %arg7[%c0_52, %c0_53] : memref<256x128xf32, #tpu.memory_space<vmem>>, vector<256x128xf32>
    tpu.vector_store %arg7[%c0_52, %c0_53], %65 {strides = array<i32>} : memref<256x128xf32, #tpu.memory_space<vmem>>, vector<256x128xf32>,
    %67 = vector.extract_strided_slice %42 {offsets = [2, 0, 0], sizes = [16, 16, 128], strides = [1, 1, 1]} : vector<18x16x128xbf16> to vector<16x16x128xbf16>
    %68 = vector.shape_cast %67 : vector<16x16x128xbf16> to vector<256x128xbf16>
    %c9_i32_54 = arith.constant 9 : i32
    %69 = arith.muli %arg2, %c9_i32_54 : i32
    %c6_i32_55 = arith.constant 6 : i32
    %70 = arith.addi %69, %c6_i32_55 : i32
    %c1_i32_56 = arith.constant 1 : i32
    %71 = arith.addi %70, %c1_i32_56 : i32
    %c0_57 = arith.constant 0 : index
    %c0_58 = arith.constant 0 : index
    %72 = vector.load %arg7[%c0_57, %c0_58] : memref<256x128xf32, #tpu.memory_space<vmem>>, vector<256x128xf32>
    %73 = arith.index_cast %71 : i32 to index
    %c0_59 = arith.constant 0 : index
    %c0_60 = arith.constant 0 : index
    %74 = vector.load %arg4[%73, %c0_59, %c0_60] : memref<27x128x128xbf16, #tpu.memory_space<vmem>>, vector<1x128x128xbf16>
    %75 = vector.shape_cast %74 : vector<1x128x128xbf16> to vector<128x128xbf16>
    %cst_61 = arith.constant dense<0.000000e+00> : vector<256x128xf32>
    %76 = tpu.matmul %68, %75, %cst_61 {dimension_numbers = #tpu.dot_dimension_numbers<[1], [0], [0], [1], [0, 0, 1, 1], [], []>} : vector<256x128xbf16>, vector<128x128xbf16>, vector<256x128xf32> -> vector<256x128xf32>
    %77 = arith.addf %72, %76 : vector<256x128xf32>
    %c0_62 = arith.constant 0 : index
    %c0_63 = arith.constant 0 : index
    %78 = vector.load %arg7[%c0_62, %c0_63] : memref<256x128xf32, #tpu.memory_space<vmem>>, vector<256x128xf32>
    tpu.vector_store %arg7[%c0_62, %c0_63], %77 {strides = array<i32>} : memref<256x128xf32, #tpu.memory_space<vmem>>, vector<256x128xf32>,
    %c0_64 = arith.constant 0 : index
    %c0_65 = arith.constant 0 : index
    %c0_66 = arith.constant 0 : index
    %c2 = arith.constant 2 : index
    %c0_67 = arith.constant 0 : index
    %79 = vector.load %arg3[%c0_64, %c0_65, %c0_66, %c2, %c0_67] : memref<1x1x18x18x128xbf16, #tpu.memory_space<vmem>>, vector<1x1x18x16x128xbf16>
    %80 = vector.shape_cast %79 : vector<1x1x18x16x128xbf16> to vector<18x16x128xbf16>
    %81 = vector.extract_strided_slice %80 {offsets = [0, 0, 0], sizes = [16, 16, 128], strides = [1, 1, 1]} : vector<18x16x128xbf16> to vector<16x16x128xbf16>
    %82 = vector.shape_cast %81 : vector<16x16x128xbf16> to vector<256x128xbf16>
    %c9_i32_68 = arith.constant 9 : i32
    %83 = arith.muli %arg2, %c9_i32_68 : i32
    %c0_i32_69 = arith.constant 0 : i32
    %84 = arith.addi %83, %c0_i32_69 : i32
    %c2_i32 = arith.constant 2 : i32
    %85 = arith.addi %84, %c2_i32 : i32
    %c0_70 = arith.constant 0 : index
    %c0_71 = arith.constant 0 : index
    %86 = vector.load %arg7[%c0_70, %c0_71] : memref<256x128xf32, #tpu.memory_space<vmem>>, vector<256x128xf32>
    %87 = arith.index_cast %85 : i32 to index
    %c0_72 = arith.constant 0 : index
    %c0_73 = arith.constant 0 : index
    %88 = vector.load %arg4[%87, %c0_72, %c0_73] : memref<27x128x128xbf16, #tpu.memory_space<vmem>>, vector<1x128x128xbf16>
    %89 = vector.shape_cast %88 : vector<1x128x128xbf16> to vector<128x128xbf16>
    %cst_74 = arith.constant dense<0.000000e+00> : vector<256x128xf32>
    %90 = tpu.matmul %82, %89, %cst_74 {dimension_numbers = #tpu.dot_dimension_numbers<[1], [0], [0], [1], [0, 0, 1, 1], [], []>} : vector<256x128xbf16>, vector<128x128xbf16>, vector<256x128xf32> -> vector<256x128xf32>
    %91 = arith.addf %86, %90 : vector<256x128xf32>
    %c0_75 = arith.constant 0 : index
    %c0_76 = arith.constant 0 : index
    %92 = vector.load %arg7[%c0_75, %c0_76] : memref<256x128xf32, #tpu.memory_space<vmem>>, vector<256x128xf32>
    tpu.vector_store %arg7[%c0_75, %c0_76], %91 {strides = array<i32>} : memref<256x128xf32, #tpu.memory_space<vmem>>, vector<256x128xf32>,
    %93 = vector.extract_strided_slice %80 {offsets = [1, 0, 0], sizes = [16, 16, 128], strides = [1, 1, 1]} : vector<18x16x128xbf16> to vector<16x16x128xbf16>
    %94 = vector.shape_cast %93 : vector<16x16x128xbf16> to vector<256x128xbf16>
    %c9_i32_77 = arith.constant 9 : i32
    %95 = arith.muli %arg2, %c9_i32_77 : i32
    %c3_i32_78 = arith.constant 3 : i32
    %96 = arith.addi %95, %c3_i32_78 : i32
    %c2_i32_79 = arith.constant 2 : i32
    %97 = arith.addi %96, %c2_i32_79 : i32
    %c0_80 = arith.constant 0 : index
    %c0_81 = arith.constant 0 : index
    %98 = vector.load %arg7[%c0_80, %c0_81] : memref<256x128xf32, #tpu.memory_space<vmem>>, vector<256x128xf32>
    %99 = arith.index_cast %97 : i32 to index
    %c0_82 = arith.constant 0 : index
    %c0_83 = arith.constant 0 : index
    %100 = vector.load %arg4[%99, %c0_82, %c0_83] : memref<27x128x128xbf16, #tpu.memory_space<vmem>>, vector<1x128x128xbf16>
    %101 = vector.shape_cast %100 : vector<1x128x128xbf16> to vector<128x128xbf16>
    %cst_84 = arith.constant dense<0.000000e+00> : vector<256x128xf32>
    %102 = tpu.matmul %94, %101, %cst_84 {dimension_numbers = #tpu.dot_dimension_numbers<[1], [0], [0], [1], [0, 0, 1, 1], [], []>} : vector<256x128xbf16>, vector<128x128xbf16>, vector<256x128xf32> -> vector<256x128xf32>
    %103 = arith.addf %98, %102 : vector<256x128xf32>
    %c0_85 = arith.constant 0 : index
    %c0_86 = arith.constant 0 : index
    %104 = vector.load %arg7[%c0_85, %c0_86] : memref<256x128xf32, #tpu.memory_space<vmem>>, vector<256x128xf32>
    tpu.vector_store %arg7[%c0_85, %c0_86], %103 {strides = array<i32>} : memref<256x128xf32, #tpu.memory_space<vmem>>, vector<256x128xf32>,
    %105 = vector.extract_strided_slice %80 {offsets = [2, 0, 0], sizes = [16, 16, 128], strides = [1, 1, 1]} : vector<18x16x128xbf16> to vector<16x16x128xbf16>
    %106 = vector.shape_cast %105 : vector<16x16x128xbf16> to vector<256x128xbf16>
    %c9_i32_87 = arith.constant 9 : i32
    %107 = arith.muli %arg2, %c9_i32_87 : i32
    %c6_i32_88 = arith.constant 6 : i32
    %108 = arith.addi %107, %c6_i32_88 : i32
    %c2_i32_89 = arith.constant 2 : i32
    %109 = arith.addi %108, %c2_i32_89 : i32
    %c0_90 = arith.constant 0 : index
    %c0_91 = arith.constant 0 : index
    %110 = vector.load %arg7[%c0_90, %c0_91] : memref<256x128xf32, #tpu.memory_space<vmem>>, vector<256x128xf32>
    %111 = arith.index_cast %109 : i32 to index
    %c0_92 = arith.constant 0 : index
    %c0_93 = arith.constant 0 : index
    %112 = vector.load %arg4[%111, %c0_92, %c0_93] : memref<27x128x128xbf16, #tpu.memory_space<vmem>>, vector<1x128x128xbf16>
    %113 = vector.shape_cast %112 : vector<1x128x128xbf16> to vector<128x128xbf16>
    %cst_94 = arith.constant dense<0.000000e+00> : vector<256x128xf32>
    %114 = tpu.matmul %106, %113, %cst_94 {dimension_numbers = #tpu.dot_dimension_numbers<[1], [0], [0], [1], [0, 0, 1, 1], [], []>} : vector<256x128xbf16>, vector<128x128xbf16>, vector<256x128xf32> -> vector<256x128xf32>
    %115 = arith.addf %110, %114 : vector<256x128xf32>
    %c0_95 = arith.constant 0 : index
    %c0_96 = arith.constant 0 : index
    %116 = vector.load %arg7[%c0_95, %c0_96] : memref<256x128xf32, #tpu.memory_space<vmem>>, vector<256x128xf32>
    tpu.vector_store %arg7[%c0_95, %c0_96], %115 {strides = array<i32>} : memref<256x128xf32, #tpu.memory_space<vmem>>, vector<256x128xf32>,
    %c2_i32_97 = arith.constant 2 : i32
    %117 = arith.cmpi eq, %arg2, %c2_i32_97 : i32
    %118 = arith.extui %117 : i1 to i32
    %c0_i32_98 = arith.constant 0 : i32
    %119 = arith.cmpi ne, %118, %c0_i32_98 : i32
    scf.if %119 {
      %c0_99 = arith.constant 0 : index
      %c0_100 = arith.constant 0 : index
      %120 = vector.load %arg7[%c0_99, %c0_100] : memref<256x128xf32, #tpu.memory_space<vmem>>, vector<256x128xf32>
      %121 = arith.truncf %120 : vector<256x128xf32> to vector<256x128xbf16>
      %c0_101 = arith.constant 0 : index
      %c0_102 = arith.constant 0 : index
      %c0_103 = arith.constant 0 : index
      %c0_104 = arith.constant 0 : index
      %122 = vector.load %arg5[%c0_101, %c0_102, %c0_103, %c0_104] : memref<1x1x256x128xbf16, #tpu.memory_space<vmem>>, vector<1x1x256x128xbf16>
      %123 = vector.shape_cast %122 : vector<1x1x256x128xbf16> to vector<256x128xbf16>
      %124 = vector.shape_cast %121 : vector<256x128xbf16> to vector<1x1x256x128xbf16>
      tpu.vector_store %arg5[%c0_101, %c0_102, %c0_103, %c0_104], %124 {strides = array<i32>} : memref<1x1x256x128xbf16, #tpu.memory_space<vmem>>, vector<1x1x256x128xbf16>,
      %cst_105 = arith.constant dense<0.000000e+00> : vector<128xf32>
      %125 = vector.multi_reduction <add>, %120, %cst_105 [0] : vector<256x128xf32> to vector<128xf32>
      %126 = vector.shape_cast %125 : vector<128xf32> to vector<1x128xf32>
      %c0_106 = arith.constant 0 : index
      %c0_107 = arith.constant 0 : index
      %c0_108 = arith.constant 0 : index
      %c0_109 = arith.constant 0 : index
      %127 = vector.load %arg6[%c0_106, %c0_107, %c0_108, %c0_109] : memref<1x1x2x128xf32, #tpu.memory_space<vmem>>, vector<1x1x1x128xf32>
      %128 = vector.shape_cast %127 : vector<1x1x1x128xf32> to vector<1x128xf32>
      %129 = vector.shape_cast %126 : vector<1x128xf32> to vector<1x1x1x128xf32>
      tpu.vector_store %arg6[%c0_106, %c0_107, %c0_108, %c0_109], %129 {strides = array<i32>} : memref<1x1x2x128xf32, #tpu.memory_space<vmem>>, vector<1x1x1x128xf32>,
      %130 = arith.mulf %120, %120 : vector<256x128xf32>
      %cst_110 = arith.constant dense<0.000000e+00> : vector<128xf32>
      %131 = vector.multi_reduction <add>, %130, %cst_110 [0] : vector<256x128xf32> to vector<128xf32>
      %132 = vector.shape_cast %131 : vector<128xf32> to vector<1x128xf32>
      %c0_111 = arith.constant 0 : index
      %c0_112 = arith.constant 0 : index
      %c1_113 = arith.constant 1 : index
      %c0_114 = arith.constant 0 : index
      %133 = vector.load %arg6[%c0_111, %c0_112, %c1_113, %c0_114] : memref<1x1x2x128xf32, #tpu.memory_space<vmem>>, vector<1x1x1x128xf32>
      %134 = vector.shape_cast %133 : vector<1x1x1x128xf32> to vector<1x128xf32>
      %135 = vector.shape_cast %132 : vector<1x128xf32> to vector<1x1x1x128xf32>
      tpu.vector_store %arg6[%c0_111, %c0_112, %c1_113, %c0_114], %135 {strides = array<i32>} : memref<1x1x2x128xf32, #tpu.memory_space<vmem>>, vector<1x1x1x128xf32>,
    } else {
    }
    return
  }
  func.func @transform_0(%arg0: i32, %arg1: i32, %arg2: i32) -> (i32, i32, i32, i32, i32) {
    %0 = arith.addi %arg1, %arg2 : i32
    %c0_i32 = arith.constant 0 : i32
    %c0_i32_0 = arith.constant 0 : i32
    %c0_i32_1 = arith.constant 0 : i32
    %c0_i32_2 = arith.constant 0 : i32
    return %arg0, %0, %c0_i32, %c0_i32_0, %c0_i32_1 : i32, i32, i32, i32, i32
  }
  func.func @transform_1(%arg0: i32, %arg1: i32, %arg2: i32) -> (i32, i32, i32) {
    %c0_i32 = arith.constant 0 : i32
    %c0_i32_0 = arith.constant 0 : i32
    %c0_i32_1 = arith.constant 0 : i32
    %c0_i32_2 = arith.constant 0 : i32
    return %c0_i32, %c0_i32_0, %c0_i32_1 : i32, i32, i32
  }
  func.func @transform_2(%arg0: i32, %arg1: i32, %arg2: i32) -> (i32, i32, i32, i32) {
    %c0_i32 = arith.constant 0 : i32
    %c0_i32_0 = arith.constant 0 : i32
    %c0_i32_1 = arith.constant 0 : i32
    return %arg0, %arg1, %c0_i32, %c0_i32_0 : i32, i32, i32, i32
  }
  func.func @transform_3(%arg0: i32, %arg1: i32, %arg2: i32) -> (i32, i32, i32, i32) {
    %c0_i32 = arith.constant 0 : i32
    %c0_i32_0 = arith.constant 0 : i32
    %c0_i32_1 = arith.constant 0 : i32
    return %arg0, %arg1, %c0_i32, %c0_i32_0 : i32, i32, i32, i32
  }
}

</mosaic_0001>

<bundles_post_ra>
// kernel: mul.4
= control target key start
LH: loop header
LB: loop body
LE: loop exit
PB: predicated region body
PF: predicated region fallthrough
CT: control target
= control target key end

     0   :  { %s56_s0 = inlined_call_operand.vmem [shape: f32[2,1,128], index: 0, kind: input, shape index: {}]   ;;  %s57_s1 = inlined_call_operand.vmem [shape: f32[2,1,128], index: 1, kind: input, shape index: {}]   ;;  %s58_s2 = inlined_call_operand.vmem [shape: f32[2,1,128], index: 2, kind: output, shape index: {}]  }
   0x1   :  { %v3_v0 = vld [vmem:[%s56_s0] sm:$0x1]  ;;  %v20_v2 = vld [vmem:[%s56_s0 + $0x1] sm:$0x1] }
   0x2   :  { %v4_v1 = vld [vmem:[%s57_s1] sm:$0x1]  ;;  %v21_v4 = vld [vmem:[%s57_s1 + $0x1] sm:$0x1] }
   0x3   :  { %v7_v3 = vmul.f32 %v4_v1, %v3_v0  ;;  %v16_v5 = vmul.f32 %v21_v4, %v20_v2 }
   0x5   :  { %9 = vst [vmem:[%s58_s2] sm:$0x1] %v7_v3 }
   0x6   :  { %22 = vst [vmem:[%s58_s2 + $0x1] sm:$0x1] %v16_v5 }

// kernel: block_up_forward.3
= control target key start
LH: loop header
LB: loop body
LE: loop exit
PB: predicated region body
PF: predicated region fallthrough
CT: control target
= control target key end

     0   :  { %s1686_s12 = smov 0   ;;  %s1688_s13 = smov 0   ;;  %s2215_s0 = inlined_call_operand.vmem [shape: bf16[2,4096,128], index: 0, kind: input, shape index: {}]   ;;  %s2216_s1 = inlined_call_operand.vmem [shape: f32[2,1,128], index: 1, kind: input, shape index: {}]   ;;  %s2217_s2 = inlined_call_operand.vmem [shape: f32[2,1,128], index: 2, kind: input, shape index: {}]   ;;  %s2218_s3 = inlined_call_operand.vmem [shape: f32[2,4096,128], index: 3, kind: output, shape index: {}]  }
   0x1   :  { %s1690_s14 = smov 0   ;;  %s1692_s15 = smov 0  }
   0x2   :  { %s1694_s16 = smov 0  }
   0x3 LB: > { %s22_s17 = sadd.s32 1, %s1656_s14  ;;  %s25_s18 = sadd.s32 1, %s1660_s15  ;;  %s1664_s16 = sphi %s1694_s16, %s13_s16   ;;  %s1660_s15 = sphi %s1692_s15, %s2222_s15   ;;  %s1656_s14 = sphi %s1690_s14, %s2221_s14   ;;  %s1652_s13 = sphi %s1688_s13, %s2220_s13   ;;  %s1648_s12 = sphi %s1686_s12, %s2219_s12  }
   0x4   : > { %p23_p0 = scmp.ge.s32.totalorder %s22_s17, 4  ;;  %p1254_p1 = scmp.ge.s32.totalorder %s1664_s16, 1 }
   0x5   : > { %p174_p2 = scmp.lt.s32.totalorder %s1664_s16, 9 }
   0x6   : > { %s2224_s17 = smov (%p23_p0, %s22_s17), 0  ;;  %s2226_s18 = smov (!%p23_p0, %s25_s18), %s1660_s15 }
   0x7   : > { %p175_p3 = pnand %p1254_p1, %p174_p2  ;;  %p27_p4 = scmp.ge.s32.totalorder %s2226_s18, 2 }
   0x8   : > { %s1255_s19 = sshll.u32 (!%p175_p3), %s1648_s12, 7  ;;  %p213_p5 = scmp.lt.s32.totalorder (!%p175_p3), %s1652_s13, 1 }
   0x9   : > { %s2228_s18 = smov (%p27_p4, %s2226_s18), 0  ;;  %178 = sbr.rel (%p175_p3) target bundleno = 186 (0xba), region = 32 }
   0xa   : > { %p215_p6 = scmp.lt.s32.totalorder (!%p175_p3), %s1255_s19, 511 }
   0xe   : > { %s2230_s13 = smov (!%p213_p5, %s1652_s13), 1  ;;  %s2232_s19 = smov (!%p215_p6, %s1255_s19), 511 }
   0xf   : > { %s1256_s20 = sshll.u32 %s2230_s13, 9  ;;  %s1719_s23 = scalar_lea.vmem %s2216_s1, %s2230_s13 }
  0x10   : > { %s1721_s24 = sadd.s32 %s1256_s20, %s2232_s19  ;;  %s1726_s27 = scalar_lea.vmem %s2217_s2, %s2230_s13  ;;  %v1735_v0 = vld [vmem:[%s1719_s23] ss:$0 sm:$0xff] }
  0x11   : > { %s1257_s28 = sshll.u32 %s1721_s24, 2  ;;  %v1741_v5 = vld [vmem:[%s1726_s27] ss:$0 sm:$0xff]  ;;  %s1260_s5 = sshll.u32 %s1721_s24, 3 }
  0x12   : > { %s1732_s4 = scalar_lea.vmem %s2215_s0, %s1257_s28  ;;  %s1766_s8 = scalar_lea.vmem %s2218_s3, %s1260_s5 }
  0x13   : > { %v1264_v1 = vld [vmem:[%s1732_s4] sm:$0xff]   ;;  %v1519_v2 = vld [vmem:[%s1732_s4 + $0x8] sm:$0xff]   ;;  %v1520_v3 = vld [vmem:[%s1732_s4 + $0x10] sm:$0xff]  }
  0x14   : > { %v1265_v4 = vunpack.c.l.bf16 %v1264_v1  ;;  %v1266_v6 = vunpack.c.h.bf16 %v1264_v1  ;;  %v1269_v7 = vunpack.c.l.bf16 %v1519_v2  ;;  %v1270_v8 = vunpack.c.h.bf16 %v1519_v2  ;;  %v1521_v9 = vld [vmem:[%s1732_s4 + $0x18] sm:$0xff]   ;;  %v1522_v22 = vld [vmem:[%s1732_s4 + $0x20] sm:$0xff]   ;;  %v1523_v31 = vld [vmem:[%s1732_s4 + $0x28] sm:$0xff]  }
  0x15   : > { %v1273_v10 = vunpack.c.l.bf16 %v1520_v3  ;;  %v1274_v11 = vunpack.c.h.bf16 %v1520_v3  ;;  %v1277_v12 = vunpack.c.l.bf16 %v1521_v9  ;;  %v1278_v13 = vunpack.c.h.bf16 %v1521_v9  ;;  %v1524_v44 = vld [vmem:[%s1732_s4 + $0x30] sm:$0xff]   ;;  %v1525_v49 = vld [vmem:[%s1732_s4 + $0x38] sm:$0xff]  }
  0x16   : > { %v498_v14 = vmul.f32 %v1735_v0, %v1265_v4  ;;  %v499_v15 = vmul.f32 %v1735_v0, %v1266_v6  ;;  %v500_v16 = vmul.f32 %v1735_v0, %v1269_v7  ;;  %v501_v17 = vmul.f32 %v1735_v0, %v1270_v8  ;;  %v1526_v8 = vld [vmem:[%s1732_s4 + $0x40] sm:$0xff]  }
  0x17   : > { %v502_v18 = vmul.f32 %v1735_v0, %v1273_v10  ;;  %v503_v19 = vmul.f32 %v1735_v0, %v1274_v11  ;;  %v504_v20 = vmul.f32 %v1735_v0, %v1277_v12  ;;  %v505_v21 = vmul.f32 %v1735_v0, %v1278_v13 }
  0x18   : > { %v630_v23 = vadd.f32 %v1741_v5, %v498_v14  ;;  %v631_v24 = vadd.f32 %v1741_v5, %v499_v15  ;;  %v632_v25 = vadd.f32 %v1741_v5, %v500_v16  ;;  %v633_v26 = vadd.f32 %v1741_v5, %v501_v17 }
  0x19   : > { %v634_v27 = vadd.f32 %v1741_v5, %v502_v18  ;;  %v635_v28 = vadd.f32 %v1741_v5, %v503_v19  ;;  %v636_v29 = vadd.f32 %v1741_v5, %v504_v20  ;;  %v637_v30 = vadd.f32 %v1741_v5, %v505_v21  ;;  %v1527_v21 = vld [vmem:[%s1732_s4 + $0x48] sm:$0xff]  }
  0x1a   : > { %v758_v32 = vmul.f32 0.2, %v630_v23  ;;  %v759_v33 = vmul.f32 0.2, %v631_v24  ;;  %v760_v34 = vmul.f32 0.2, %v632_v25  ;;  %v1281_v35 = vunpack.c.l.bf16 %v1522_v22 }
  0x1b   : > { %v761_v36 = vmul.f32 0.2, %v633_v26  ;;  %v762_v37 = vmul.f32 0.2, %v634_v27  ;;  %v763_v38 = vmul.f32 0.2, %v635_v28  ;;  %v1282_v39 = vunpack.c.h.bf16 %v1522_v22 }
  0x1c   : > { %v886_v40 = vmax.f32 %v630_v23, %v758_v32  ;;  %v887_v41 = vmax.f32 %v631_v24, %v759_v33  ;;  %v888_v42 = vmax.f32 %v632_v25, %v760_v34  ;;  %v764_v43 = vmul.f32 0.2, %v636_v29 }
  0x1d   : > { %v889_v45 = vmax.f32 %v633_v26, %v761_v36  ;;  %v890_v46 = vmax.f32 %v634_v27, %v762_v37  ;;  %v891_v47 = vmax.f32 %v635_v28, %v763_v38  ;;  %v765_v48 = vmul.f32 0.2, %v637_v30  ;;  %v1528_v26 = vld [vmem:[%s1732_s4 + $0x50] sm:$0xff]  }
  0x1e   : > { %1014 = vst [vmem:[%s1766_s8] sm:$0xff] %v886_v40  ;;  %v892_v50 = vmax.f32 %v636_v29, %v764_v43  ;;  %v506_v51 = vmul.f32 %v1735_v0, %v1281_v35  ;;  %v507_v52 = vmul.f32 %v1735_v0, %v1282_v39  ;;  %v1285_v53 = vunpack.c.l.bf16 %v1523_v31 }
  0x1f   : > { %1015 = vst [vmem:[%s1766_s8 + $0x8] sm:$0xff] %v887_v41  ;;  %v893_v54 = vmax.f32 %v637_v30, %v765_v48  ;;  %v1286_v55 = vunpack.c.h.bf16 %v1523_v31  ;;  %v1289_v56 = vunpack.c.l.bf16 %v1524_v44  ;;  %v1290_v57 = vunpack.c.h.bf16 %v1524_v44  ;;  %v1529_v31 = vld [vmem:[%s1732_s4 + $0x58] sm:$0xff]  }
  0x20   : > { %1016 = vst [vmem:[%s1766_s8 + $0x10] sm:$0xff] %v888_v42  ;;  %v638_v58 = vadd.f32 %v1741_v5, %v506_v51  ;;  %v639_v59 = vadd.f32 %v1741_v5, %v507_v52  ;;  %v508_v60 = vmul.f32 %v1735_v0, %v1285_v53  ;;  %v1293_v61 = vunpack.c.l.bf16 %v1525_v49  ;;  %v1530_v52 = vld [vmem:[%s1732_s4 + $0x60] sm:$0xff]  }
  0x21   : > { %1017 = vst [vmem:[%s1766_s8 + $0x18] sm:$0xff] %v889_v45  ;;  %v509_v62 = vmul.f32 %v1735_v0, %v1286_v55  ;;  %v510_v63 = vmul.f32 %v1735_v0, %v1289_v56  ;;  %v511_v1 = vmul.f32 %v1735_v0, %v1290_v57  ;;  %v1294_v2 = vunpack.c.h.bf16 %v1525_v49 }
  0x22   : > { %1018 = vst [vmem:[%s1766_s8 + $0x20] sm:$0xff] %v890_v46  ;;  %v766_v3 = vmul.f32 0.2, %v638_v58  ;;  %v767_v4 = vmul.f32 0.2, %v639_v59  ;;  %v640_v6 = vadd.f32 %v1741_v5, %v508_v60  ;;  %v512_v7 = vmul.f32 %v1735_v0, %v1293_v61 }
  0x23   : > { %1019 = vst [vmem:[%s1766_s8 + $0x28] sm:$0xff] %v891_v47  ;;  %v641_v9 = vadd.f32 %v1741_v5, %v509_v62  ;;  %v642_v10 = vadd.f32 %v1741_v5, %v510_v63  ;;  %v643_v11 = vadd.f32 %v1741_v5, %v511_v1  ;;  %v513_v12 = vmul.f32 %v1735_v0, %v1294_v2  ;;  %v1531_v2 = vld [vmem:[%s1732_s4 + $0x68] sm:$0xff]  }
  0x24   : > { %1020 = vst [vmem:[%s1766_s8 + $0x30] sm:$0xff] %v892_v50  ;;  %v894_v13 = vmax.f32 %v638_v58, %v766_v3  ;;  %v895_v14 = vmax.f32 %v639_v59, %v767_v4  ;;  %v768_v15 = vmul.f32 0.2, %v640_v6  ;;  %v644_v16 = vadd.f32 %v1741_v5, %v512_v7 }
  0x25   : > { %1021 = vst [vmem:[%s1766_s8 + $0x38] sm:$0xff] %v893_v54  ;;  %v769_v17 = vmul.f32 0.2, %v641_v9  ;;  %v770_v18 = vmul.f32 0.2, %v642_v10  ;;  %v645_v19 = vadd.f32 %v1741_v5, %v513_v12  ;;  %v1297_v20 = vunpack.c.l.bf16 %v1526_v8 }
  0x26   : > { %1022 = vst [vmem:[%s1766_s8 + $0x40] sm:$0xff] %v894_v13  ;;  %v896_v22 = vmax.f32 %v640_v6, %v768_v15  ;;  %v771_v23 = vmul.f32 0.2, %v643_v11  ;;  %v772_v24 = vmul.f32 0.2, %v644_v16  ;;  %v1298_v25 = vunpack.c.h.bf16 %v1526_v8  ;;  %v1532_v8 = vld [vmem:[%s1732_s4 + $0x70] sm:$0xff]  }
  0x27   : > { %1023 = vst [vmem:[%s1766_s8 + $0x48] sm:$0xff] %v895_v14  ;;  %v897_v27 = vmax.f32 %v641_v9, %v769_v17  ;;  %v898_v28 = vmax.f32 %v642_v10, %v770_v18  ;;  %v773_v29 = vmul.f32 0.2, %v645_v19  ;;  %v514_v30 = vmul.f32 %v1735_v0, %v1297_v20  ;;  %v1533_v13 = vld [vmem:[%s1732_s4 + $0x78] sm:$0xff]  }
  0x28   : > { %1024 = vst [vmem:[%s1766_s8 + $0x50] sm:$0xff] %v896_v22  ;;  %v899_v32 = vmax.f32 %v643_v11, %v771_v23  ;;  %v900_v33 = vmax.f32 %v644_v16, %v772_v24  ;;  %v515_v34 = vmul.f32 %v1735_v0, %v1298_v25  ;;  %v1301_v35 = vunpack.c.l.bf16 %v1527_v21 }
  0x29   : > { %1025 = vst [vmem:[%s1766_s8 + $0x58] sm:$0xff] %v897_v27  ;;  %v901_v36 = vmax.f32 %v645_v19, %v773_v29  ;;  %v646_v37 = vadd.f32 %v1741_v5, %v514_v30  ;;  %v1302_v38 = vunpack.c.h.bf16 %v1527_v21  ;;  %v1305_v39 = vunpack.c.l.bf16 %v1528_v26 }
  0x2a   : > { %1026 = vst [vmem:[%s1766_s8 + $0x60] sm:$0xff] %v898_v28  ;;  %v647_v40 = vadd.f32 %v1741_v5, %v515_v34  ;;  %v516_v41 = vmul.f32 %v1735_v0, %v1301_v35  ;;  %v1306_v42 = vunpack.c.h.bf16 %v1528_v26  ;;  %v1309_v43 = vunpack.c.l.bf16 %v1529_v31  ;;  %v1534_v34 = vld [vmem:[%s1732_s4 + $0x80] sm:$0xff]  }
  0x2b   : > { %1027 = vst [vmem:[%s1766_s8 + $0x68] sm:$0xff] %v899_v32  ;;  %v774_v44 = vmul.f32 0.2, %v646_v37  ;;  %v517_v45 = vmul.f32 %v1735_v0, %v1302_v38  ;;  %v518_v46 = vmul.f32 %v1735_v0, %v1305_v39  ;;  %v1310_v47 = vunpack.c.h.bf16 %v1529_v31 }
  0x2c   : > { %1028 = vst [vmem:[%s1766_s8 + $0x70] sm:$0xff] %v900_v33  ;;  %v775_v48 = vmul.f32 0.2, %v647_v40  ;;  %v648_v49 = vadd.f32 %v1741_v5, %v516_v41  ;;  %v519_v50 = vmul.f32 %v1735_v0, %v1306_v42  ;;  %v520_v51 = vmul.f32 %v1735_v0, %v1309_v43 }
  0x2d   : > { %1029 = vst [vmem:[%s1766_s8 + $0x78] sm:$0xff] %v901_v36  ;;  %v902_v53 = vmax.f32 %v646_v37, %v774_v44  ;;  %v649_v54 = vadd.f32 %v1741_v5, %v517_v45  ;;  %v650_v55 = vadd.f32 %v1741_v5, %v518_v46  ;;  %v521_v56 = vmul.f32 %v1735_v0, %v1310_v47  ;;  %v1535_v47 = vld [vmem:[%s1732_s4 + $0x88] sm:$0xff]  }
  0x2e   : > { %v903_v57 = vmax.f32 %v647_v40, %v775_v48  ;;  %v776_v58 = vmul.f32 0.2, %v648_v49  ;;  %v651_v59 = vadd.f32 %v1741_v5, %v519_v50  ;;  %v652_v60 = vadd.f32 %v1741_v5, %v520_v51 }
  0x2f   : > { %1030 = vst [vmem:[%s1766_s8 + $0x80] sm:$0xff] %v902_v53  ;;  %v777_v61 = vmul.f32 0.2, %v649_v54  ;;  %v778_v62 = vmul.f32 0.2, %v650_v55  ;;  %v653_v63 = vadd.f32 %v1741_v5, %v521_v56  ;;  %v1313_v1 = vunpack.c.l.bf16 %v1530_v52 }
  0x30   : > { %1031 = vst [vmem:[%s1766_s8 + $0x88] sm:$0xff] %v903_v57  ;;  %v904_v3 = vmax.f32 %v648_v49, %v776_v58  ;;  %v779_v4 = vmul.f32 0.2, %v651_v59  ;;  %v780_v6 = vmul.f32 0.2, %v652_v60  ;;  %v1314_v7 = vunpack.c.h.bf16 %v1530_v52  ;;  %v1536_v52 = vld [vmem:[%s1732_s4 + $0x90] sm:$0xff]  }
  0x31   : > { %v905_v9 = vmax.f32 %v649_v54, %v777_v61  ;;  %v906_v10 = vmax.f32 %v650_v55, %v778_v62  ;;  %v781_v11 = vmul.f32 0.2, %v653_v63  ;;  %v522_v12 = vmul.f32 %v1735_v0, %v1313_v1  ;;  %v1537_v57 = vld [vmem:[%s1732_s4 + $0x98] sm:$0xff]  }
  0x32   : > { %1032 = vst [vmem:[%s1766_s8 + $0x90] sm:$0xff] %v904_v3  ;;  %v907_v14 = vmax.f32 %v651_v59, %v779_v4  ;;  %v908_v15 = vmax.f32 %v652_v60, %v780_v6  ;;  %v523_v16 = vmul.f32 %v1735_v0, %v1314_v7  ;;  %v1317_v17 = vunpack.c.l.bf16 %v1531_v2 }
  0x33   : > { %1033 = vst [vmem:[%s1766_s8 + $0x98] sm:$0xff] %v905_v9  ;;  %v909_v18 = vmax.f32 %v653_v63, %v781_v11  ;;  %v654_v19 = vadd.f32 %v1741_v5, %v522_v12  ;;  %v1318_v20 = vunpack.c.h.bf16 %v1531_v2  ;;  %v1321_v21 = vunpack.c.l.bf16 %v1532_v8 }
  0x34   : > { %1034 = vst [vmem:[%s1766_s8 + $0xa0] sm:$0xff] %v906_v10  ;;  %v655_v22 = vadd.f32 %v1741_v5, %v523_v16  ;;  %v524_v23 = vmul.f32 %v1735_v0, %v1317_v17  ;;  %v1322_v24 = vunpack.c.h.bf16 %v1532_v8  ;;  %v1325_v25 = vunpack.c.l.bf16 %v1533_v13  ;;  %v1538_v16 = vld [vmem:[%s1732_s4 + $0xa0] sm:$0xff]  }
  0x35   : > { %1035 = vst [vmem:[%s1766_s8 + $0xa8] sm:$0xff] %v907_v14  ;;  %v782_v26 = vmul.f32 0.2, %v654_v19  ;;  %v525_v27 = vmul.f32 %v1735_v0, %v1318_v20  ;;  %v526_v28 = vmul.f32 %v1735_v0, %v1321_v21  ;;  %v1326_v29 = vunpack.c.h.bf16 %v1533_v13 }
  0x36   : > { %1036 = vst [vmem:[%s1766_s8 + $0xb0] sm:$0xff] %v908_v15  ;;  %v783_v30 = vmul.f32 0.2, %v655_v22  ;;  %v656_v31 = vadd.f32 %v1741_v5, %v524_v23  ;;  %v527_v32 = vmul.f32 %v1735_v0, %v1322_v24  ;;  %v528_v33 = vmul.f32 %v1735_v0, %v1325_v25 }
  0x37   : > { %1037 = vst [vmem:[%s1766_s8 + $0xb8] sm:$0xff] %v909_v18  ;;  %v910_v35 = vmax.f32 %v654_v19, %v782_v26  ;;  %v657_v36 = vadd.f32 %v1741_v5, %v525_v27  ;;  %v658_v37 = vadd.f32 %v1741_v5, %v526_v28  ;;  %v529_v38 = vmul.f32 %v1735_v0, %v1326_v29  ;;  %v1539_v29 = vld [vmem:[%s1732_s4 + $0xa8] sm:$0xff]  }
  0x38   : > { %v911_v39 = vmax.f32 %v655_v22, %v783_v30  ;;  %v784_v40 = vmul.f32 0.2, %v656_v31  ;;  %v659_v41 = vadd.f32 %v1741_v5, %v527_v32  ;;  %v660_v42 = vadd.f32 %v1741_v5, %v528_v33 }
  0x39   : > { %1038 = vst [vmem:[%s1766_s8 + $0xc0] sm:$0xff] %v910_v35  ;;  %v785_v43 = vmul.f32 0.2, %v657_v36  ;;  %v786_v44 = vmul.f32 0.2, %v658_v37  ;;  %v661_v45 = vadd.f32 %v1741_v5, %v529_v38  ;;  %v1329_v46 = vunpack.c.l.bf16 %v1534_v34 }
  0x3a   : > { %1039 = vst [vmem:[%s1766_s8 + $0xc8] sm:$0xff] %v911_v39  ;;  %v912_v48 = vmax.f32 %v656_v31, %v784_v40  ;;  %v787_v49 = vmul.f32 0.2, %v659_v41  ;;  %v788_v50 = vmul.f32 0.2, %v660_v42  ;;  %v1330_v51 = vunpack.c.h.bf16 %v1534_v34  ;;  %v1540_v34 = vld [vmem:[%s1732_s4 + $0xb0] sm:$0xff]  }
  0x3b   : > { %v913_v53 = vmax.f32 %v657_v36, %v785_v43  ;;  %v914_v54 = vmax.f32 %v658_v37, %v786_v44  ;;  %v789_v55 = vmul.f32 0.2, %v661_v45  ;;  %v530_v56 = vmul.f32 %v1735_v0, %v1329_v46  ;;  %v1541_v39 = vld [vmem:[%s1732_s4 + $0xb8] sm:$0xff]  }
  0x3c   : > { %1040 = vst [vmem:[%s1766_s8 + $0xd0] sm:$0xff] %v912_v48  ;;  %v915_v58 = vmax.f32 %v659_v41, %v787_v49  ;;  %v916_v59 = vmax.f32 %v660_v42, %v788_v50  ;;  %v531_v60 = vmul.f32 %v1735_v0, %v1330_v51  ;;  %v1333_v61 = vunpack.c.l.bf16 %v1535_v47 }
  0x3d   : > { %1041 = vst [vmem:[%s1766_s8 + $0xd8] sm:$0xff] %v913_v53  ;;  %v917_v62 = vmax.f32 %v661_v45, %v789_v55  ;;  %v662_v63 = vadd.f32 %v1741_v5, %v530_v56  ;;  %v1334_v1 = vunpack.c.h.bf16 %v1535_v47  ;;  %v1337_v2 = vunpack.c.l.bf16 %v1536_v52 }
  0x3e   : > { %1042 = vst [vmem:[%s1766_s8 + $0xe0] sm:$0xff] %v914_v54  ;;  %v663_v3 = vadd.f32 %v1741_v5, %v531_v60  ;;  %v532_v4 = vmul.f32 %v1735_v0, %v1333_v61  ;;  %v1338_v6 = vunpack.c.h.bf16 %v1536_v52  ;;  %v1341_v7 = vunpack.c.l.bf16 %v1537_v57  ;;  %v1542_v60 = vld [vmem:[%s1732_s4 + $0xc0] sm:$0xff]  }
  0x3f   : > { %1043 = vst [vmem:[%s1766_s8 + $0xe8] sm:$0xff] %v915_v58  ;;  %v790_v8 = vmul.f32 0.2, %v662_v63  ;;  %v533_v9 = vmul.f32 %v1735_v0, %v1334_v1  ;;  %v534_v10 = vmul.f32 %v1735_v0, %v1337_v2  ;;  %v1342_v11 = vunpack.c.h.bf16 %v1537_v57 }
  0x40   : > { %1044 = vst [vmem:[%s1766_s8 + $0xf0] sm:$0xff] %v916_v59  ;;  %v791_v12 = vmul.f32 0.2, %v663_v3  ;;  %v664_v13 = vadd.f32 %v1741_v5, %v532_v4  ;;  %v535_v14 = vmul.f32 %v1735_v0, %v1338_v6  ;;  %v536_v15 = vmul.f32 %v1735_v0, %v1341_v7 }
  0x41   : > { %1045 = vst [vmem:[%s1766_s8 + $0xf8] sm:$0xff] %v917_v62  ;;  %v918_v17 = vmax.f32 %v662_v63, %v790_v8  ;;  %v665_v18 = vadd.f32 %v1741_v5, %v533_v9  ;;  %v666_v19 = vadd.f32 %v1741_v5, %v534_v10  ;;  %v537_v20 = vmul.f32 %v1735_v0, %v1342_v11  ;;  %v1543_v11 = vld [vmem:[%s1732_s4 + $0xc8] sm:$0xff]  }
  0x42   : > { %v919_v21 = vmax.f32 %v663_v3, %v791_v12  ;;  %v792_v22 = vmul.f32 0.2, %v664_v13  ;;  %v667_v23 = vadd.f32 %v1741_v5, %v535_v14  ;;  %v668_v24 = vadd.f32 %v1741_v5, %v536_v15 }
  0x43   : > { %1046 = vst [vmem:[%s1766_s8 + $0x100] sm:$0xff] %v918_v17  ;;  %v793_v25 = vmul.f32 0.2, %v665_v18  ;;  %v794_v26 = vmul.f32 0.2, %v666_v19  ;;  %v669_v27 = vadd.f32 %v1741_v5, %v537_v20  ;;  %v1345_v28 = vunpack.c.l.bf16 %v1538_v16 }
  0x44   : > { %1047 = vst [vmem:[%s1766_s8 + $0x108] sm:$0xff] %v919_v21  ;;  %v920_v30 = vmax.f32 %v664_v13, %v792_v22  ;;  %v795_v31 = vmul.f32 0.2, %v667_v23  ;;  %v796_v32 = vmul.f32 0.2, %v668_v24  ;;  %v1346_v33 = vunpack.c.h.bf16 %v1538_v16  ;;  %v1544_v16 = vld [vmem:[%s1732_s4 + $0xd0] sm:$0xff]  }
  0x45   : > { %v921_v35 = vmax.f32 %v665_v18, %v793_v25  ;;  %v922_v36 = vmax.f32 %v666_v19, %v794_v26  ;;  %v797_v37 = vmul.f32 0.2, %v669_v27  ;;  %v538_v38 = vmul.f32 %v1735_v0, %v1345_v28  ;;  %v1545_v21 = vld [vmem:[%s1732_s4 + $0xd8] sm:$0xff]  }
  0x46   : > { %1048 = vst [vmem:[%s1766_s8 + $0x110] sm:$0xff] %v920_v30  ;;  %v923_v40 = vmax.f32 %v667_v23, %v795_v31  ;;  %v924_v41 = vmax.f32 %v668_v24, %v796_v32  ;;  %v539_v42 = vmul.f32 %v1735_v0, %v1346_v33  ;;  %v1349_v43 = vunpack.c.l.bf16 %v1539_v29 }
  0x47   : > { %1049 = vst [vmem:[%s1766_s8 + $0x118] sm:$0xff] %v921_v35  ;;  %v925_v44 = vmax.f32 %v669_v27, %v797_v37  ;;  %v670_v45 = vadd.f32 %v1741_v5, %v538_v38  ;;  %v1350_v46 = vunpack.c.h.bf16 %v1539_v29  ;;  %v1353_v47 = vunpack.c.l.bf16 %v1540_v34 }
  0x48   : > { %1050 = vst [vmem:[%s1766_s8 + $0x120] sm:$0xff] %v922_v36  ;;  %v671_v48 = vadd.f32 %v1741_v5, %v539_v42  ;;  %v540_v49 = vmul.f32 %v1735_v0, %v1349_v43  ;;  %v1354_v50 = vunpack.c.h.bf16 %v1540_v34  ;;  %v1357_v51 = vunpack.c.l.bf16 %v1541_v39  ;;  %v1546_v42 = vld [vmem:[%s1732_s4 + $0xe0] sm:$0xff]  }
  0x49   : > { %1051 = vst [vmem:[%s1766_s8 + $0x128] sm:$0xff] %v923_v40  ;;  %v798_v52 = vmul.f32 0.2, %v670_v45  ;;  %v541_v53 = vmul.f32 %v1735_v0, %v1350_v46  ;;  %v542_v54 = vmul.f32 %v1735_v0, %v1353_v47  ;;  %v1358_v55 = vunpack.c.h.bf16 %v1541_v39 }
  0x4a   : > { %1052 = vst [vmem:[%s1766_s8 + $0x130] sm:$0xff] %v924_v41  ;;  %v799_v56 = vmul.f32 0.2, %v671_v48  ;;  %v672_v57 = vadd.f32 %v1741_v5, %v540_v49  ;;  %v543_v58 = vmul.f32 %v1735_v0, %v1354_v50  ;;  %v544_v59 = vmul.f32 %v1735_v0, %v1357_v51 }
  0x4b   : > { %1053 = vst [vmem:[%s1766_s8 + $0x138] sm:$0xff] %v925_v44  ;;  %v926_v61 = vmax.f32 %v670_v45, %v798_v52  ;;  %v673_v62 = vadd.f32 %v1741_v5, %v541_v53  ;;  %v674_v63 = vadd.f32 %v1741_v5, %v542_v54  ;;  %v545_v1 = vmul.f32 %v1735_v0, %v1358_v55  ;;  %v1547_v55 = vld [vmem:[%s1732_s4 + $0xe8] sm:$0xff]  }
  0x4c   : > { %v927_v2 = vmax.f32 %v671_v48, %v799_v56  ;;  %v800_v3 = vmul.f32 0.2, %v672_v57  ;;  %v675_v4 = vadd.f32 %v1741_v5, %v543_v58  ;;  %v676_v6 = vadd.f32 %v1741_v5, %v544_v59 }
  0x4d   : > { %1054 = vst [vmem:[%s1766_s8 + $0x140] sm:$0xff] %v926_v61  ;;  %v801_v7 = vmul.f32 0.2, %v673_v62  ;;  %v802_v8 = vmul.f32 0.2, %v674_v63  ;;  %v677_v9 = vadd.f32 %v1741_v5, %v545_v1  ;;  %v1361_v10 = vunpack.c.l.bf16 %v1542_v60 }
  0x4e   : > { %1055 = vst [vmem:[%s1766_s8 + $0x148] sm:$0xff] %v927_v2  ;;  %v928_v12 = vmax.f32 %v672_v57, %v800_v3  ;;  %v803_v13 = vmul.f32 0.2, %v675_v4  ;;  %v804_v14 = vmul.f32 0.2, %v676_v6  ;;  %v1362_v15 = vunpack.c.h.bf16 %v1542_v60  ;;  %v1548_v60 = vld [vmem:[%s1732_s4 + $0xf0] sm:$0xff]  }
  0x4f   : > { %v929_v17 = vmax.f32 %v673_v62, %v801_v7  ;;  %v930_v18 = vmax.f32 %v674_v63, %v802_v8  ;;  %v805_v19 = vmul.f32 0.2, %v677_v9  ;;  %v546_v20 = vmul.f32 %v1735_v0, %v1361_v10  ;;  %v1549_v2 = vld [vmem:[%s1732_s4 + $0xf8] sm:$0xff]  }
  0x50   : > { %1056 = vst [vmem:[%s1766_s8 + $0x150] sm:$0xff] %v928_v12  ;;  %v931_v22 = vmax.f32 %v675_v4, %v803_v13  ;;  %v932_v23 = vmax.f32 %v676_v6, %v804_v14  ;;  %v547_v24 = vmul.f32 %v1735_v0, %v1362_v15  ;;  %v1365_v25 = vunpack.c.l.bf16 %v1543_v11 }
  0x51   : > { %1057 = vst [vmem:[%s1766_s8 + $0x158] sm:$0xff] %v929_v17  ;;  %v933_v26 = vmax.f32 %v677_v9, %v805_v19  ;;  %v678_v27 = vadd.f32 %v1741_v5, %v546_v20  ;;  %v1366_v28 = vunpack.c.h.bf16 %v1543_v11  ;;  %v1369_v29 = vunpack.c.l.bf16 %v1544_v16 }
  0x52   : > { %1058 = vst [vmem:[%s1766_s8 + $0x160] sm:$0xff] %v930_v18  ;;  %v679_v30 = vadd.f32 %v1741_v5, %v547_v24  ;;  %v548_v31 = vmul.f32 %v1735_v0, %v1365_v25  ;;  %v1370_v32 = vunpack.c.h.bf16 %v1544_v16  ;;  %v1373_v33 = vunpack.c.l.bf16 %v1545_v21  ;;  %v1550_v24 = vld [vmem:[%s1732_s4 + $0x100] sm:$0xff]  }
  0x53   : > { %1059 = vst [vmem:[%s1766_s8 + $0x168] sm:$0xff] %v931_v22  ;;  %v806_v34 = vmul.f32 0.2, %v678_v27  ;;  %v549_v35 = vmul.f32 %v1735_v0, %v1366_v28  ;;  %v550_v36 = vmul.f32 %v1735_v0, %v1369_v29  ;;  %v1374_v37 = vunpack.c.h.bf16 %v1545_v21 }
  0x54   : > { %1060 = vst [vmem:[%s1766_s8 + $0x170] sm:$0xff] %v932_v23  ;;  %v807_v38 = vmul.f32 0.2, %v679_v30  ;;  %v680_v39 = vadd.f32 %v1741_v5, %v548_v31  ;;  %v551_v40 = vmul.f32 %v1735_v0, %v1370_v32  ;;  %v552_v41 = vmul.f32 %v1735_v0, %v1373_v33 }
  0x55   : > { %1061 = vst [vmem:[%s1766_s8 + $0x178] sm:$0xff] %v933_v26  ;;  %v934_v43 = vmax.f32 %v678_v27, %v806_v34  ;;  %v681_v44 = vadd.f32 %v1741_v5, %v549_v35  ;;  %v682_v45 = vadd.f32 %v1741_v5, %v550_v36  ;;  %v553_v46 = vmul.f32 %v1735_v0, %v1374_v37  ;;  %v1551_v37 = vld [vmem:[%s1732_s4 + $0x108] sm:$0xff]  }
  0x56   : > { %v935_v47 = vmax.f32 %v679_v30, %v807_v38  ;;  %v808_v48 = vmul.f32 0.2, %v680_v39  ;;  %v683_v49 = vadd.f32 %v1741_v5, %v551_v40  ;;  %v684_v50 = vadd.f32 %v1741_v5, %v552_v41 }
  0x57   : > { %1062 = vst [vmem:[%s1766_s8 + $0x180] sm:$0xff] %v934_v43  ;;  %v809_v51 = vmul.f32 0.2, %v681_v44  ;;  %v810_v52 = vmul.f32 0.2, %v682_v45  ;;  %v685_v53 = vadd.f32 %v1741_v5, %v553_v46  ;;  %v1377_v54 = vunpack.c.l.bf16 %v1546_v42 }
  0x58   : > { %1063 = vst [vmem:[%s1766_s8 + $0x188] sm:$0xff] %v935_v47  ;;  %v936_v56 = vmax.f32 %v680_v39, %v808_v48  ;;  %v811_v57 = vmul.f32 0.2, %v683_v49  ;;  %v812_v58 = vmul.f32 0.2, %v684_v50  ;;  %v1378_v59 = vunpack.c.h.bf16 %v1546_v42  ;;  %v1552_v42 = vld [vmem:[%s1732_s4 + $0x110] sm:$0xff]  }
  0x59   : > { %v937_v61 = vmax.f32 %v681_v44, %v809_v51  ;;  %v938_v62 = vmax.f32 %v682_v45, %v810_v52  ;;  %v813_v63 = vmul.f32 0.2, %v685_v53  ;;  %v554_v1 = vmul.f32 %v1735_v0, %v1377_v54  ;;  %v1553_v47 = vld [vmem:[%s1732_s4 + $0x118] sm:$0xff]  }
  0x5a   : > { %1064 = vst [vmem:[%s1766_s8 + $0x190] sm:$0xff] %v936_v56  ;;  %v939_v3 = vmax.f32 %v683_v49, %v811_v57  ;;  %v940_v4 = vmax.f32 %v684_v50, %v812_v58  ;;  %v555_v6 = vmul.f32 %v1735_v0, %v1378_v59  ;;  %v1381_v7 = vunpack.c.l.bf16 %v1547_v55 }
  0x5b   : > { %1065 = vst [vmem:[%s1766_s8 + $0x198] sm:$0xff] %v937_v61  ;;  %v941_v8 = vmax.f32 %v685_v53, %v813_v63  ;;  %v686_v9 = vadd.f32 %v1741_v5, %v554_v1  ;;  %v1382_v10 = vunpack.c.h.bf16 %v1547_v55  ;;  %v1385_v11 = vunpack.c.l.bf16 %v1548_v60 }
  0x5c   : > { %1066 = vst [vmem:[%s1766_s8 + $0x1a0] sm:$0xff] %v938_v62  ;;  %v687_v12 = vadd.f32 %v1741_v5, %v555_v6  ;;  %v556_v13 = vmul.f32 %v1735_v0, %v1381_v7  ;;  %v1386_v14 = vunpack.c.h.bf16 %v1548_v60  ;;  %v1389_v15 = vunpack.c.l.bf16 %v1549_v2  ;;  %v1554_v6 = vld [vmem:[%s1732_s4 + $0x120] sm:$0xff]  }
  0x5d   : > { %1067 = vst [vmem:[%s1766_s8 + $0x1a8] sm:$0xff] %v939_v3  ;;  %v814_v16 = vmul.f32 0.2, %v686_v9  ;;  %v557_v17 = vmul.f32 %v1735_v0, %v1382_v10  ;;  %v558_v18 = vmul.f32 %v1735_v0, %v1385_v11  ;;  %v1390_v19 = vunpack.c.h.bf16 %v1549_v2 }
  0x5e   : > { %1068 = vst [vmem:[%s1766_s8 + $0x1b0] sm:$0xff] %v940_v4  ;;  %v815_v20 = vmul.f32 0.2, %v687_v12  ;;  %v688_v21 = vadd.f32 %v1741_v5, %v556_v13  ;;  %v559_v22 = vmul.f32 %v1735_v0, %v1386_v14  ;;  %v560_v23 = vmul.f32 %v1735_v0, %v1389_v15 }
  0x5f   : > { %1069 = vst [vmem:[%s1766_s8 + $0x1b8] sm:$0xff] %v941_v8  ;;  %v942_v25 = vmax.f32 %v686_v9, %v814_v16  ;;  %v689_v26 = vadd.f32 %v1741_v5, %v557_v17  ;;  %v690_v27 = vadd.f32 %v1741_v5, %v558_v18  ;;  %v561_v28 = vmul.f32 %v1735_v0, %v1390_v19  ;;  %v1555_v19 = vld [vmem:[%s1732_s4 + $0x128] sm:$0xff]  }
  0x60   : > { %v943_v29 = vmax.f32 %v687_v12, %v815_v20  ;;  %v816_v30 = vmul.f32 0.2, %v688_v21  ;;  %v691_v31 = vadd.f32 %v1741_v5, %v559_v22  ;;  %v692_v32 = vadd.f32 %v1741_v5, %v560_v23 }
  0x61   : > { %1070 = vst [vmem:[%s1766_s8 + $0x1c0] sm:$0xff] %v942_v25  ;;  %v817_v33 = vmul.f32 0.2, %v689_v26  ;;  %v818_v34 = vmul.f32 0.2, %v690_v27  ;;  %v693_v35 = vadd.f32 %v1741_v5, %v561_v28  ;;  %v1393_v36 = vunpack.c.l.bf16 %v1550_v24 }
  0x62   : > { %1071 = vst [vmem:[%s1766_s8 + $0x1c8] sm:$0xff] %v943_v29  ;;  %v944_v38 = vmax.f32 %v688_v21, %v816_v30  ;;  %v819_v39 = vmul.f32 0.2, %v691_v31  ;;  %v820_v40 = vmul.f32 0.2, %v692_v32  ;;  %v1394_v41 = vunpack.c.h.bf16 %v1550_v24  ;;  %v1556_v24 = vld [vmem:[%s1732_s4 + $0x130] sm:$0xff]  }
  0x63   : > { %v945_v43 = vmax.f32 %v689_v26, %v817_v33  ;;  %v946_v44 = vmax.f32 %v690_v27, %v818_v34  ;;  %v821_v45 = vmul.f32 0.2, %v693_v35  ;;  %v562_v46 = vmul.f32 %v1735_v0, %v1393_v36  ;;  %v1557_v29 = vld [vmem:[%s1732_s4 + $0x138] sm:$0xff]  }
  0x64   : > { %1072 = vst [vmem:[%s1766_s8 + $0x1d0] sm:$0xff] %v944_v38  ;;  %v947_v48 = vmax.f32 %v691_v31, %v819_v39  ;;  %v948_v49 = vmax.f32 %v692_v32, %v820_v40  ;;  %v563_v50 = vmul.f32 %v1735_v0, %v1394_v41  ;;  %v1397_v51 = vunpack.c.l.bf16 %v1551_v37 }
  0x65   : > { %1073 = vst [vmem:[%s1766_s8 + $0x1d8] sm:$0xff] %v945_v43  ;;  %v949_v52 = vmax.f32 %v693_v35, %v821_v45  ;;  %v694_v53 = vadd.f32 %v1741_v5, %v562_v46  ;;  %v1398_v54 = vunpack.c.h.bf16 %v1551_v37  ;;  %v1401_v55 = vunpack.c.l.bf16 %v1552_v42 }
  0x66   : > { %1074 = vst [vmem:[%s1766_s8 + $0x1e0] sm:$0xff] %v946_v44  ;;  %v695_v56 = vadd.f32 %v1741_v5, %v563_v50  ;;  %v564_v57 = vmul.f32 %v1735_v0, %v1397_v51  ;;  %v1402_v58 = vunpack.c.h.bf16 %v1552_v42  ;;  %v1405_v59 = vunpack.c.l.bf16 %v1553_v47  ;;  %v1558_v50 = vld [vmem:[%s1732_s4 + $0x140] sm:$0xff]  }
  0x67   : > { %1075 = vst [vmem:[%s1766_s8 + $0x1e8] sm:$0xff] %v947_v48  ;;  %v822_v60 = vmul.f32 0.2, %v694_v53  ;;  %v565_v61 = vmul.f32 %v1735_v0, %v1398_v54  ;;  %v566_v62 = vmul.f32 %v1735_v0, %v1401_v55  ;;  %v1406_v63 = vunpack.c.h.bf16 %v1553_v47 }
  0x68   : > { %1076 = vst [vmem:[%s1766_s8 + $0x1f0] sm:$0xff] %v948_v49  ;;  %v823_v1 = vmul.f32 0.2, %v695_v56  ;;  %v696_v2 = vadd.f32 %v1741_v5, %v564_v57  ;;  %v567_v3 = vmul.f32 %v1735_v0, %v1402_v58  ;;  %v568_v4 = vmul.f32 %v1735_v0, %v1405_v59 }
  0x69   : > { %1077 = vst [vmem:[%s1766_s8 + $0x1f8] sm:$0xff] %v949_v52  ;;  %v950_v7 = vmax.f32 %v694_v53, %v822_v60  ;;  %v697_v8 = vadd.f32 %v1741_v5, %v565_v61  ;;  %v698_v9 = vadd.f32 %v1741_v5, %v566_v62  ;;  %v569_v10 = vmul.f32 %v1735_v0, %v1406_v63  ;;  %v1559_v63 = vld [vmem:[%s1732_s4 + $0x148] sm:$0xff]  }
  0x6a   : > { %v951_v11 = vmax.f32 %v695_v56, %v823_v1  ;;  %v824_v12 = vmul.f32 0.2, %v696_v2  ;;  %v699_v13 = vadd.f32 %v1741_v5, %v567_v3  ;;  %v700_v14 = vadd.f32 %v1741_v5, %v568_v4  ;;  %v1560_v4 = vld [vmem:[%s1732_s4 + $0x150] sm:$0xff]  }
  0x6b   : > { %1078 = vst [vmem:[%s1766_s8 + $0x200] sm:$0xff] %v950_v7  ;;  %v825_v15 = vmul.f32 0.2, %v697_v8  ;;  %v826_v16 = vmul.f32 0.2, %v698_v9  ;;  %v701_v17 = vadd.f32 %v1741_v5, %v569_v10  ;;  %v1409_v18 = vunpack.c.l.bf16 %v1554_v6 }
  0x6c   : > { %1079 = vst [vmem:[%s1766_s8 + $0x208] sm:$0xff] %v951_v11  ;;  %v952_v20 = vmax.f32 %v696_v2, %v824_v12  ;;  %v827_v21 = vmul.f32 0.2, %v699_v13  ;;  %v828_v22 = vmul.f32 0.2, %v700_v14  ;;  %v1410_v23 = vunpack.c.h.bf16 %v1554_v6  ;;  %v1561_v11 = vld [vmem:[%s1732_s4 + $0x158] sm:$0xff]  }
  0x6d   : > { %v953_v25 = vmax.f32 %v697_v8, %v825_v15  ;;  %v954_v26 = vmax.f32 %v698_v9, %v826_v16  ;;  %v829_v27 = vmul.f32 0.2, %v701_v17  ;;  %v570_v28 = vmul.f32 %v1735_v0, %v1409_v18  ;;  %v2024_v9 = vld [vmem:[%s1719_s23] ss:$0 sm:$0xff] }
  0x6e   : > { %1080 = vst [vmem:[%s1766_s8 + $0x210] sm:$0xff] %v952_v20  ;;  %v955_v30 = vmax.f32 %v699_v13, %v827_v21  ;;  %v956_v31 = vmax.f32 %v700_v14, %v828_v22  ;;  %v571_v32 = vmul.f32 %v1735_v0, %v1410_v23  ;;  %v1413_v33 = vunpack.c.l.bf16 %v1555_v19  ;;  %v2032_v16 = vld [vmem:[%s1726_s27] ss:$0 sm:$0xff] }
  0x6f   : > { %1081 = vst [vmem:[%s1766_s8 + $0x218] sm:$0xff] %v953_v25  ;;  %v957_v34 = vmax.f32 %v701_v17, %v829_v27  ;;  %v702_v35 = vadd.f32 %v1741_v5, %v570_v28  ;;  %v1414_v36 = vunpack.c.h.bf16 %v1555_v19  ;;  %v1417_v37 = vunpack.c.l.bf16 %v1556_v24 }
  0x70   : > { %1082 = vst [vmem:[%s1766_s8 + $0x220] sm:$0xff] %v954_v26  ;;  %v703_v38 = vadd.f32 %v1741_v5, %v571_v32  ;;  %v572_v39 = vmul.f32 %v1735_v0, %v1413_v33  ;;  %v1418_v40 = vunpack.c.h.bf16 %v1556_v24  ;;  %v1421_v41 = vunpack.c.l.bf16 %v1557_v29  ;;  %v1562_v32 = vld [vmem:[%s1732_s4 + $0x160] sm:$0xff]  }
  0x71   : > { %1083 = vst [vmem:[%s1766_s8 + $0x228] sm:$0xff] %v955_v30  ;;  %v830_v42 = vmul.f32 0.2, %v702_v35  ;;  %v573_v43 = vmul.f32 %v1735_v0, %v1414_v36  ;;  %v574_v44 = vmul.f32 %v1735_v0, %v1417_v37  ;;  %v1422_v45 = vunpack.c.h.bf16 %v1557_v29 }
  0x72   : > { %1084 = vst [vmem:[%s1766_s8 + $0x230] sm:$0xff] %v956_v31  ;;  %v831_v46 = vmul.f32 0.2, %v703_v38  ;;  %v704_v47 = vadd.f32 %v1741_v5, %v572_v39  ;;  %v575_v48 = vmul.f32 %v1735_v0, %v1418_v40  ;;  %v576_v49 = vmul.f32 %v1735_v0, %v1421_v41 }
  0x73   : > { %1085 = vst [vmem:[%s1766_s8 + $0x238] sm:$0xff] %v957_v34  ;;  %v958_v51 = vmax.f32 %v702_v35, %v830_v42  ;;  %v705_v52 = vadd.f32 %v1741_v5, %v573_v43  ;;  %v706_v53 = vadd.f32 %v1741_v5, %v574_v44  ;;  %v577_v54 = vmul.f32 %v1735_v0, %v1422_v45  ;;  %v1563_v45 = vld [vmem:[%s1732_s4 + $0x168] sm:$0xff]  }
  0x74   : > { %v959_v55 = vmax.f32 %v703_v38, %v831_v46  ;;  %v832_v56 = vmul.f32 0.2, %v704_v47  ;;  %v707_v57 = vadd.f32 %v1741_v5, %v575_v48  ;;  %v708_v58 = vadd.f32 %v1741_v5, %v576_v49 }
  0x75   : > { %1086 = vst [vmem:[%s1766_s8 + $0x240] sm:$0xff] %v958_v51  ;;  %v833_v59 = vmul.f32 0.2, %v705_v52  ;;  %v834_v60 = vmul.f32 0.2, %v706_v53  ;;  %v709_v61 = vadd.f32 %v1741_v5, %v577_v54  ;;  %v1425_v62 = vunpack.c.l.bf16 %v1558_v50 }
  0x76   : > { %1087 = vst [vmem:[%s1766_s8 + $0x248] sm:$0xff] %v959_v55  ;;  %v960_v1 = vmax.f32 %v704_v47, %v832_v56  ;;  %v835_v0 = vmul.f32 0.2, %v707_v57  ;;  %v836_v2 = vmul.f32 0.2, %v708_v58  ;;  %v1426_v3 = vunpack.c.h.bf16 %v1558_v50  ;;  %v1564_v50 = vld [vmem:[%s1732_s4 + $0x170] sm:$0xff]  }
  0x77   : > { %v961_v6 = vmax.f32 %v705_v52, %v833_v59  ;;  %v962_v7 = vmax.f32 %v706_v53, %v834_v60  ;;  %v837_v8 = vmul.f32 0.2, %v709_v61  ;;  %v578_v10 = vmul.f32 %v2024_v9, %v1425_v62  ;;  %v1565_v55 = vld [vmem:[%s1732_s4 + $0x178] sm:$0xff]  }
  0x78   : > { %1088 = vst [vmem:[%s1766_s8 + $0x250] sm:$0xff] %v960_v1  ;;  %v963_v5 = vmax.f32 %v707_v57, %v835_v0  ;;  %v964_v12 = vmax.f32 %v708_v58, %v836_v2  ;;  %v579_v13 = vmul.f32 %v2024_v9, %v1426_v3  ;;  %v1429_v14 = vunpack.c.l.bf16 %v1559_v63 }
  0x79   : > { %1089 = vst [vmem:[%s1766_s8 + $0x258] sm:$0xff] %v961_v6  ;;  %v965_v15 = vmax.f32 %v709_v61, %v837_v8  ;;  %v710_v17 = vadd.f32 %v2032_v16, %v578_v10  ;;  %v1430_v18 = vunpack.c.h.bf16 %v1559_v63  ;;  %v1433_v19 = vunpack.c.l.bf16 %v1560_v4 }
  0x7a   : > { %1090 = vst [vmem:[%s1766_s8 + $0x260] sm:$0xff] %v962_v7  ;;  %v711_v20 = vadd.f32 %v2032_v16, %v579_v13  ;;  %v580_v21 = vmul.f32 %v2024_v9, %v1429_v14  ;;  %v1434_v22 = vunpack.c.h.bf16 %v1560_v4  ;;  %v1437_v23 = vunpack.c.l.bf16 %v1561_v11  ;;  %v1566_v13 = vld [vmem:[%s1732_s4 + $0x180] sm:$0xff]  }
  0x7b   : > { %1091 = vst [vmem:[%s1766_s8 + $0x268] sm:$0xff] %v963_v5  ;;  %v838_v24 = vmul.f32 0.2, %v710_v17  ;;  %v581_v25 = vmul.f32 %v2024_v9, %v1430_v18  ;;  %v582_v26 = vmul.f32 %v2024_v9, %v1433_v19  ;;  %v1438_v27 = vunpack.c.h.bf16 %v1561_v11 }
  0x7c   : > { %1092 = vst [vmem:[%s1766_s8 + $0x270] sm:$0xff] %v964_v12  ;;  %v839_v28 = vmul.f32 0.2, %v711_v20  ;;  %v712_v29 = vadd.f32 %v2032_v16, %v580_v21  ;;  %v583_v30 = vmul.f32 %v2024_v9, %v1434_v22  ;;  %v584_v31 = vmul.f32 %v2024_v9, %v1437_v23 }
  0x7d   : > { %1093 = vst [vmem:[%s1766_s8 + $0x278] sm:$0xff] %v965_v15  ;;  %v966_v33 = vmax.f32 %v710_v17, %v838_v24  ;;  %v713_v34 = vadd.f32 %v2032_v16, %v581_v25  ;;  %v714_v35 = vadd.f32 %v2032_v16, %v582_v26  ;;  %v585_v36 = vmul.f32 %v2024_v9, %v1438_v27  ;;  %v1567_v27 = vld [vmem:[%s1732_s4 + $0x188] sm:$0xff]  }
  0x7e   : > { %v967_v37 = vmax.f32 %v711_v20, %v839_v28  ;;  %v840_v38 = vmul.f32 0.2, %v712_v29  ;;  %v715_v39 = vadd.f32 %v2032_v16, %v583_v30  ;;  %v716_v40 = vadd.f32 %v2032_v16, %v584_v31 }
  0x7f   : > { %1094 = vst [vmem:[%s1766_s8 + $0x280] sm:$0xff] %v966_v33  ;;  %v841_v41 = vmul.f32 0.2, %v713_v34  ;;  %v842_v42 = vmul.f32 0.2, %v714_v35  ;;  %v717_v43 = vadd.f32 %v2032_v16, %v585_v36  ;;  %v1441_v44 = vunpack.c.l.bf16 %v1562_v32 }
  0x80   : > { %1095 = vst [vmem:[%s1766_s8 + $0x288] sm:$0xff] %v967_v37  ;;  %v968_v46 = vmax.f32 %v712_v29, %v840_v38  ;;  %v843_v47 = vmul.f32 0.2, %v715_v39  ;;  %v844_v48 = vmul.f32 0.2, %v716_v40  ;;  %v1442_v49 = vunpack.c.h.bf16 %v1562_v32  ;;  %v1568_v32 = vld [vmem:[%s1732_s4 + $0x190] sm:$0xff]  }
  0x81   : > { %v969_v51 = vmax.f32 %v713_v34, %v841_v41  ;;  %v970_v52 = vmax.f32 %v714_v35, %v842_v42  ;;  %v845_v53 = vmul.f32 0.2, %v717_v43  ;;  %v586_v54 = vmul.f32 %v2024_v9, %v1441_v44  ;;  %v1569_v37 = vld [vmem:[%s1732_s4 + $0x198] sm:$0xff]  }
  0x82   : > { %1096 = vst [vmem:[%s1766_s8 + $0x290] sm:$0xff] %v968_v46  ;;  %v971_v56 = vmax.f32 %v715_v39, %v843_v47  ;;  %v972_v57 = vmax.f32 %v716_v40, %v844_v48  ;;  %v587_v58 = vmul.f32 %v2024_v9, %v1442_v49  ;;  %v1445_v59 = vunpack.c.l.bf16 %v1563_v45 }
  0x83   : > { %1097 = vst [vmem:[%s1766_s8 + $0x298] sm:$0xff] %v969_v51  ;;  %v973_v60 = vmax.f32 %v717_v43, %v845_v53  ;;  %v718_v61 = vadd.f32 %v2032_v16, %v586_v54  ;;  %v1446_v62 = vunpack.c.h.bf16 %v1563_v45  ;;  %v1449_v63 = vunpack.c.l.bf16 %v1564_v50 }
  0x84   : > { %1098 = vst [vmem:[%s1766_s8 + $0x2a0] sm:$0xff] %v970_v52  ;;  %v719_v1 = vadd.f32 %v2032_v16, %v587_v58  ;;  %v588_v0 = vmul.f32 %v2024_v9, %v1445_v59  ;;  %v1450_v2 = vunpack.c.h.bf16 %v1564_v50  ;;  %v1453_v3 = vunpack.c.l.bf16 %v1565_v55  ;;  %v1570_v58 = vld [vmem:[%s1732_s4 + $0x1a0] sm:$0xff]  }
  0x85   : > { %1099 = vst [vmem:[%s1766_s8 + $0x2a8] sm:$0xff] %v971_v56  ;;  %v846_v4 = vmul.f32 0.2, %v718_v61  ;;  %v589_v6 = vmul.f32 %v2024_v9, %v1446_v62  ;;  %v590_v7 = vmul.f32 %v2024_v9, %v1449_v63  ;;  %v1454_v8 = vunpack.c.h.bf16 %v1565_v55 }
  0x86   : > { %1100 = vst [vmem:[%s1766_s8 + $0x2b0] sm:$0xff] %v972_v57  ;;  %v847_v10 = vmul.f32 0.2, %v719_v1  ;;  %v720_v11 = vadd.f32 %v2032_v16, %v588_v0  ;;  %v591_v5 = vmul.f32 %v2024_v9, %v1450_v2  ;;  %v592_v12 = vmul.f32 %v2024_v9, %v1453_v3 }
  0x87   : > { %1101 = vst [vmem:[%s1766_s8 + $0x2b8] sm:$0xff] %v973_v60  ;;  %v974_v14 = vmax.f32 %v718_v61, %v846_v4  ;;  %v721_v15 = vadd.f32 %v2032_v16, %v589_v6  ;;  %v722_v17 = vadd.f32 %v2032_v16, %v590_v7  ;;  %v593_v18 = vmul.f32 %v2024_v9, %v1454_v8  ;;  %v1571_v8 = vld [vmem:[%s1732_s4 + $0x1a8] sm:$0xff]  }
  0x88   : > { %v975_v19 = vmax.f32 %v719_v1, %v847_v10  ;;  %v848_v20 = vmul.f32 0.2, %v720_v11  ;;  %v723_v21 = vadd.f32 %v2032_v16, %v591_v5  ;;  %v724_v22 = vadd.f32 %v2032_v16, %v592_v12 }
  0x89   : > { %1102 = vst [vmem:[%s1766_s8 + $0x2c0] sm:$0xff] %v974_v14  ;;  %v849_v23 = vmul.f32 0.2, %v721_v15  ;;  %v850_v24 = vmul.f32 0.2, %v722_v17  ;;  %v725_v25 = vadd.f32 %v2032_v16, %v593_v18  ;;  %v1457_v26 = vunpack.c.l.bf16 %v1566_v13 }
  0x8a   : > { %1103 = vst [vmem:[%s1766_s8 + $0x2c8] sm:$0xff] %v975_v19  ;;  %v976_v28 = vmax.f32 %v720_v11, %v848_v20  ;;  %v851_v29 = vmul.f32 0.2, %v723_v21  ;;  %v852_v30 = vmul.f32 0.2, %v724_v22  ;;  %v1458_v31 = vunpack.c.h.bf16 %v1566_v13  ;;  %v1572_v13 = vld [vmem:[%s1732_s4 + $0x1b0] sm:$0xff]  }
  0x8b   : > { %v977_v33 = vmax.f32 %v721_v15, %v849_v23  ;;  %v978_v34 = vmax.f32 %v722_v17, %v850_v24  ;;  %v853_v35 = vmul.f32 0.2, %v725_v25  ;;  %v594_v36 = vmul.f32 %v2024_v9, %v1457_v26  ;;  %v1573_v19 = vld [vmem:[%s1732_s4 + $0x1b8] sm:$0xff]  }
  0x8c   : > { %1104 = vst [vmem:[%s1766_s8 + $0x2d0] sm:$0xff] %v976_v28  ;;  %v979_v38 = vmax.f32 %v723_v21, %v851_v29  ;;  %v980_v39 = vmax.f32 %v724_v22, %v852_v30  ;;  %v595_v40 = vmul.f32 %v2024_v9, %v1458_v31  ;;  %v1461_v41 = vunpack.c.l.bf16 %v1567_v27 }
  0x8d   : > { %1105 = vst [vmem:[%s1766_s8 + $0x2d8] sm:$0xff] %v977_v33  ;;  %v981_v42 = vmax.f32 %v725_v25, %v853_v35  ;;  %v726_v43 = vadd.f32 %v2032_v16, %v594_v36  ;;  %v1462_v44 = vunpack.c.h.bf16 %v1567_v27  ;;  %v1465_v45 = vunpack.c.l.bf16 %v1568_v32 }
  0x8e   : > { %1106 = vst [vmem:[%s1766_s8 + $0x2e0] sm:$0xff] %v978_v34  ;;  %v727_v46 = vadd.f32 %v2032_v16, %v595_v40  ;;  %v596_v47 = vmul.f32 %v2024_v9, %v1461_v41  ;;  %v1466_v48 = vunpack.c.h.bf16 %v1568_v32  ;;  %v1469_v49 = vunpack.c.l.bf16 %v1569_v37  ;;  %v1574_v40 = vld [vmem:[%s1732_s4 + $0x1c0] sm:$0xff]  }
  0x8f   : > { %1107 = vst [vmem:[%s1766_s8 + $0x2e8] sm:$0xff] %v979_v38  ;;  %v854_v50 = vmul.f32 0.2, %v726_v43  ;;  %v597_v51 = vmul.f32 %v2024_v9, %v1462_v44  ;;  %v598_v52 = vmul.f32 %v2024_v9, %v1465_v45  ;;  %v1470_v53 = vunpack.c.h.bf16 %v1569_v37 }
  0x90   : > { %1108 = vst [vmem:[%s1766_s8 + $0x2f0] sm:$0xff] %v980_v39  ;;  %v855_v54 = vmul.f32 0.2, %v727_v46  ;;  %v728_v55 = vadd.f32 %v2032_v16, %v596_v47  ;;  %v599_v56 = vmul.f32 %v2024_v9, %v1466_v48  ;;  %v600_v57 = vmul.f32 %v2024_v9, %v1469_v49 }
  0x91   : > { %1109 = vst [vmem:[%s1766_s8 + $0x2f8] sm:$0xff] %v981_v42  ;;  %v982_v59 = vmax.f32 %v726_v43, %v854_v50  ;;  %v729_v60 = vadd.f32 %v2032_v16, %v597_v51  ;;  %v730_v61 = vadd.f32 %v2032_v16, %v598_v52  ;;  %v601_v62 = vmul.f32 %v2024_v9, %v1470_v53  ;;  %v1575_v53 = vld [vmem:[%s1732_s4 + $0x1c8] sm:$0xff]  }
  0x92   : > { %v983_v63 = vmax.f32 %v727_v46, %v855_v54  ;;  %v856_v1 = vmul.f32 0.2, %v728_v55  ;;  %v731_v0 = vadd.f32 %v2032_v16, %v599_v56  ;;  %v732_v2 = vadd.f32 %v2032_v16, %v600_v57 }
  0x93   : > { %1110 = vst [vmem:[%s1766_s8 + $0x300] sm:$0xff] %v982_v59  ;;  %v857_v3 = vmul.f32 0.2, %v729_v60  ;;  %v858_v4 = vmul.f32 0.2, %v730_v61  ;;  %v733_v6 = vadd.f32 %v2032_v16, %v601_v62  ;;  %v1473_v7 = vunpack.c.l.bf16 %v1570_v58 }
  0x94   : > { %1111 = vst [vmem:[%s1766_s8 + $0x308] sm:$0xff] %v983_v63  ;;  %v984_v10 = vmax.f32 %v728_v55, %v856_v1  ;;  %v859_v11 = vmul.f32 0.2, %v731_v0  ;;  %v860_v5 = vmul.f32 0.2, %v732_v2  ;;  %v1474_v12 = vunpack.c.h.bf16 %v1570_v58  ;;  %v1576_v58 = vld [vmem:[%s1732_s4 + $0x1d0] sm:$0xff]  }
  0x95   : > { %v985_v14 = vmax.f32 %v729_v60, %v857_v3  ;;  %v986_v15 = vmax.f32 %v730_v61, %v858_v4  ;;  %v861_v17 = vmul.f32 0.2, %v733_v6  ;;  %v602_v18 = vmul.f32 %v2024_v9, %v1473_v7  ;;  %v1577_v63 = vld [vmem:[%s1732_s4 + $0x1d8] sm:$0xff]  }
  0x96   : > { %1112 = vst [vmem:[%s1766_s8 + $0x310] sm:$0xff] %v984_v10  ;;  %v987_v20 = vmax.f32 %v731_v0, %v859_v11  ;;  %v988_v21 = vmax.f32 %v732_v2, %v860_v5  ;;  %v603_v22 = vmul.f32 %v2024_v9, %v1474_v12  ;;  %v1477_v23 = vunpack.c.l.bf16 %v1571_v8 }
  0x97   : > { %1113 = vst [vmem:[%s1766_s8 + $0x318] sm:$0xff] %v985_v14  ;;  %v989_v24 = vmax.f32 %v733_v6, %v861_v17  ;;  %v734_v25 = vadd.f32 %v2032_v16, %v602_v18  ;;  %v1478_v26 = vunpack.c.h.bf16 %v1571_v8  ;;  %v1481_v27 = vunpack.c.l.bf16 %v1572_v13 }
  0x98   : > { %1114 = vst [vmem:[%s1766_s8 + $0x320] sm:$0xff] %v986_v15  ;;  %v735_v28 = vadd.f32 %v2032_v16, %v603_v22  ;;  %v604_v29 = vmul.f32 %v2024_v9, %v1477_v23  ;;  %v1482_v30 = vunpack.c.h.bf16 %v1572_v13  ;;  %v1485_v31 = vunpack.c.l.bf16 %v1573_v19  ;;  %v1578_v22 = vld [vmem:[%s1732_s4 + $0x1e0] sm:$0xff]  }
  0x99   : > { %1115 = vst [vmem:[%s1766_s8 + $0x328] sm:$0xff] %v987_v20  ;;  %v862_v32 = vmul.f32 0.2, %v734_v25  ;;  %v605_v33 = vmul.f32 %v2024_v9, %v1478_v26  ;;  %v606_v34 = vmul.f32 %v2024_v9, %v1481_v27  ;;  %v1486_v35 = vunpack.c.h.bf16 %v1573_v19 }
  0x9a   : > { %1116 = vst [vmem:[%s1766_s8 + $0x330] sm:$0xff] %v988_v21  ;;  %v863_v36 = vmul.f32 0.2, %v735_v28  ;;  %v736_v37 = vadd.f32 %v2032_v16, %v604_v29  ;;  %v607_v38 = vmul.f32 %v2024_v9, %v1482_v30  ;;  %v608_v39 = vmul.f32 %v2024_v9, %v1485_v31 }
  0x9b   : > { %1117 = vst [vmem:[%s1766_s8 + $0x338] sm:$0xff] %v989_v24  ;;  %v990_v41 = vmax.f32 %v734_v25, %v862_v32  ;;  %v737_v42 = vadd.f32 %v2032_v16, %v605_v33  ;;  %v738_v43 = vadd.f32 %v2032_v16, %v606_v34  ;;  %v609_v44 = vmul.f32 %v2024_v9, %v1486_v35  ;;  %v1579_v35 = vld [vmem:[%s1732_s4 + $0x1e8] sm:$0xff]  }
  0x9c   : > { %v991_v45 = vmax.f32 %v735_v28, %v863_v36  ;;  %v864_v46 = vmul.f32 0.2, %v736_v37  ;;  %v739_v47 = vadd.f32 %v2032_v16, %v607_v38  ;;  %v740_v48 = vadd.f32 %v2032_v16, %v608_v39 }
  0x9d   : > { %1118 = vst [vmem:[%s1766_s8 + $0x340] sm:$0xff] %v990_v41  ;;  %v865_v49 = vmul.f32 0.2, %v737_v42  ;;  %v866_v50 = vmul.f32 0.2, %v738_v43  ;;  %v741_v51 = vadd.f32 %v2032_v16, %v609_v44  ;;  %v1489_v52 = vunpack.c.l.bf16 %v1574_v40 }
  0x9e   : > { %1119 = vst [vmem:[%s1766_s8 + $0x348] sm:$0xff] %v991_v45  ;;  %v992_v54 = vmax.f32 %v736_v37, %v864_v46  ;;  %v867_v55 = vmul.f32 0.2, %v739_v47  ;;  %v868_v56 = vmul.f32 0.2, %v740_v48  ;;  %v1490_v57 = vunpack.c.h.bf16 %v1574_v40  ;;  %v1580_v40 = vld [vmem:[%s1732_s4 + $0x1f0] sm:$0xff]  }
  0x9f   : > { %v993_v59 = vmax.f32 %v737_v42, %v865_v49  ;;  %v994_v60 = vmax.f32 %v738_v43, %v866_v50  ;;  %v869_v61 = vmul.f32 0.2, %v741_v51  ;;  %v610_v62 = vmul.f32 %v2024_v9, %v1489_v52  ;;  %v1581_v45 = vld [vmem:[%s1732_s4 + $0x1f8] sm:$0xff]  }
  0xa0   : > { %1120 = vst [vmem:[%s1766_s8 + $0x350] sm:$0xff] %v992_v54  ;;  %v995_v1 = vmax.f32 %v739_v47, %v867_v55  ;;  %v996_v0 = vmax.f32 %v740_v48, %v868_v56  ;;  %v611_v2 = vmul.f32 %v2024_v9, %v1490_v57  ;;  %v1493_v3 = vunpack.c.l.bf16 %v1575_v53 }
  0xa1   : > { %1121 = vst [vmem:[%s1766_s8 + $0x358] sm:$0xff] %v993_v59  ;;  %v997_v4 = vmax.f32 %v741_v51, %v869_v61  ;;  %v742_v6 = vadd.f32 %v2032_v16, %v610_v62  ;;  %v1494_v7 = vunpack.c.h.bf16 %v1575_v53  ;;  %v1497_v8 = vunpack.c.l.bf16 %v1576_v58 }
  0xa2   : > { %1122 = vst [vmem:[%s1766_s8 + $0x360] sm:$0xff] %v994_v60  ;;  %v743_v10 = vadd.f32 %v2032_v16, %v611_v2  ;;  %v612_v11 = vmul.f32 %v2024_v9, %v1493_v3  ;;  %v1498_v5 = vunpack.c.h.bf16 %v1576_v58  ;;  %v1501_v12 = vunpack.c.l.bf16 %v1577_v63 }
  0xa3   : > { %1123 = vst [vmem:[%s1766_s8 + $0x368] sm:$0xff] %v995_v1  ;;  %v870_v13 = vmul.f32 0.2, %v742_v6  ;;  %v613_v14 = vmul.f32 %v2024_v9, %v1494_v7  ;;  %v614_v15 = vmul.f32 %v2024_v9, %v1497_v8  ;;  %v1502_v17 = vunpack.c.h.bf16 %v1577_v63 }
  0xa4   : > { %1124 = vst [vmem:[%s1766_s8 + $0x370] sm:$0xff] %v996_v0  ;;  %v871_v18 = vmul.f32 0.2, %v743_v10  ;;  %v744_v19 = vadd.f32 %v2032_v16, %v612_v11  ;;  %v615_v20 = vmul.f32 %v2024_v9, %v1498_v5  ;;  %v616_v21 = vmul.f32 %v2024_v9, %v1501_v12 }
  0xa5   : > { %1125 = vst [vmem:[%s1766_s8 + $0x378] sm:$0xff] %v997_v4  ;;  %v998_v23 = vmax.f32 %v742_v6, %v870_v13  ;;  %v745_v24 = vadd.f32 %v2032_v16, %v613_v14  ;;  %v746_v25 = vadd.f32 %v2032_v16, %v614_v15  ;;  %v617_v26 = vmul.f32 %v2024_v9, %v1502_v17 }
  0xa6   : > { %v999_v27 = vmax.f32 %v743_v10, %v871_v18  ;;  %v872_v28 = vmul.f32 0.2, %v744_v19  ;;  %v747_v29 = vadd.f32 %v2032_v16, %v615_v20  ;;  %v748_v30 = vadd.f32 %v2032_v16, %v616_v21 }
  0xa7   : > { %1126 = vst [vmem:[%s1766_s8 + $0x380] sm:$0xff] %v998_v23  ;;  %v873_v31 = vmul.f32 0.2, %v745_v24  ;;  %v874_v32 = vmul.f32 0.2, %v746_v25  ;;  %v749_v33 = vadd.f32 %v2032_v16, %v617_v26  ;;  %v1505_v34 = vunpack.c.l.bf16 %v1578_v22 }
  0xa8   : > { %1127 = vst [vmem:[%s1766_s8 + $0x388] sm:$0xff] %v999_v27  ;;  %v1000_v36 = vmax.f32 %v744_v19, %v872_v28  ;;  %v875_v37 = vmul.f32 0.2, %v747_v29  ;;  %v876_v38 = vmul.f32 0.2, %v748_v30  ;;  %v1506_v39 = vunpack.c.h.bf16 %v1578_v22 }
  0xa9   : > { %v1001_v41 = vmax.f32 %v745_v24, %v873_v31  ;;  %v1002_v42 = vmax.f32 %v746_v25, %v874_v32  ;;  %v877_v43 = vmul.f32 0.2, %v749_v33  ;;  %v618_v44 = vmul.f32 %v2024_v9, %v1505_v34 }
  0xaa   : > { %1128 = vst [vmem:[%s1766_s8 + $0x390] sm:$0xff] %v1000_v36  ;;  %v1003_v46 = vmax.f32 %v747_v29, %v875_v37  ;;  %v1004_v47 = vmax.f32 %v748_v30, %v876_v38  ;;  %v619_v48 = vmul.f32 %v2024_v9, %v1506_v39  ;;  %v1509_v49 = vunpack.c.l.bf16 %v1579_v35 }
  0xab   : > { %1129 = vst [vmem:[%s1766_s8 + $0x398] sm:$0xff] %v1001_v41  ;;  %v1005_v50 = vmax.f32 %v749_v33, %v877_v43  ;;  %v750_v51 = vadd.f32 %v2032_v16, %v618_v44  ;;  %v1510_v52 = vunpack.c.h.bf16 %v1579_v35  ;;  %v1513_v53 = vunpack.c.l.bf16 %v1580_v40 }
  0xac   : > { %1130 = vst [vmem:[%s1766_s8 + $0x3a0] sm:$0xff] %v1002_v42  ;;  %v751_v54 = vadd.f32 %v2032_v16, %v619_v48  ;;  %v620_v55 = vmul.f32 %v2024_v9, %v1509_v49  ;;  %v1514_v56 = vunpack.c.h.bf16 %v1580_v40  ;;  %v1517_v57 = vunpack.c.l.bf16 %v1581_v45 }
  0xad   : > { %1131 = vst [vmem:[%s1766_s8 + $0x3a8] sm:$0xff] %v1003_v46  ;;  %v878_v58 = vmul.f32 0.2, %v750_v51  ;;  %v621_v59 = vmul.f32 %v2024_v9, %v1510_v52  ;;  %v622_v60 = vmul.f32 %v2024_v9, %v1513_v53  ;;  %v1518_v61 = vunpack.c.h.bf16 %v1581_v45 }
  0xae   : > { %1132 = vst [vmem:[%s1766_s8 + $0x3b0] sm:$0xff] %v1004_v47  ;;  %v879_v62 = vmul.f32 0.2, %v751_v54  ;;  %v752_v63 = vadd.f32 %v2032_v16, %v620_v55  ;;  %v623_v1 = vmul.f32 %v2024_v9, %v1514_v56  ;;  %v624_v0 = vmul.f32 %v2024_v9, %v1517_v57 }
  0xaf   : > { %1133 = vst [vmem:[%s1766_s8 + $0x3b8] sm:$0xff] %v1005_v50  ;;  %v1006_v2 = vmax.f32 %v750_v51, %v878_v58  ;;  %v753_v3 = vadd.f32 %v2032_v16, %v621_v59  ;;  %v754_v4 = vadd.f32 %v2032_v16, %v622_v60  ;;  %v625_v6 = vmul.f32 %v2024_v9, %v1518_v61 }
  0xb0   : > { %v1007_v7 = vmax.f32 %v751_v54, %v879_v62  ;;  %v880_v8 = vmul.f32 0.2, %v752_v63  ;;  %v755_v10 = vadd.f32 %v2032_v16, %v623_v1  ;;  %v756_v11 = vadd.f32 %v2032_v16, %v624_v0 }
  0xb1   : > { %1134 = vst [vmem:[%s1766_s8 + $0x3c0] sm:$0xff] %v1006_v2  ;;  %v881_v5 = vmul.f32 0.2, %v753_v3  ;;  %v882_v12 = vmul.f32 0.2, %v754_v4  ;;  %v757_v13 = vadd.f32 %v2032_v16, %v625_v6 }
  0xb2   : > { %1135 = vst [vmem:[%s1766_s8 + $0x3c8] sm:$0xff] %v1007_v7  ;;  %v1008_v14 = vmax.f32 %v752_v63, %v880_v8  ;;  %v883_v9 = vmul.f32 0.2, %v755_v10  ;;  %v884_v15 = vmul.f32 0.2, %v756_v11 }
  0xb3   : > { %v1009_v17 = vmax.f32 %v753_v3, %v881_v5  ;;  %v1010_v18 = vmax.f32 %v754_v4, %v882_v12  ;;  %v885_v19 = vmul.f32 0.2, %v757_v13 }
  0xb4   : > { %1136 = vst [vmem:[%s1766_s8 + $0x3d0] sm:$0xff] %v1008_v14  ;;  %v1011_v20 = vmax.f32 %v755_v10, %v883_v9  ;;  %v1012_v21 = vmax.f32 %v756_v11, %v884_v15 }
  0xb5   : > { %1137 = vst [vmem:[%s1766_s8 + $0x3d8] sm:$0xff] %v1009_v17  ;;  %v1013_v22 = vmax.f32 %v757_v13, %v885_v19 }
  0xb6   : > { %1138 = vst [vmem:[%s1766_s8 + $0x3e0] sm:$0xff] %v1010_v18 }
  0xb7   : > { %1139 = vst [vmem:[%s1766_s8 + $0x3e8] sm:$0xff] %v1011_v20 }
  0xb8   : > { %1140 = vst [vmem:[%s1766_s8 + $0x3f0] sm:$0xff] %v1012_v21 }
  0xb9   : > { %1141 = vst [vmem:[%s1766_s8 + $0x3f8] sm:$0xff] %v1013_v22 }
  0xba PF: > { %s13_s16 = sadd.s32 1, %s1664_s16   ;;  %s2219_s12 = smov %s1656_s14 }
  0xbb   : > { %p10_p7 = scmp.ge.s32.totalorder %s13_s16, 10   ;;  %s2220_s13 = smov %s1660_s15 }
  0xbc   : > { %s2221_s14 = smov %s2224_s17  ;;  %s2222_s15 = smov %s2228_s18 }
  0xbd   :  { %12 = sbr.rel (!%p10_p7) target bundleno = 3 (0x3), region = 68 }

// kernel: block_up_forward.2
= control target key start
LH: loop header
LB: loop body
LE: loop exit
PB: predicated region body
PF: predicated region fallthrough
CT: control target
= control target key end

     0   :  { %s4840_s12 = smov 0   ;;  %s4842_s13 = smov 0   ;;  %s5600_s0 = inlined_call_operand.vmem [shape: bf16[2,18,18,18,128], index: 0, kind: input, shape index: {}]   ;;  %s5601_s1 = inlined_call_operand.vmem [shape: bf16[27,128,128], index: 1, kind: input, shape index: {}]   ;;  %s5602_s2 = inlined_call_operand.vmem [shape: bf16[2,16,256,128], index: 2, kind: output, shape index: {0}]   ;;  %s5603_s3 = inlined_call_operand.vmem [shape: f32[2,16,2,128], index: 3, kind: output, shape index: {1}]  }
   0x1   :  { %s4844_s14 = smov 0   ;;  %s4846_s15 = smov 0  }
   0x2   :  { %s4848_s16 = smov 0   ;;  %s4850_s17 = smov 0  }
   0x3   :  { %s4852_s18 = smov 0  }
   0x4 LB: > { %s26_s19 = sadd.s32 1, %s4805_s15  ;;  %s29_s20 = sadd.s32 1, %s4809_s16  ;;  %s4817_s18 = sphi %s4852_s18, %s14_s18   ;;  %s4813_s17 = sphi %s4850_s17, %s5617_s17   ;;  %s4809_s16 = sphi %s4848_s16, %s5616_s16   ;;  %s4805_s15 = sphi %s4846_s15, %s5615_s15   ;;  %s4801_s14 = sphi %s4844_s14, %s5614_s14   ;;  %s4797_s13 = sphi %s4842_s13, %s5613_s13   ;;  %s4793_s12 = sphi %s4840_s12, %s5612_s12  }
   0x5   : > { %p27_p0 = scmp.ge.s32.totalorder %s26_s19, 3  ;;  %p3963_p1 = scmp.ge.s32.totalorder %s4817_s18, 1 }
   0x6   : > { %p173_p2 = scmp.lt.s32.totalorder %s4817_s18, 97  ;;  %s33_s21 = sadd.s32 1, %s4813_s17 }
   0x7   : > { %s5619_s19 = smov (%p27_p0, %s26_s19), 0  ;;  %s5621_s20 = smov (!%p27_p0, %s29_s20), %s4809_s16 }
   0x8   : > { %p174_p3 = pnand %p3963_p1, %p173_p2  ;;  %p31_p4 = scmp.ge.s32.totalorder %s5621_s20, 16 }
   0x9   : > { %s214_s22 = sadd.s32 (!%p174_p3), %s4793_s12, %s4797_s13  ;;  %p215_p6 = scmp.lt.s32.totalorder (!%p174_p3), %s4801_s14, 1 }
   0xa   : > { %s5623_s20 = smov (%p31_p4, %s5621_s20), 0  ;;  %s5625_s21 = smov (!%p31_p4, %s33_s21), %s4813_s17 }
   0xb   : > { %5604 = sst [smem:[#allocation3_spill]] %s5623_s20  ;;  %p35_p5 = scmp.ge.s32.totalorder %s5625_s21, 2 }
   0xc   : > { %177 = sbr.rel (%p174_p3) target bundleno = 884 (0x374), region = 28  ;;  %p217_p7 = scmp.lt.s32.totalorder (!%p174_p3), %s214_s22, 17 }
   0xd   : > { %s5627_s21 = smov (%p35_p5, %s5625_s21), 0  ;;  %p227_p8 = scmp.lt.s32.totalorder (!%p174_p3), %s4797_s13, 15 }
   0xe   : > { %5605 = sst [smem:[#allocation4_spill]] %s5627_s21  ;;  %p3970_p9 = scmp.ne.s32.totalorder (!%p174_p3), %s4793_s12, 0 }
  0x11   : > { %s5629_s14 = smov (!%p215_p6, %s4801_s14), 1  ;;  %s5631_s22 = smov (!%p217_p7, %s214_s22), 17 }
  0x12   : > { %s4701_s23 = smul.u32 972, %s5629_s14  ;;  %s3966_s25 = sshll.u32 %s5629_s14, 9 }
  0x13   : > { %s4700_s24 = smul.u32 54, %s5631_s22  ;;  %s5633_s13 = smov (!%p227_p8, %s4797_s13), 15 }
  0x14   : > { %s3968_s27 = sshll.u32 %s5629_s14, 4  ;;  %s3965_s29 = sshll.u32 %s5633_s13, 5 }
  0x15   : > { %s221_s26 = sadd.s32 %s4701_s23, %s4700_s24  ;;  %s231_s6 = sadd.s32 %s3966_s25, %s3965_s29 }
  0x16   : > { %s3964_s28 = sshll.u32 %s221_s26, 2  ;;  %s3967_s7 = sshll.u32 %s231_s6, 2 }
  0x17   : > { %s4893_s5 = scalar_lea.vmem %s5600_s0, %s3964_s28  ;;  %s239_s8 = sadd.s32 %s3968_s27, %s5633_s13 }
  0x18   : > { %s4898_s11 = scalar_lea.vmem %s5602_s2, %s3967_s7  ;;  %s3969_s22 = sshll.u32 %s239_s8, 1 }
  0x19   : > { %s4903_s14 = scalar_lea.vmem %s5603_s3, %s3969_s22  ;;  %245 = sbr.rel (%p3970_p9) target bundleno = 63 (0x3f), region = 32 }
  0x1e   : > { %v4819_v0 = vmov 0.0  }
  0x1f   : > { %246 = vst [vmem:[#allocation2 + $0xb0] sm:$0xff] %v4819_v0 }
  0x20   : > { %247 = vst [vmem:[#allocation2] sm:$0xff] %v4819_v0 }
  0x21   : > { %248 = vst [vmem:[#allocation2 + $0xd8] sm:$0xff] %v4819_v0 }
  0x22   : > { %249 = vst [vmem:[#allocation2 + $0x18] sm:$0xff] %v4819_v0 }
  0x23   : > { %250 = vst [vmem:[#allocation2 + $0x50] sm:$0xff] %v4819_v0 }
  0x24   : > { %251 = vst [vmem:[#allocation2 + $0x68] sm:$0xff] %v4819_v0 }
  0x25   : > { %252 = vst [vmem:[#allocation2 + $0x30] sm:$0xff] %v4819_v0 }
  0x26   : > { %253 = vst [vmem:[#allocation2 + $0x48] sm:$0xff] %v4819_v0 }
  0x27   : > { %254 = vst [vmem:[#allocation2 + $0x80] sm:$0xff] %v4819_v0 }
  0x28   : > { %255 = vst [vmem:[#allocation2 + $0x88] sm:$0xff] %v4819_v0 }
  0x29   : > { %256 = vst [vmem:[#allocation2 + $0xe8] sm:$0xff] %v4819_v0 }
  0x2a   : > { %257 = vst [vmem:[#allocation2 + $0xb8] sm:$0xff] %v4819_v0 }
  0x2b   : > { %258 = vst [vmem:[#allocation2 + $0x60] sm:$0xff] %v4819_v0 }
  0x2c   : > { %259 = vst [vmem:[#allocation2 + $0xf0] sm:$0xff] %v4819_v0 }
  0x2d   : > { %260 = vst [vmem:[#allocation2 + $0x8] sm:$0xff] %v4819_v0 }
  0x2e   : > { %261 = vst [vmem:[#allocation2 + $0x78] sm:$0xff] %v4819_v0 }
  0x2f   : > { %262 = vst [vmem:[#allocation2 + $0x38] sm:$0xff] %v4819_v0 }
  0x30   : > { %263 = vst [vmem:[#allocation2 + $0x58] sm:$0xff] %v4819_v0 }
  0x31   : > { %264 = vst [vmem:[#allocation2 + $0x40] sm:$0xff] %v4819_v0 }
  0x32   : > { %265 = vst [vmem:[#allocation2 + $0xc8] sm:$0xff] %v4819_v0 }
  0x33   : > { %266 = vst [vmem:[#allocation2 + $0xe0] sm:$0xff] %v4819_v0 }
  0x34   : > { %267 = vst [vmem:[#allocation2 + $0x90] sm:$0xff] %v4819_v0 }
  0x35   : > { %268 = vst [vmem:[#allocation2 + $0x70] sm:$0xff] %v4819_v0 }
  0x36   : > { %269 = vst [vmem:[#allocation2 + $0xc0] sm:$0xff] %v4819_v0 }
  0x37   : > { %270 = vst [vmem:[#allocation2 + $0xa8] sm:$0xff] %v4819_v0 }
  0x38   : > { %271 = vst [vmem:[#allocation2 + $0xd0] sm:$0xff] %v4819_v0 }
  0x39   : > { %272 = vst [vmem:[#allocation2 + $0x10] sm:$0xff] %v4819_v0 }
  0x3a   : > { %273 = vst [vmem:[#allocation2 + $0x28] sm:$0xff] %v4819_v0 }
  0x3b   : > { %274 = vst [vmem:[#allocation2 + $0xa0] sm:$0xff] %v4819_v0 }
  0x3c   : > { %275 = vst [vmem:[#allocation2 + $0xf8] sm:$0xff] %v4819_v0 }
  0x3d   : > { %276 = vst [vmem:[#allocation2 + $0x20] sm:$0xff] %v4819_v0 }
  0x3e   : > { %277 = vst [vmem:[#allocation2 + $0x98] sm:$0xff] %v4819_v0 }
  0x3f PF: > { %s4508_s13 = smul.u32 576, %s4793_s12  ;;  %v4924_v12 = vld [vmem:[%s4893_s5 + $0x30] sm:$0xff]  ;;  %v4927_v13 = vld [vmem:[%s4893_s5 + $0x60] sm:$0xff]  ;;  %v4973_v46 = vld [vmem:[%s4893_s5 + $0x48] sm:$0xff]  ;;  %vm1235_vm0 = vsmask.f32 3328 }
  0x40   : > { %v4502_v14 = vld [vmem:[%s4893_s5 + $0x90] sm:$0xff]  ;;  %v4490_v19 = vld [vmem:[%s4893_s5] sm:$0xff]  ;;  %v4976_v47 = vld [vmem:[%s4893_s5 + $0x78] sm:$0xff]  ;;  %vm1236_vm1 = vsmask.f32 7440  ;;  %vm2603_vm3 = vcmask 1042432  }
  0x41   : > { %s4910_s23 = scalar_lea.vmem %s5601_s1, %s4508_s13  ;;  %v4949_v31 = vld [vmem:[%s4893_s5 + $0x3c] sm:$0xff]  ;;  %v4952_v32 = vld [vmem:[%s4893_s5 + $0x6c] sm:$0xff]  ;;  %v1182_v57 = vld [vmem:[%s4893_s5 + $0x4] sm:$0xf]  ;;  %vm2604_vm4 = vcmask 1046532   ;;  %p4487_p10 = scmp.ne.s32.totalorder %s4793_s12, 2 }
  0x42   : > { %v4516_v1 = vld [vmem:[%s4910_s23 + $0x38] sm:$0xff]  ;;  %v4515_v2 = vld [vmem:[%s4910_s23 + $0x30] sm:$0xff]  ;;  %v4514_v3 = vld [vmem:[%s4910_s23 + $0x28] sm:$0xff]  ;;  %v1248_v60 = vshll.u32 %v1182_v57, 16  ;;  %v1252_v61 = vshrl.u32 %v1182_v57, 16 }
  0x43   : > { %4676 = vmatpush.bf16.msra.mxu1 %v4516_v1  ;;  %4677 = vmatpush.bf16.msra.mxu2 %v4516_v1  ;;  %v4513_v4 = vld [vmem:[%s4910_s23 + $0x20] sm:$0xff]  ;;  %v4512_v5 = vld [vmem:[%s4910_s23 + $0x18] sm:$0xff]  ;;  %v4511_v6 = vld [vmem:[%s4910_s23 + $0x10] sm:$0xff] }
  0x44   : > { %4678 = vmatpush.bf16.msra.mxu3 %v4516_v1  ;;  %510 = vmatpush.bf16.msra.mxu0 %v4516_v1  ;;  %v4510_v7 = vld [vmem:[%s4910_s23 + $0x8] sm:$0xff]  ;;  %v4509_v8 = vld [vmem:[%s4910_s23] sm:$0xff]  ;;  %v4524_v9 = vld [vmem:[%s4910_s23 + $0xf8] sm:$0xff] }
  0x45   : > { %v4532_v10 = vld [vmem:[%s4910_s23 + $0x1b8] sm:$0xff]  ;;  %v4523_v15 = vld [vmem:[%s4910_s23 + $0xf0] sm:$0xff]  ;;  %v4522_v20 = vld [vmem:[%s4910_s23 + $0xe8] sm:$0xff] }
  0x46   : > { %v4540_v11 = vld [vmem:[%s4910_s23 + $0x78] sm:$0xff]  ;;  %v4531_v17 = vld [vmem:[%s4910_s23 + $0x1b0] sm:$0xff]  ;;  %v4530_v22 = vld [vmem:[%s4910_s23 + $0x1a8] sm:$0xff] }
  0x47   : > { %4679 = vmatpush.bf16.msra.mxu1 %v4515_v2  ;;  %4680 = vmatpush.bf16.msra.mxu2 %v4515_v2  ;;  %v4548_v16 = vld [vmem:[%s4910_s23 + $0x138] sm:$0xff]  ;;  %v4539_v18 = vld [vmem:[%s4910_s23 + $0x70] sm:$0xff]  ;;  %v4538_v23 = vld [vmem:[%s4910_s23 + $0x68] sm:$0xff] }
  0x48   : > { %4681 = vmatpush.bf16.msra.mxu3 %v4515_v2  ;;  %511 = vmatpush.bf16.msra.mxu0 %v4515_v2  ;;  %v4547_v21 = vld [vmem:[%s4910_s23 + $0x130] sm:$0xff]  ;;  %v4521_v24 = vld [vmem:[%s4910_s23 + $0xe0] sm:$0xff]  ;;  %v4546_v25 = vld [vmem:[%s4910_s23 + $0x128] sm:$0xff] }
  0x49   : > { %v4529_v26 = vld [vmem:[%s4910_s23 + $0x1a0] sm:$0xff]  ;;  %v4520_v28 = vld [vmem:[%s4910_s23 + $0xd8] sm:$0xff]  ;;  %v4519_v34 = vld [vmem:[%s4910_s23 + $0xd0] sm:$0xff] }
  0x4a   : > { %v4537_v27 = vld [vmem:[%s4910_s23 + $0x60] sm:$0xff]  ;;  %v4528_v29 = vld [vmem:[%s4910_s23 + $0x198] sm:$0xff]  ;;  %v4527_v35 = vld [vmem:[%s4910_s23 + $0x190] sm:$0xff] }
  0x4b   : > { %4682 = vmatpush.bf16.msra.mxu1 %v4514_v3  ;;  %4683 = vmatpush.bf16.msra.mxu2 %v4514_v3  ;;  %v4536_v30 = vld [vmem:[%s4910_s23 + $0x58] sm:$0xff]  ;;  %v4545_v36 = vld [vmem:[%s4910_s23 + $0x120] sm:$0xff]  ;;  %v4961_v37 = vld [vmem:[%s4893_s5 + $0xc] sm:$0xff] }
  0x4c   : > { %4684 = vmatpush.bf16.msra.mxu3 %v4514_v3  ;;  %512 = vmatpush.bf16.msra.mxu0 %v4514_v3  ;;  %v4503_v33 = vld [vmem:[%s4893_s5 + $0x9c] sm:$0xff]  ;;  %v4535_v38 = vld [vmem:[%s4910_s23 + $0x50] sm:$0xff]  ;;  %v4518_v39 = vld [vmem:[%s4910_s23 + $0xc8] sm:$0xff] }
  0x4d   : > { %v4544_v40 = vld [vmem:[%s4910_s23 + $0x118] sm:$0xff]  ;;  %v4526_v41 = vld [vmem:[%s4910_s23 + $0x188] sm:$0xff]  ;;  %v4517_v43 = vld [vmem:[%s4910_s23 + $0xc0] sm:$0xff] }
  0x4e   : > { %v4534_v42 = vld [vmem:[%s4910_s23 + $0x48] sm:$0xff]  ;;  %v4525_v44 = vld [vmem:[%s4910_s23 + $0x180] sm:$0xff]  ;;  %v4543_v45 = vld [vmem:[%s4910_s23 + $0x110] sm:$0xff] }
  0x4f   : > { %4685 = vmatpush.bf16.msra.mxu1 %v4513_v4  ;;  %4686 = vmatpush.bf16.msra.mxu2 %v4513_v4  ;;  %v4542_v48 = vld [vmem:[%s4910_s23 + $0x108] sm:$0xff]  ;;  %v4533_v50 = vld [vmem:[%s4910_s23 + $0x40] sm:$0xff]  ;;  %v4985_v52 = vld [vmem:[%s4893_s5 + $0x18] sm:$0xff] }
  0x50   : > { %4687 = vmatpush.bf16.msra.mxu3 %v4513_v4  ;;  %513 = vmatpush.bf16.msra.mxu0 %v4513_v4  ;;  %v4504_v49 = vld [vmem:[%s4893_s5 + $0xa8] sm:$0xff]  ;;  %v4541_v51 = vld [vmem:[%s4910_s23 + $0x100] sm:$0xff]  ;;  %v4556_v53 = vld [vmem:[%s4910_s23 + $0x1f8] sm:$0xff] }
  0x51   : > { %v4564_v54 = vld [vmem:[%s4910_s23 + $0xb8] sm:$0xff]  ;;  %v1181_v55 = vld [vmem:[%s4893_s5] sm:$0xf]  ;;  %v1184_v62 = vld [vmem:[%s4893_s5 + $0xc] sm:$0xf] }
  0x52   : > { %v4572_v56 = vld [vmem:[%s4910_s23 + $0x178] sm:$0xff]  ;;  %v1239_v58 = vshrl.u32 %v1181_v55, 16  ;;  %v1242_v59 = vshll.u32 %v1181_v55, 16  ;;  %v1185_v63 = vld [vmem:[%s4893_s5 + $0x10] sm:$0xf]  ;;  %v1263_v0 = vshrl.u32 %v1184_v62, 16  ;;  %vm5010_vm2 = vmor %vm1235_vm0, %vm1236_vm1 }
  0x53   : > { %4688 = vmatpush.bf16.msra.mxu1 %v4512_v5  ;;  %4689 = vmatpush.bf16.msra.mxu2 %v4512_v5  ;;  %v1266_v1 = vshll.u32 %v1184_v62, 16  ;;  %v1272_v2 = vshll.u32 %v1185_v63, 16  ;;  %v1276_v3 = vshrl.u32 %v1185_v63, 16  ;;  %v4563_v62 = vld [vmem:[%s4910_s23 + $0xb0] sm:$0xff]  ;;  %vm5272_vm5 = vmor %vm2603_vm3, %vm2604_vm4 }
  0x54   : > { %4690 = vmatpush.bf16.msra.mxu3 %v4512_v5  ;;  %514 = vmatpush.bf16.msra.mxu0 %v4512_v5  ;;  %v1241_v4 = vrot.slane %v1239_v58, 4  ;;  %v1244_v5 = vrot.slane %v1242_v59, 5  ;;  %v1189_v59 = vld [vmem:[%s4893_s5 + $0x20] sm:$0x1] }
  0x57   : > { %4691 = vmatpush.bf16.msra.mxu1 %v4511_v6  ;;  %4692 = vmatpush.bf16.msra.mxu2 %v4511_v6 }
  0x58   : > { %4693 = vmatpush.bf16.msra.mxu3 %v4511_v6  ;;  %515 = vmatpush.bf16.msra.mxu0 %v4511_v6  ;;  %v1250_v6 = vrot.slane %v1248_v60, 5 }
  0x5b   : > { %4694 = vmatpush.bf16.msra.mxu1 %v4510_v7  ;;  %4695 = vmatpush.bf16.msra.mxu2 %v4510_v7 }
  0x5c   : > { %4696 = vmatpush.bf16.msra.mxu3 %v4510_v7  ;;  %516 = vmatpush.bf16.msra.mxu0 %v4510_v7  ;;  %v1254_v7 = vrot.slane %v1252_v61, 4  ;;  %v4555_v61 = vld [vmem:[%s4910_s23 + $0x1f0] sm:$0xff] }
  0x5f   : > { %4697 = vmatpush.bf16.msra.mxu1 %v4509_v8  ;;  %4698 = vmatpush.bf16.msra.mxu2 %v4509_v8 }
  0x60   : > { %4699 = vmatpush.bf16.msra.mxu3 %v4509_v8  ;;  %517 = vmatpush.bf16.msra.mxu0 %v4509_v8  ;;  %v1183_v8 = vld [vmem:[%s4893_s5 + $0x8] sm:$0x1] }
  0x62   : > { %538 = vmatmul.bf16.vlgmr.msra.gmra.mxu1 %v4924_v12  ;;  %558 = vmatmul.bf16.vlgmr.msra.gmra.mxu2 %v4927_v13 }
  0x63   : > { %769 = vmatpush.bf16.msrb.mxu1 %v4524_v9  ;;  %1028 = vmatpush.bf16.msrb.mxu2 %v4532_v10  ;;  %v4997_v9 = vld [vmem:[%s4893_s5 + $0x54] sm:$0xff]  ;;  %v5000_v10 = vld [vmem:[%s4893_s5 + $0x84] sm:$0xff] }
  0x64   : > { %1786 = vmatpush.bf16.msrb.mxu3 %v4540_v11  ;;  %2067 = vmatpush.bf16.msrb.mxu0 %v4548_v16  ;;  %v1265_v11 = vrot.slane %v1263_v0, 4  ;;  %v1278_v16 = vrot.slane %v1276_v3, 4  ;;  %v1190_v3 = vld [vmem:[%s4893_s5 + $0x24] sm:$0xf] }
  0x65   : > { %578 = vmatmul.bf16.vlgmr.msra.gmra.mxu3 %v4502_v14  ;;  %518 = vmatmul.bf16.vlgmr.msra.gmra.mxu0 %v4490_v19  ;;  %v1268_v14 = vrot.slane %v1266_v1, 5  ;;  %v1255_v19 = vor.u32 %v1254_v7, %v1250_v6  ;;  %v1306_v1 = vshll.u32 %v1189_v59, 16  ;;  %v1311_v7 = vshrl.u32 %v1190_v3, 16 }
  0x67   : > { %770 = vmatpush.bf16.msrb.mxu1 %v4523_v15  ;;  %1029 = vmatpush.bf16.msrb.mxu2 %v4531_v17  ;;  %v1274_v15 = vrot.slane %v1272_v2, 5  ;;  %v4505_v17 = vld [vmem:[%s4893_s5 + $0xb4] sm:$0xff] }
  0x68   : > { %1787 = vmatpush.bf16.msrb.mxu3 %v4539_v18  ;;  %2068 = vmatpush.bf16.msrb.mxu0 %v4547_v21  ;;  %v1245_v18 = vor.u32 %v1244_v5, %v1241_v4  ;;  %v1186_v21 = vld [vmem:[%s4893_s5 + $0x14] sm:$0x1]  ;;  %v1191_v4 = vld [vmem:[%s4893_s5 + $0x28] sm:$0xf] }
  0x69   : > { %v4571_v2 = vld [vmem:[%s4910_s23 + $0x170] sm:$0xff] }
  0x6b   : > { %771 = vmatpush.bf16.msrb.mxu1 %v4522_v20  ;;  %1030 = vmatpush.bf16.msrb.mxu2 %v4530_v22  ;;  %v1258_v20 = vshll.u32 %v1183_v8, 16  ;;  %v5007_v22 = vld [vmem:[%s4893_s5 + $0x24] sm:$0xff]  ;;  %v1314_v8 = vshll.u32 %v1190_v3, 16 }
  0x6c   : > { %1788 = vmatpush.bf16.msrb.mxu3 %v4538_v23  ;;  %2069 = vmatpush.bf16.msrb.mxu0 %v4546_v25  ;;  %v1269_v23 = vor.u32 %v1268_v14, %v1265_v11  ;;  %v1282_v25 = vshll.u32 %v1186_v21, 16  ;;  %v1320_v11 = vshll.u32 %v1191_v4, 16  ;;  %v1324_v14 = vshrl.u32 %v1191_v4, 16 }
  0x6f   : > { %772 = vmatpush.bf16.msrb.mxu1 %v4521_v24  ;;  %1031 = vmatpush.bf16.msrb.mxu2 %v4529_v26  ;;  %v1279_v24 = vor.u32 %v1278_v16, %v1274_v15  ;;  %v1246_v26 = vrot.slane %v1245_v18, 4  ;;  %v1316_v18 = vrot.slane %v1314_v8, 5 }
  0x70   : > { %1789 = vmatpush.bf16.msrb.mxu3 %v4537_v27  ;;  %2070 = vmatpush.bf16.msrb.mxu0 %v4545_v36  ;;  %v1256_v27 = vrot.slane %v1255_v19, 4  ;;  %v1322_v19 = vrot.slane %v1320_v11, 5 }
  0x71   : > { %v1251_v36 = vsel %vm5010_vm2, %v1246_v26, %v1250_v6 }
  0x72   : > { %543 = vmatmul.bf16.gmra.mxu1 %v4949_v31  ;;  %563 = vmatmul.bf16.gmra.mxu2 %v4952_v32 }
  0x73   : > { %773 = vmatpush.bf16.msrb.mxu1 %v4520_v28  ;;  %1032 = vmatpush.bf16.msrb.mxu2 %v4528_v29  ;;  %v1260_v28 = vrot.slane %v1258_v20, 5  ;;  %v4580_v29 = vld [vmem:[%s4910_s23 + $0x238] sm:$0xff]  ;;  %v1326_v20 = vrot.slane %v1324_v14, 4 }
  0x74   : > { %1790 = vmatpush.bf16.msrb.mxu3 %v4536_v30  ;;  %2071 = vmatpush.bf16.msrb.mxu0 %v4544_v40  ;;  %v1188_v40 = vld [vmem:[%s4893_s5 + $0x1c] sm:$0xf] }
  0x75   : > { %583 = vmatmul.bf16.gmra.mxu3 %v4503_v33  ;;  %523 = vmatmul.bf16.gmra.mxu0 %v4961_v37  ;;  %v1270_v33 = vrot.slane %v1269_v23, 4  ;;  %v1327_v26 = vor.u32 %v1326_v20, %v1322_v19 }
  0x77   : > { %774 = vmatpush.bf16.msrb.mxu1 %v4519_v34  ;;  %1033 = vmatpush.bf16.msrb.mxu2 %v4527_v35  ;;  %v1280_v34 = vrot.slane %v1279_v24, 4  ;;  %v1284_v35 = vrot.slane %v1282_v25, 5  ;;  %v1192_v24 = vld [vmem:[%s4893_s5 + $0x2c] sm:$0x1] }
  0x78   : > { %1791 = vmatpush.bf16.msrb.mxu3 %v4535_v38  ;;  %2072 = vmatpush.bf16.msrb.mxu0 %v4543_v45  ;;  %v1261_v38 = vsel %vm5010_vm2, %v1256_v27, %v1260_v28  ;;  %v1330_v27 = vshll.u32 %v1192_v24, 16 }
  0x7b   : > { %775 = vmatpush.bf16.msrb.mxu1 %v4518_v39  ;;  %1034 = vmatpush.bf16.msrb.mxu2 %v4526_v41  ;;  %v1187_v39 = vld [vmem:[%s4893_s5 + $0x18] sm:$0xf]  ;;  %v1674_v41 = vunpack.c.l.b16 %v1251_v36  ;;  %v1194_v36 = vld [vmem:[%s4893_s5 + $0x34] sm:$0xf] }
  0x7c   : > { %1792 = vmatpush.bf16.msrb.mxu3 %v4534_v42  ;;  %2073 = vmatpush.bf16.msrb.mxu0 %v4542_v48  ;;  %v1675_v42 = vunpack.c.l.b16 %v1261_v38  ;;  %v1287_v45 = vshrl.u32 %v1187_v39, 16  ;;  %v1290_v48 = vshll.u32 %v1187_v39, 16 }
  0x7e   : > { %v1289_v55 = vrot.slane %v1287_v45, 4 }
  0x7f   : > { %776 = vmatpush.bf16.msrb.mxu1 %v4517_v43  ;;  %1035 = vmatpush.bf16.msrb.mxu2 %v4525_v44  ;;  %v1275_v43 = vsel %vm5010_vm2, %v1270_v33, %v1274_v15  ;;  %v1285_v44 = vsel %vm5010_vm2, %v1280_v34, %v1284_v35  ;;  %v1328_v33 = vrot.slane %v1327_v26, 4  ;;  %v1332_v34 = vrot.slane %v1330_v27, 5  ;;  %v1193_v35 = vld [vmem:[%s4893_s5 + $0x30] sm:$0xf]  ;;  %v1200_v26 = vld [vmem:[%s4893_s5 + $0x4c] sm:$0xf] }
  0x80   : > { %1793 = vmatpush.bf16.msrb.mxu3 %v4533_v50  ;;  %2074 = vmatpush.bf16.msrb.mxu0 %v4541_v51  ;;  %v1300_v50 = vshrl.u32 %v1188_v40, 16  ;;  %v1706_v51 = vpack.c.b16 %v1675_v42, %v1674_v41  ;;  %v1335_v39 = vshrl.u32 %v1193_v35, 16  ;;  %v1344_v41 = vshll.u32 %v1194_v36, 16 }
  0x81   : > { %v1348_v42 = vshrl.u32 %v1194_v36, 16  ;;  %v323_v36 = vld [vmem:[#allocation2 + $0x80] sm:$0xff] }
  0x82   : > { %548 = vmatmul.bf16.gmra.mxu1 %v4973_v46  ;;  %568 = vmatmul.bf16.gmra.mxu2 %v4976_v47  ;;  %v1302_v58 = vrot.slane %v1300_v50, 4  ;;  %v1337_v45 = vrot.slane %v1335_v39, 4 }
  0x83   : > { %2348 = vmatpush.bf16.msra.mxu1 %v4556_v53  ;;  %2882 = vmatpush.bf16.msra.mxu2 %v4564_v54  ;;  %v1676_v53 = vunpack.c.l.b16 %v1275_v43  ;;  %v1677_v54 = vunpack.c.l.b16 %v1285_v44  ;;  %v1350_v50 = vrot.slane %v1348_v42, 4 }
  0x84   : > { %3149 = vmatpush.bf16.msra.mxu3 %v4572_v56  ;;  %3416 = vmatpush.bf16.msra.mxu0 %v4580_v29  ;;  %v1292_v56 = vrot.slane %v1290_v48, 5 }
  0x85   : > { %588 = vmatmul.bf16.gmra.mxu3 %v4504_v49  ;;  %528 = vmatmul.bf16.gmra.mxu0 %v4985_v52  ;;  %v1296_v49 = vshll.u32 %v1188_v40, 16  ;;  %v1707_v60 = vpack.c.b16 %v1677_v54, %v1676_v53  ;;  %v1338_v40 = vshll.u32 %v1193_v35, 16  ;;  %v4579_v54 = vld [vmem:[%s4910_s23 + $0x230] sm:$0xff]  ;;  %v1396_v35 = vshrl.u32 %v1200_v26, 16 }
  0x86   : > { %v1293_v63 = vor.u32 %v1292_v56, %v1289_v55  ;;  %v4554_v55 = vld [vmem:[%s4910_s23 + $0x1e8] sm:$0xff] }
  0x87   : > { %v1298_v57 = vrot.slane %v1296_v49, 5  ;;  %2349 = vmatpush.bf16.msra.mxu1 %v4555_v61  ;;  %2883 = vmatpush.bf16.msra.mxu2 %v4563_v62  ;;  %v1340_v48 = vrot.slane %v1338_v40, 5  ;;  %v1346_v49 = vrot.slane %v1344_v41, 5  ;;  %v4562_v61 = vld [vmem:[%s4910_s23 + $0xa8] sm:$0xff]  ;;  %v1196_v62 = vld [vmem:[%s4893_s5 + $0x3c] sm:$0xf] }
  0x88   : > { %3150 = vmatpush.bf16.msra.mxu3 %v4571_v2  ;;  %v1294_v5 = vrot.slane %v1293_v63, 4  ;;  %3417 = vmatpush.bf16.msra.mxu0 %v4579_v54  ;;  %v1197_v63 = vld [vmem:[%s4893_s5 + $0x40] sm:$0xf]  ;;  %v1359_v2 = vshrl.u32 %v1196_v62, 16  ;;  %v1362_v3 = vshll.u32 %v1196_v62, 16  ;;  %v331_v54 = vld [vmem:[#allocation2 + $0x38] sm:$0xff] }
  0x89   : > { %v1303_v0 = vor.u32 %v1302_v58, %v1298_v57  ;;  %v1341_v56 = vor.u32 %v1340_v48, %v1337_v45  ;;  %v1368_v4 = vshll.u32 %v1197_v63, 16  ;;  %v1201_v45 = vld [vmem:[%s4893_s5 + $0x50] sm:$0x1] }
  0x8a   : > { %v1299_v15 = vsel %vm5010_vm2, %v1294_v5, %v1298_v57  ;;  %v1351_v57 = vor.u32 %v1350_v50, %v1346_v49  ;;  %v1372_v5 = vshrl.u32 %v1197_v63, 16  ;;  %v1364_v8 = vrot.slane %v1362_v3, 5  ;;  %v4553_v50 = vld [vmem:[%s4910_s23 + $0x1e0] sm:$0xff] }
  0x8b   : > { %v1304_v6 = vrot.slane %v1303_v0, 4  ;;  %v1678_v21 = vunpack.c.l.b16 %v1299_v15  ;;  %2350 = vmatpush.bf16.msra.mxu1 %v4554_v55  ;;  %v1342_v59 = vrot.slane %v1341_v56, 4  ;;  %2884 = vmatpush.bf16.msra.mxu2 %v4562_v61  ;;  %v1370_v11 = vrot.slane %v1368_v4, 5  ;;  %v1198_v15 = vld [vmem:[%s4893_s5 + $0x44] sm:$0x1] }
  0x8c   : > { %v1374_v14 = vrot.slane %v1372_v5, 4  ;;  %v1378_v20 = vshll.u32 %v1198_v15, 16  ;;  %v4561_v4 = vld [vmem:[%s4910_s23 + $0xa0] sm:$0xff]  ;;  %v1203_v5 = vld [vmem:[%s4893_s5 + $0x58] sm:$0xf] }
  0x8d   : > { %v1347_v0 = vsel %vm5010_vm2, %v1342_v59, %v1346_v49  ;;  %v4578_v49 = vld [vmem:[%s4910_s23 + $0x228] sm:$0xff]  ;;  %v1416_v15 = vshll.u32 %v1203_v5, 16 }
  0x8e   : > { %v1380_v24 = vrot.slane %v1378_v20, 5  ;;  %3418 = vmatpush.bf16.msra.mxu0 %v4578_v49  ;;  %v324_v59 = vld [vmem:[#allocation2 + $0x88] sm:$0xff]  ;;  %v326_v49 = vld [vmem:[#allocation2 + $0xb8] sm:$0xff] }
  0x8f   : > { %2351 = vmatpush.bf16.msra.mxu1 %v4553_v50  ;;  %2885 = vmatpush.bf16.msra.mxu2 %v4561_v4  ;;  %v325_v20 = vld [vmem:[#allocation2 + $0xe8] sm:$0xff] }
  0x90   : > { %v342_v4 = vld [vmem:[#allocation2 + $0x28] sm:$0xff] }
  0x92   : > { %553 = vmatmul.bf16.gmra.mxu1 %v4997_v9  ;;  %573 = vmatmul.bf16.gmra.mxu2 %v5000_v10 }
  0x95   : > { %593 = vmatmul.bf16.gmra.mxu3 %v4505_v17  ;;  %533 = vmatmul.bf16.gmra.mxu0 %v5007_v22  ;;  %v1313_v17 = vrot.slane %v1311_v7, 4  ;;  %v1361_v7 = vrot.slane %v1359_v2, 4  ;;  %v1202_v2 = vld [vmem:[%s4893_s5 + $0x54] sm:$0xf] }
  0x97   : > { %v1317_v25 = vor.u32 %v1316_v18, %v1313_v17  ;;  %v4570_v17 = vld [vmem:[%s4910_s23 + $0x168] sm:$0xff]  ;;  %v1365_v18 = vor.u32 %v1364_v8, %v1361_v7  ;;  %v1410_v7 = vshll.u32 %v1202_v2, 16  ;;  %v332_v8 = vld [vmem:[#allocation2 + $0x58] sm:$0xff] }
  0x98   : > { %3151 = vmatpush.bf16.msra.mxu3 %v4570_v17  ;;  %v1420_v17 = vshrl.u32 %v1203_v5, 16 }
  0x99   : > { %v1318_v29 = vrot.slane %v1317_v25, 4  ;;  %v1199_v25 = vld [vmem:[%s4893_s5 + $0x48] sm:$0xf] }
  0x9a   : > { %v1386_v27 = vshll.u32 %v1199_v25, 16 }
  0x9b   : > { %v1323_v38 = vsel %vm5010_vm2, %v1318_v29, %v1322_v19  ;;  %v1375_v19 = vor.u32 %v1374_v14, %v1370_v11 }
  0x9c   : > { %v1680_v43 = vunpack.c.l.b16 %v1323_v38  ;;  %v1388_v40 = vrot.slane %v1386_v27, 5 }
  0xa2   : > { %777 = vmatmul.bf16.vlgmr.msrb.gmra.mxu1 %v4961_v37  ;;  %1036 = vmatmul.bf16.vlgmr.msrb.gmra.mxu2 %v4985_v52  ;;  %v1308_v37 = vrot.slane %v1306_v1, 5 }
  0xa4   : > { %v1309_v16 = vsel %vm5010_vm2, %v1304_v6, %v1308_v37  ;;  %v1682_v6 = vunpack.c.l.b16 %v1347_v0 }
  0xa5   : > { %1794 = vmatmul.bf16.vlgmr.msrb.gmra.mxu3 %v1706_v51  ;;  %2075 = vmatmul.bf16.vlgmr.msrb.gmra.mxu0 %v1707_v60  ;;  %v1679_v23 = vunpack.c.l.b16 %v1309_v16  ;;  %v1195_v51 = vld [vmem:[%s4893_s5 + $0x38] sm:$0x1] }
  0xa6   : > { %v1354_v58 = vshll.u32 %v1195_v51, 16 }
  0xa7   : > { %v5040_v28 = vpack.c.b16 %v1679_v23, %v1678_v21  ;;  %v1366_v21 = vrot.slane %v1365_v18, 4  ;;  %v1376_v23 = vrot.slane %v1375_v19, 4  ;;  %v340_v18 = vld [vmem:[#allocation2 + $0xd0] sm:$0xff] }
  0xa9   : > { %v1371_v29 = vsel %vm5010_vm2, %v1366_v21, %v1370_v11 }
  0xaa   : > { %v1684_v38 = vunpack.c.l.b16 %v1371_v29 }
  0xb2   : > { %782 = vmatmul.bf16.gmra.mxu1 %v4985_v52  ;;  %1041 = vmatmul.bf16.gmra.mxu2 %v5007_v22  ;;  %v1333_v52 = vsel %vm5010_vm2, %v1328_v33, %v1332_v34  ;;  %v1381_v33 = vsel %vm5010_vm2, %v1376_v23, %v1380_v24  ;;  %v1392_v34 = vshll.u32 %v1200_v26, 16 }
  0xb3   : > { %v1681_v44 = vunpack.c.l.b16 %v1333_v52  ;;  %v1685_v52 = vunpack.c.l.b16 %v1381_v33  ;;  %v1418_v33 = vrot.slane %v1416_v15, 5 }
  0xb4   : > { %v1394_v42 = vrot.slane %v1392_v34, 5  ;;  %v1422_v34 = vrot.slane %v1420_v17, 4 }
  0xb5   : > { %1799 = vmatmul.bf16.gmra.mxu3 %v1707_v60  ;;  %2080 = vmatmul.bf16.gmra.mxu0 %v5040_v28  ;;  %v5052_v53 = vpack.c.b16 %v1681_v44, %v1680_v43  ;;  %v1352_v60 = vrot.slane %v1351_v57, 4  ;;  %v1398_v43 = vrot.slane %v1396_v35, 4  ;;  %v5082_v48 = vpack.c.b16 %v1685_v52, %v1684_v38  ;;  %v4569_v52 = vld [vmem:[%s4910_s23 + $0x160] sm:$0xff] }
  0xb6   : > { %v1402_v57 = vshll.u32 %v1201_v45, 16  ;;  %3152 = vmatpush.bf16.msra.mxu3 %v4569_v52  ;;  %v328_v52 = vld [vmem:[#allocation2 + $0xf0] sm:$0xff] }
  0xb7   : > { %v1399_v56 = vor.u32 %v1398_v43, %v1394_v42 }
  0xb9   : > { %v1400_v0 = vrot.slane %v1399_v56, 4 }
  0xc2   : > { %787 = vmatmul.bf16.gmra.mxu1 %v5007_v22  ;;  %1046 = vmatmul.bf16.gmra.mxu2 %v4924_v12  ;;  %v1356_v22 = vrot.slane %v1354_v58, 5  ;;  %v339_v58 = vld [vmem:[#allocation2 + $0xa8] sm:$0xff] }
  0xc4   : > { %v1357_v1 = vsel %vm5010_vm2, %v1352_v60, %v1356_v22 }
  0xc5   : > { %1804 = vmatmul.bf16.gmra.mxu3 %v5040_v28  ;;  %2085 = vmatmul.bf16.gmra.mxu0 %v5052_v53  ;;  %v1683_v37 = vunpack.c.l.b16 %v1357_v1  ;;  %v1404_v1 = vrot.slane %v1402_v57, 5 }
  0xc7   : > { %v5068_v16 = vpack.c.b16 %v1683_v37, %v1682_v6  ;;  %v1407_v37 = vshrl.u32 %v1202_v2, 16  ;;  %v1405_v14 = vsel %vm5010_vm2, %v1400_v0, %v1404_v1 }
  0xc9   : > { %v1409_v26 = vrot.slane %v1407_v37, 4 }
  0xd2   : > { %792 = vmatmul.bf16.gmra.mxu1 %v4924_v12  ;;  %1051 = vmatmul.bf16.gmra.mxu2 %v4949_v31  ;;  %v1383_v12 = vshrl.u32 %v1199_v25, 16  ;;  %v1687_v25 = vunpack.c.l.b16 %v1405_v14 }
  0xd4   : > { %v1385_v39 = vrot.slane %v1383_v12, 4  ;;  %v1412_v12 = vrot.slane %v1410_v7, 5 }
  0xd5   : > { %1809 = vmatmul.bf16.gmra.mxu3 %v5052_v53  ;;  %2090 = vmatmul.bf16.gmra.mxu0 %v5068_v16 }
  0xd6   : > { %v1389_v51 = vor.u32 %v1388_v40, %v1385_v39  ;;  %v1413_v39 = vor.u32 %v1412_v12, %v1409_v26  ;;  %v333_v40 = vld [vmem:[#allocation2 + $0x40] sm:$0xff]  ;;  %v4552_v12 = vld [vmem:[%s4910_s23 + $0x1d8] sm:$0xff] }
  0xd7   : > { %2352 = vmatpush.bf16.msra.mxu1 %v4552_v12 }
  0xd8   : > { %v1390_v61 = vrot.slane %v1389_v51, 4  ;;  %v1414_v51 = vrot.slane %v1413_v39, 4 }
  0xda   : > { %v1395_v6 = vsel %vm5010_vm2, %v1390_v61, %v1394_v42  ;;  %v1423_v42 = vor.u32 %v1422_v34, %v1418_v33 }
  0xdb   : > { %v1686_v21 = vunpack.c.l.b16 %v1395_v6  ;;  %v327_v6 = vld [vmem:[#allocation2 + $0x60] sm:$0xff] }
  0xdc   : > { %v1424_v57 = vrot.slane %v1423_v42, 4  ;;  %v4560_v42 = vld [vmem:[%s4910_s23 + $0x98] sm:$0xff] }
  0xdd   : > { %v5102_v38 = vpack.c.b16 %v1687_v25, %v1686_v21  ;;  %v1207_v25 = vld [vmem:[%s4893_s5 + $0x68] sm:$0x1]  ;;  %2886 = vmatpush.bf16.msra.mxu2 %v4560_v42  ;;  %v1211_v42 = vld [vmem:[%s4893_s5 + $0x78] sm:$0xf] }
  0xdf   : > { %v539_v41 = vpop.f32.mrf.mxu1 }
  0xe0   : > { %v607_v44 = vadd.f32 %v539_v41, %v323_v36  ;;  %v1204_v36 = vld [vmem:[%s4893_s5 + $0x5c] sm:$0x1] }
  0xe1   : > { %v1426_v43 = vshll.u32 %v1204_v36, 16  ;;  %v343_v36 = vld [vmem:[#allocation2 + $0xa0] sm:$0xff] }
  0xe2   : > { %639 = vst [vmem:[#allocation2 + $0x80] sm:$0xff] %v607_v44  ;;  %797 = vmatmul.bf16.gmra.mxu1 %v4949_v31  ;;  %1056 = vmatmul.bf16.gmra.mxu2 %v4973_v46  ;;  %v5087_v55 = vpop.f32.mrf.mxu0  ;;  %v341_v44 = vld [vmem:[#allocation2 + $0x10] sm:$0xff] }
  0xe5   : > { %1814 = vmatmul.bf16.gmra.mxu3 %v5068_v16  ;;  %v559_v31 = vpop.f32.mrf.mxu2  ;;  %2095 = vmatmul.bf16.gmra.mxu0 %v5082_v48 }
  0xe6   : > { %v615_v60 = vadd.f32 %v559_v31, %v331_v54  ;;  %v1205_v31 = vld [vmem:[%s4893_s5 + $0x60] sm:$0xf] }
  0xe7   : > { %v541_v62 = vpop.f32.mrf.mxu1  ;;  %v1431_v61 = vshrl.u32 %v1205_v31, 16 }
  0xe8   : > { %v579_v22 = vpop.f32.mrf.mxu3  ;;  %647 = vst [vmem:[#allocation2 + $0x38] sm:$0xff] %v615_v60  ;;  %v608_v3 = vadd.f32 %v541_v62, %v324_v59  ;;  %v1206_v60 = vld [vmem:[%s4893_s5 + $0x64] sm:$0xf]  ;;  %v1434_v62 = vshll.u32 %v1205_v31, 16  ;;  %v336_v31 = vld [vmem:[#allocation2 + $0x90] sm:$0xff] }
  0xe9   : > { %v623_v63 = vadd.f32 %v579_v22, %v339_v58  ;;  %v1428_v58 = vrot.slane %v1426_v43, 5  ;;  %v1419_v22 = vsel %vm5010_vm2, %v1414_v51, %v1418_v33  ;;  %v1440_v2 = vshll.u32 %v1206_v60, 16 }
  0xea   : > { %640 = vst [vmem:[#allocation2 + $0x88] sm:$0xff] %v608_v3  ;;  %v5095_v11 = vpop.f32.mrf.mxu0  ;;  %v1444_v3 = vshrl.u32 %v1206_v60, 16  ;;  %v1688_v37 = vunpack.c.l.b16 %v1419_v22  ;;  %v1433_v15 = vrot.slane %v1431_v61, 4  ;;  %v1436_v17 = vrot.slane %v1434_v62, 5  ;;  %v344_v62 = vld [vmem:[#allocation2 + $0xf8] sm:$0xff] }
  0xeb   : > { %655 = vst [vmem:[#allocation2 + $0xa8] sm:$0xff] %v623_v63  ;;  %v334_v63 = vld [vmem:[#allocation2 + $0xc8] sm:$0xff]  ;;  %v1429_v1 = vsel %vm5010_vm2, %v1424_v57, %v1428_v58 }
  0xec   : > { %v1689_v14 = vunpack.c.l.b16 %v1429_v1  ;;  %v1446_v21 = vrot.slane %v1444_v3, 4  ;;  %v329_v1 = vld [vmem:[#allocation2 + $0x8] sm:$0xff] }
  0xed   : > { %v561_v19 = vpop.f32.mrf.mxu2 }
  0xee   : > { %v616_v23 = vadd.f32 %v561_v19, %v332_v8  ;;  %v5121_v26 = vpack.c.b16 %v1689_v14, %v1688_v37 }
  0xef   : > { %v544_v27 = vpop.f32.mrf.mxu1 }
  0xf0   : > { %v581_v24 = vpop.f32.mrf.mxu3  ;;  %648 = vst [vmem:[#allocation2 + $0x58] sm:$0xff] %v616_v23  ;;  %v609_v35 = vadd.f32 %v544_v27, %v325_v20  ;;  %v1442_v20 = vrot.slane %v1440_v2, 5  ;;  %v1437_v27 = vor.u32 %v1436_v17, %v1433_v15 }
  0xf1   : > { %v624_v29 = vadd.f32 %v581_v24, %v340_v18  ;;  %v4577_v24 = vld [vmem:[%s4910_s23 + $0x220] sm:$0xff] }
  0xf2   : > { %641 = vst [vmem:[#allocation2 + $0xe8] sm:$0xff] %v609_v35  ;;  %802 = vmatmul.bf16.gmra.mxu1 %v4973_v46  ;;  %1061 = vmatmul.bf16.gmra.mxu2 %v4997_v9  ;;  %v5106_v41 = vpop.f32.mrf.mxu0  ;;  %v1447_v34 = vor.u32 %v1446_v21, %v1442_v20  ;;  %v1450_v35 = vshll.u32 %v1207_v25, 16  ;;  %v1438_v43 = vrot.slane %v1437_v27, 4  ;;  %v345_v27 = vld [vmem:[#allocation2 + $0x20] sm:$0xff] }
  0xf3   : > { %656 = vst [vmem:[#allocation2 + $0xd0] sm:$0xff] %v624_v29  ;;  %v335_v29 = vld [vmem:[#allocation2 + $0xe0] sm:$0xff]  ;;  %3419 = vmatpush.bf16.msra.mxu0 %v4577_v24 }
  0xf5   : > { %1819 = vmatmul.bf16.gmra.mxu3 %v5082_v48  ;;  %v564_v45 = vpop.f32.mrf.mxu2  ;;  %2100 = vmatmul.bf16.gmra.mxu0 %v5102_v38 }
  0xf6   : > { %v617_v46 = vadd.f32 %v564_v45, %v333_v40 }
  0xf7   : > { %v546_v54 = vpop.f32.mrf.mxu1 }
  0xf8   : > { %v584_v50 = vpop.f32.mrf.mxu3  ;;  %649 = vst [vmem:[#allocation2 + $0x40] sm:$0xff] %v617_v46  ;;  %v610_v59 = vadd.f32 %v546_v54, %v326_v49  ;;  %v1448_v49 = vrot.slane %v1447_v34, 4  ;;  %v1452_v46 = vrot.slane %v1450_v35, 5  ;;  %v1209_v54 = vld [vmem:[%s4893_s5 + $0x70] sm:$0xf]  ;;  %v330_v34 = vld [vmem:[#allocation2 + $0x78] sm:$0xff] }
  0xf9   : > { %v625_v56 = vadd.f32 %v584_v50, %v341_v44  ;;  %v1208_v50 = vld [vmem:[%s4893_s5 + $0x6c] sm:$0xf]  ;;  %v1464_v22 = vshll.u32 %v1209_v54, 16  ;;  %v1468_v61 = vshrl.u32 %v1209_v54, 16  ;;  %v1482_v54 = vshll.u32 %v1211_v42, 16 }
  0xfa   : > { %642 = vst [vmem:[#allocation2 + $0xb8] sm:$0xff] %v610_v59  ;;  %v5113_v0 = vpop.f32.mrf.mxu0  ;;  %v1455_v57 = vshrl.u32 %v1208_v50, 16  ;;  %v1458_v58 = vshll.u32 %v1208_v50, 16  ;;  %v1453_v60 = vsel %vm5010_vm2, %v1448_v49, %v1452_v46  ;;  %v1479_v49 = vshrl.u32 %v1211_v42, 16  ;;  %v338_v46 = vld [vmem:[#allocation2 + $0xc0] sm:$0xff] }
  0xfb   : > { %657 = vst [vmem:[#allocation2 + $0x10] sm:$0xff] %v625_v56  ;;  %v1443_v56 = vsel %vm5010_vm2, %v1438_v43, %v1442_v20  ;;  %v1466_v14 = vrot.slane %v1464_v22, 5  ;;  %v1470_v15 = vrot.slane %v1468_v61, 4 }
  0xfc   : > { %v1690_v2 = vunpack.c.l.b16 %v1443_v56  ;;  %v1460_v37 = vrot.slane %v1458_v58, 5  ;;  %v346_v58 = vld [vmem:[#allocation2 + $0x98] sm:$0xff] }
  0xfd   : > { %v566_v5 = vpop.f32.mrf.mxu2  ;;  %v1471_v25 = vor.u32 %v1470_v15, %v1466_v14  ;;  %v4551_v15 = vld [vmem:[%s4910_s23 + $0x1d0] sm:$0xff] }
  0xfe   : > { %v618_v7 = vadd.f32 %v566_v5, %v334_v63  ;;  %v1691_v5 = vunpack.c.l.b16 %v1453_v60  ;;  %2353 = vmatpush.bf16.msra.mxu1 %v4551_v15 }
  0xff   : > { %v549_v18 = vpop.f32.mrf.mxu1 }
 0x100   : > { %v586_v8 = vpop.f32.mrf.mxu3  ;;  %650 = vst [vmem:[#allocation2 + $0xc8] sm:$0xff] %v618_v7  ;;  %v611_v23 = vadd.f32 %v549_v18, %v327_v6  ;;  %v1457_v6 = vrot.slane %v1455_v57, 4  ;;  %v4568_v18 = vld [vmem:[%s4910_s23 + $0x158] sm:$0xff]  ;;  %v5141_v20 = vpack.c.b16 %v1691_v5, %v1690_v2 }
 0x101   : > { %v626_v19 = vadd.f32 %v586_v8, %v342_v4  ;;  %3153 = vmatpush.bf16.msra.mxu3 %v4568_v18 }
 0x102   : > { %643 = vst [vmem:[#allocation2 + $0x60] sm:$0xff] %v611_v23  ;;  %807 = vmatmul.bf16.gmra.mxu1 %v4997_v9  ;;  %1066 = vmatmul.bf16.gmra.mxu2 %v4927_v13  ;;  %v5125_v33 = vpop.f32.mrf.mxu0  ;;  %v1461_v21 = vor.u32 %v1460_v37, %v1457_v6  ;;  %v337_v23 = vld [vmem:[#allocation2 + $0x70] sm:$0xff]  ;;  %v4576_v37 = vld [vmem:[%s4910_s23 + $0x218] sm:$0xff] }
 0x103   : > { %658 = vst [vmem:[#allocation2 + $0x28] sm:$0xff] %v626_v19  ;;  %v1210_v19 = vld [vmem:[%s4893_s5 + $0x74] sm:$0x1]  ;;  %3420 = vmatpush.bf16.msra.mxu0 %v4576_v37 }
 0x104   : > { %v1474_v12 = vshll.u32 %v1210_v19, 16 }
 0x105   : > { %1824 = vmatmul.bf16.gmra.mxu3 %v5102_v38  ;;  %v569_v9 = vpop.f32.mrf.mxu2  ;;  %2105 = vmatmul.bf16.gmra.mxu0 %v5121_v26 }
 0x106   : > { %v619_v39 = vadd.f32 %v569_v9, %v335_v29 }
 0x107   : > { %v551_v44 = vpop.f32.mrf.mxu1 }
 0x108   : > { %v589_v40 = vpop.f32.mrf.mxu3  ;;  %651 = vst [vmem:[#allocation2 + $0xe0] sm:$0xff] %v619_v39  ;;  %v612_v51 = vadd.f32 %v551_v44, %v328_v52  ;;  %v1472_v39 = vrot.slane %v1471_v25, 4  ;;  %v1212_v44 = vld [vmem:[%s4893_s5 + $0x7c] sm:$0xf] }
 0x109   : > { %v627_v45 = vadd.f32 %v589_v40, %v343_v36  ;;  %v1462_v36 = vrot.slane %v1461_v21, 4  ;;  %v1476_v40 = vrot.slane %v1474_v12, 5  ;;  %v1488_v56 = vshll.u32 %v1212_v44, 16  ;;  %v4559_v12 = vld [vmem:[%s4910_s23 + $0x90] sm:$0xff] }
 0x10a   : > { %644 = vst [vmem:[#allocation2 + $0xf0] sm:$0xff] %v612_v51  ;;  %v5133_v59 = vpop.f32.mrf.mxu0  ;;  %v1492_v57 = vshrl.u32 %v1212_v44, 16  ;;  %2887 = vmatpush.bf16.msra.mxu2 %v4559_v12 }
 0x10b   : > { %659 = vst [vmem:[#allocation2 + $0xa0] sm:$0xff] %v627_v45  ;;  %v1467_v45 = vsel %vm5010_vm2, %v1462_v36, %v1466_v14  ;;  %v1477_v51 = vsel %vm5010_vm2, %v1472_v39, %v1476_v40  ;;  %v1490_v5 = vrot.slane %v1488_v56, 5 }
 0x10c   : > { %v1692_v61 = vunpack.c.l.b16 %v1467_v45  ;;  %v1494_v6 = vrot.slane %v1492_v57, 4 }
 0x10d   : > { %v571_v63 = vpop.f32.mrf.mxu2 }
 0x10e   : > { %v620_v3 = vadd.f32 %v571_v63, %v336_v31  ;;  %v1481_v63 = vrot.slane %v1479_v49, 4  ;;  %v1495_v19 = vor.u32 %v1494_v6, %v1490_v5 }
 0x10f   : > { %v554_v7 = vpop.f32.mrf.mxu1 }
 0x110   : > { %v591_v4 = vpop.f32.mrf.mxu3  ;;  %652 = vst [vmem:[#allocation2 + $0x90] sm:$0xff] %v620_v3  ;;  %v613_v17 = vadd.f32 %v554_v7, %v329_v1  ;;  %v315_v1 = vld [vmem:[#allocation2 + $0xb0] sm:$0xff]  ;;  %v1213_v7 = vld [vmem:[%s4893_s5 + $0x80] sm:$0x1]  ;;  %v1496_v36 = vrot.slane %v1495_v19, 4 }
 0x111   : > { %v628_v8 = vadd.f32 %v591_v4, %v344_v62  ;;  %v1693_v62 = vunpack.c.l.b16 %v1477_v51  ;;  %v1484_v4 = vrot.slane %v1482_v54, 5  ;;  %v1498_v21 = vshll.u32 %v1213_v7, 16 }
 0x112   : > { %645 = vst [vmem:[#allocation2 + $0x8] sm:$0xff] %v613_v17  ;;  %812 = vmatmul.bf16.gmra.mxu1 %v4927_v13  ;;  %1071 = vmatmul.bf16.gmra.mxu2 %v4952_v32  ;;  %v5144_v24 = vpop.f32.mrf.mxu0 }
 0x113   : > { %660 = vst [vmem:[#allocation2 + $0xf8] sm:$0xff] %v628_v8  ;;  %v599_v8 = vadd.f32 %v5087_v55, %v315_v1  ;;  %v5160_v14 = vpack.c.b16 %v1693_v62, %v1692_v61  ;;  %v1485_v18 = vor.u32 %v1484_v4, %v1481_v63  ;;  %v1216_v63 = vld [vmem:[%s4893_s5 + $0x8c] sm:$0x1]  ;;  %v317_v1 = vld [vmem:[#allocation2 + $0xd8] sm:$0xff]  ;;  %v4567_v4 = vld [vmem:[%s4910_s23 + $0x150] sm:$0xff] }
 0x114   : > { %v1522_v37 = vshll.u32 %v1216_v63, 16  ;;  %v601_v7 = vadd.f32 %v5106_v41, %v317_v1  ;;  %3154 = vmatpush.bf16.msra.mxu3 %v4567_v4  ;;  %v318_v41 = vld [vmem:[#allocation2 + $0x18] sm:$0xff]  ;;  %v4759_v63 = vld [vmem:[%s4893_s5 + $0x90] sm:$0xff] }
 0x115   : > { %1829 = vmatmul.bf16.gmra.mxu3 %v5121_v26  ;;  %v574_v29 = vpop.f32.mrf.mxu2  ;;  %2110 = vmatmul.bf16.gmra.mxu0 %v5141_v20 }
 0x116   : > { %v621_v35 = vadd.f32 %v574_v29, %v337_v23  ;;  %v1215_v29 = vld [vmem:[%s4893_s5 + $0x88] sm:$0xf] }
 0x117   : > { %v556_v9 = vpop.f32.mrf.mxu1  ;;  %v1512_v42 = vshll.u32 %v1215_v29, 16 }
 0x118   : > { %v594_v13 = vpop.f32.mrf.mxu3  ;;  %653 = vst [vmem:[#allocation2 + $0x70] sm:$0xff] %v621_v35  ;;  %v614_v43 = vadd.f32 %v556_v9, %v330_v34  ;;  %v316_v34 = vld [vmem:[#allocation2] sm:$0xff]  ;;  %v1500_v9 = vrot.slane %v1498_v21, 5 }
 0x119   : > { %v629_v52 = vadd.f32 %v594_v13, %v345_v27  ;;  %v1214_v27 = vld [vmem:[%s4893_s5 + $0x84] sm:$0xf]  ;;  %v1486_v13 = vrot.slane %v1485_v18, 4  ;;  %v600_v44 = vadd.f32 %v5095_v11, %v316_v34  ;;  %v602_v34 = vadd.f32 %v5113_v0, %v318_v41  ;;  %v1220_v41 = vld [vmem:[%s4893_s5 + $0x9c] sm:$0xf] }
 0x11a   : > { %646 = vst [vmem:[#allocation2 + $0x78] sm:$0xff] %v614_v43  ;;  %v5151_v50 = vpop.f32.mrf.mxu0  ;;  %v1503_v39 = vshrl.u32 %v1214_v27, 16  ;;  %v1506_v40 = vshll.u32 %v1214_v27, 16  ;;  %v1516_v43 = vshrl.u32 %v1215_v29, 16  ;;  %v1501_v51 = vsel %vm5010_vm2, %v1496_v36, %v1500_v9  ;;  %v1218_v27 = vld [vmem:[%s4893_s5 + $0x94] sm:$0xf] }
 0x11b   : > { %661 = vst [vmem:[#allocation2 + $0x20] sm:$0xff] %v629_v52  ;;  %v1695_v62 = vunpack.c.l.b16 %v1501_v51 }
 0x11c   : > { %v1505_v57 = vrot.slane %v1503_v39, 4  ;;  %v1536_v39 = vshll.u32 %v1218_v27, 16 }
 0x11d   : > { %v576_v31 = vpop.f32.mrf.mxu2 }
 0x11e   : > { %v622_v60 = vadd.f32 %v576_v31, %v338_v46  ;;  %v1491_v46 = vsel %vm5010_vm2, %v1486_v13, %v1490_v5  ;;  %v1514_v31 = vrot.slane %v1512_v42, 5 }
 0x11f   : > { %v778_v2 = vpop.f32.mrf.mxu1  ;;  %v1694_v11 = vunpack.c.l.b16 %v1491_v46  ;;  %v319_v46 = vld [vmem:[#allocation2 + $0x50] sm:$0xff] }
 0x120   : > { %v596_v22 = vpop.f32.mrf.mxu3  ;;  %654 = vst [vmem:[#allocation2 + $0xc0] sm:$0xff] %v622_v60  ;;  %v858_v23 = vadd.f32 %v778_v2, %v599_v8  ;;  %v1518_v60 = vrot.slane %v1516_v43, 4 }
 0x121   : > { %v630_v3 = vadd.f32 %v596_v22, %v346_v58  ;;  %v1508_v58 = vrot.slane %v1506_v40, 5  ;;  %v5178_v15 = vpack.c.b16 %v1695_v62, %v1694_v11  ;;  %v1540_v40 = vshrl.u32 %v1218_v27, 16 }
 0x122   : > { %817 = vmatmul.bf16.gmra.mxu1 %v4952_v32  ;;  %1076 = vmatmul.bf16.gmra.mxu2 %v4976_v47  ;;  %v2076_v17 = vpop.f32.mrf.mxu0  ;;  %v1519_v6 = vor.u32 %v1518_v60, %v1514_v31  ;;  %v1219_v60 = vld [vmem:[%s4893_s5 + $0x98] sm:$0x1]  ;;  %v603_v11 = vadd.f32 %v5125_v33, %v319_v46 }
 0x123   : > { %662 = vst [vmem:[#allocation2 + $0x98] sm:$0xff] %v630_v3  ;;  %v1509_v5 = vor.u32 %v1508_v58, %v1505_v57  ;;  %v1538_v57 = vrot.slane %v1536_v39, 5  ;;  %v1542_v58 = vrot.slane %v1540_v40, 4 }
 0x125   : > { %1834 = vmatmul.bf16.gmra.mxu3 %v5141_v20  ;;  %v1037_v55 = vpop.f32.mrf.mxu2  ;;  %2115 = vmatmul.bf16.gmra.mxu0 %v5160_v14  ;;  %v1510_v21 = vrot.slane %v1509_v5, 4  ;;  %v1543_v4 = vor.u32 %v1542_v58, %v1538_v57  ;;  %v1546_v5 = vshll.u32 %v1219_v60, 16  ;;  %v4760_v58 = vld [vmem:[%s4893_s5 + $0x9c] sm:$0xff] }
 0x126   : > { %v1117_v25 = vadd.f32 %v1037_v55, %v858_v23  ;;  %v1520_v23 = vrot.slane %v1519_v6, 4  ;;  %v1524_v55 = vrot.slane %v1522_v37, 5 }
 0x127   : > { %v780_v35 = vpop.f32.mrf.mxu1 }
 0x128   : > { %v1795_v32 = vpop.f32.mrf.mxu3  ;;  %v859_v54 = vadd.f32 %v780_v35, %v600_v44  ;;  %v1515_v35 = vsel %vm5010_vm2, %v1510_v21, %v1514_v31  ;;  %v1525_v13 = vsel %vm5010_vm2, %v1520_v23, %v1524_v55  ;;  %v320_v21 = vld [vmem:[#allocation2 + $0x68] sm:$0xff] }
 0x129   : > { %v1875_v52 = vadd.f32 %v1795_v32, %v1117_v25  ;;  %v1217_v32 = vld [vmem:[%s4893_s5 + $0x90] sm:$0xf]  ;;  %v1697_v0 = vunpack.c.l.b16 %v1525_v13 }
 0x12a   : > { %v2078_v49 = vpop.f32.mrf.mxu0  ;;  %v1527_v36 = vshrl.u32 %v1217_v32, 16 }
 0x12b   : > { %v2156_v45 = vadd.f32 %v2076_v17, %v1875_v52  ;;  %v1530_v52 = vshll.u32 %v1217_v32, 16 }
 0x12d   : > { %2188 = vst [vmem:[#allocation2 + $0xb0] sm:$0xff] %v2156_v45  ;;  %v1039_v56 = vpop.f32.mrf.mxu2  ;;  %v1696_v45 = vunpack.c.l.b16 %v1515_v35  ;;  %v1554_v35 = vshll.u32 %v1220_v41, 16 }
 0x12e   : > { %v1118_v22 = vadd.f32 %v1039_v56, %v859_v54  ;;  %v1532_v56 = vrot.slane %v1530_v52, 5 }
 0x12f   : > { %v783_v2 = vpop.f32.mrf.mxu1  ;;  %v5192_v62 = vpack.c.b16 %v1697_v0, %v1696_v45  ;;  %v1556_v0 = vrot.slane %v1554_v35, 5 }
 0x130   : > { %v1797_v61 = vpop.f32.mrf.mxu3  ;;  %v860_v18 = vadd.f32 %v783_v2, %v601_v7  ;;  %v4550_v2 = vld [vmem:[%s4910_s23 + $0x1c8] sm:$0xff] }
 0x131   : > { %v1876_v3 = vadd.f32 %v1797_v61, %v1118_v22  ;;  %v4575_v61 = vld [vmem:[%s4910_s23 + $0x210] sm:$0xff]  ;;  %2354 = vmatpush.bf16.msra.mxu1 %v4550_v2 }
 0x132   : > { %822 = vmatmul.bf16.gmra.mxu1 %v4976_v47  ;;  %1081 = vmatmul.bf16.gmra.mxu2 %v5000_v10  ;;  %v2081_v17 = vpop.f32.mrf.mxu0 }
 0x133   : > { %v2157_v8 = vadd.f32 %v2078_v49, %v1876_v3  ;;  %v1529_v49 = vrot.slane %v1527_v36, 4  ;;  %3421 = vmatpush.bf16.msra.mxu0 %v4575_v61 }
 0x135   : > { %1839 = vmatmul.bf16.gmra.mxu3 %v5160_v14  ;;  %2189 = vst [vmem:[#allocation2] sm:$0xff] %v2157_v8  ;;  %v1042_v19 = vpop.f32.mrf.mxu2  ;;  %2120 = vmatmul.bf16.gmra.mxu0 %v5178_v15  ;;  %v1533_v3 = vor.u32 %v1532_v56, %v1529_v49  ;;  %v4558_v8 = vld [vmem:[%s4910_s23 + $0x88] sm:$0xff]  ;;  %v1222_v56 = vld [vmem:[%s4893_s5 + $0xa4] sm:$0x1] }
 0x136   : > { %v1119_v25 = vadd.f32 %v1042_v19, %v860_v18  ;;  %v1544_v18 = vrot.slane %v1543_v4, 4  ;;  %v1548_v19 = vrot.slane %v1546_v5, 5  ;;  %2888 = vmatpush.bf16.msra.mxu2 %v4558_v8  ;;  %v1224_v5 = vld [vmem:[%s4893_s5 + $0xac] sm:$0xf] }
 0x137   : > { %v785_v12 = vpop.f32.mrf.mxu1 }
 0x138   : > { %v1800_v47 = vpop.f32.mrf.mxu3  ;;  %v861_v43 = vadd.f32 %v785_v12, %v602_v34  ;;  %v1549_v27 = vsel %vm5010_vm2, %v1544_v18, %v1548_v19  ;;  %v1551_v34 = vshrl.u32 %v1220_v41, 16  ;;  %v1584_v19 = vshll.u32 %v1224_v5, 16 }
 0x139   : > { %v1877_v29 = vadd.f32 %v1800_v47, %v1119_v25  ;;  %v1221_v25 = vld [vmem:[%s4893_s5 + $0xa0] sm:$0xf]  ;;  %v604_v47 = vadd.f32 %v5133_v59, %v320_v21  ;;  %v1588_v21 = vshrl.u32 %v1224_v5, 16 }
 0x13a   : > { %v2083_v42 = vpop.f32.mrf.mxu0  ;;  %v1560_v13 = vshll.u32 %v1221_v25, 16  ;;  %v1564_v36 = vshrl.u32 %v1221_v25, 16  ;;  %v1553_v45 = vrot.slane %v1551_v34, 4  ;;  %v1586_v34 = vrot.slane %v1584_v19, 5 }
 0x13b   : > { %v2158_v9 = vadd.f32 %v2081_v17, %v1877_v29  ;;  %v1534_v17 = vrot.slane %v1533_v3, 4  ;;  %v1590_v35 = vrot.slane %v1588_v21, 4 }
 0x13c   : > { %v1562_v49 = vrot.slane %v1560_v13, 5  ;;  %v1566_v46 = vrot.slane %v1564_v36, 4  ;;  %v1557_v61 = vor.u32 %v1556_v0, %v1553_v45  ;;  %v4761_v45 = vld [vmem:[%s4893_s5 + $0xa8] sm:$0xff] }
 0x13d   : > { %2190 = vst [vmem:[#allocation2 + $0xd8] sm:$0xff] %v2158_v9  ;;  %v1044_v44 = vpop.f32.mrf.mxu2  ;;  %v1539_v12 = vsel %vm5010_vm2, %v1534_v17, %v1538_v57 }
 0x13e   : > { %v1120_v51 = vadd.f32 %v1044_v44, %v861_v43  ;;  %v1698_v40 = vunpack.c.l.b16 %v1539_v12  ;;  %v321_v43 = vld [vmem:[#allocation2 + $0x30] sm:$0xff] }
 0x13f   : > { %v788_v31 = vpop.f32.mrf.mxu1  ;;  %v605_v57 = vadd.f32 %v5144_v24, %v321_v43  ;;  %v1591_v43 = vor.u32 %v1590_v35, %v1586_v34  ;;  %v4565_v35 = vld [vmem:[%s4910_s23 + $0x140] sm:$0xff] }
 0x140   : > { %v1802_v54 = vpop.f32.mrf.mxu3  ;;  %v862_v37 = vadd.f32 %v788_v31, %v603_v11  ;;  %v1567_v11 = vor.u32 %v1566_v46, %v1562_v49  ;;  %v4549_v46 = vld [vmem:[%s4910_s23 + $0x1c0] sm:$0xff] }
 0x141   : > { %v1878_v22 = vadd.f32 %v1802_v54, %v1120_v51  ;;  %v4566_v54 = vld [vmem:[%s4910_s23 + $0x148] sm:$0xff]  ;;  %2355 = vmatpush.bf16.msra.mxu1 %v4549_v46 }
 0x142   : > { %827 = vmatmul.bf16.gmra.mxu1 %v5000_v10  ;;  %1086 = vmatmul.bf16.gmra.mxu2 %v4759_v63  ;;  %v2086_v6 = vpop.f32.mrf.mxu0 }
 0x143   : > { %v2159_v1 = vadd.f32 %v2083_v42, %v1878_v22  ;;  %v1699_v42 = vunpack.c.l.b16 %v1549_v27  ;;  %3155 = vmatpush.bf16.msra.mxu3 %v4566_v54 }
 0x145   : > { %1844 = vmatmul.bf16.gmra.mxu3 %v5178_v15  ;;  %2191 = vst [vmem:[#allocation2 + $0x18] sm:$0xff] %v2159_v1  ;;  %v1047_v33 = vpop.f32.mrf.mxu2  ;;  %2125 = vmatmul.bf16.gmra.mxu0 %v5192_v62  ;;  %v5211_v60 = vpack.c.b16 %v1699_v42, %v1698_v40  ;;  %v1570_v1 = vshll.u32 %v1222_v56, 16  ;;  %v4574_v40 = vld [vmem:[%s4910_s23 + $0x208] sm:$0xff] }
 0x146   : > { %v1121_v7 = vadd.f32 %v1047_v33, %v862_v37  ;;  %v1558_v33 = vrot.slane %v1557_v61, 4  ;;  %3422 = vmatpush.bf16.msra.mxu0 %v4574_v40 }
 0x147   : > { %v790_v23 = vpop.f32.mrf.mxu1  ;;  %3156 = vmatpush.bf16.msra.mxu3 %v4565_v35 }
 0x148   : > { %v1805_v10 = vpop.f32.mrf.mxu3  ;;  %v863_v9 = vadd.f32 %v790_v23, %v604_v47  ;;  %v1563_v25 = vsel %vm5010_vm2, %v1558_v33, %v1562_v49 }
 0x149   : > { %v1879_v55 = vadd.f32 %v1805_v10, %v1121_v7  ;;  %v1568_v7 = vrot.slane %v1567_v11, 4  ;;  %v1572_v10 = vrot.slane %v1570_v1, 5  ;;  %v1700_v36 = vunpack.c.l.b16 %v1563_v25  ;;  %v4557_v1 = vld [vmem:[%s4910_s23 + $0x80] sm:$0xff] }
 0x14a   : > { %v2088_v29 = vpop.f32.mrf.mxu0  ;;  %2889 = vmatpush.bf16.msra.mxu2 %v4557_v1 }
 0x14b   : > { %v2160_v32 = vadd.f32 %v2086_v6, %v1879_v55  ;;  %v322_v6 = vld [vmem:[#allocation2 + $0x48] sm:$0xff]  ;;  %v1573_v47 = vsel %vm5010_vm2, %v1568_v7, %v1572_v10 }
 0x14c   : > { %v606_v23 = vadd.f32 %v5151_v50, %v322_v6 }
 0x14d   : > { %2192 = vst [vmem:[#allocation2 + $0x50] sm:$0xff] %v2160_v32  ;;  %v1049_v52 = vpop.f32.mrf.mxu2 }
 0x14e   : > { %v1122_v39 = vadd.f32 %v1049_v52, %v863_v9  ;;  %v1701_v9 = vunpack.c.l.b16 %v1573_v47  ;;  %v1225_v52 = vld [vmem:[%s4893_s5 + $0xb0] sm:$0x1] }
 0x14f   : > { %v793_v44 = vpop.f32.mrf.mxu1 }
 0x150   : > { %v1807_v59 = vpop.f32.mrf.mxu3  ;;  %v864_v2 = vadd.f32 %v793_v44, %v605_v57  ;;  %v1594_v44 = vshll.u32 %v1225_v52, 16  ;;  %v5225_v49 = vpack.c.b16 %v1701_v9, %v1700_v36 }
 0x151   : > { %v1880_v51 = vadd.f32 %v1807_v59, %v1122_v39 }
 0x152   : > { %832 = vmatmul.bf16.gmra.mxu1 %v4759_v63  ;;  %1091 = vmatmul.bf16.gmra.mxu2 %v4760_v58  ;;  %v2091_v22 = vpop.f32.mrf.mxu0  ;;  %v1223_v63 = vld [vmem:[%s4893_s5 + $0xa8] sm:$0xf] }
 0x153   : > { %v2161_v31 = vadd.f32 %v2088_v29, %v1880_v51  ;;  %v1575_v17 = vshrl.u32 %v1223_v63, 16  ;;  %v1578_v18 = vshll.u32 %v1223_v63, 16  ;;  %v672_v51 = vld [vmem:[#allocation2 + $0x80] sm:$0xff] }
 0x155   : > { %1849 = vmatmul.bf16.gmra.mxu3 %v5192_v62  ;;  %2193 = vst [vmem:[#allocation2 + $0x68] sm:$0xff] %v2161_v31  ;;  %v1052_v3 = vpop.f32.mrf.mxu2  ;;  %2130 = vmatmul.bf16.gmra.mxu0 %v5211_v60  ;;  %v1577_v27 = vrot.slane %v1575_v17, 4  ;;  %v1580_v29 = vrot.slane %v1578_v18, 5 }
 0x156   : > { %v1123_v4 = vadd.f32 %v1052_v3, %v864_v2  ;;  %v1226_v2 = vld [vmem:[%s4893_s5 + $0xb4] sm:$0xf] }
 0x157   : > { %v795_v37 = vpop.f32.mrf.mxu1  ;;  %v1581_v42 = vor.u32 %v1580_v29, %v1577_v27  ;;  %v1599_v6 = vshrl.u32 %v1226_v2, 16  ;;  %v1602_v33 = vshll.u32 %v1226_v2, 16  ;;  %v1228_v29 = vld [vmem:[%s4893_s5 + $0xbc] sm:$0x1] }
 0x158   : > { %v1810_v24 = vpop.f32.mrf.mxu3  ;;  %v865_v32 = vadd.f32 %v795_v37, %v606_v23 }
 0x159   : > { %v1881_v8 = vadd.f32 %v1810_v24, %v1123_v4  ;;  %v1582_v31 = vrot.slane %v1581_v42, 4  ;;  %v1227_v4 = vld [vmem:[%s4893_s5 + $0xb8] sm:$0xf]  ;;  %v1604_v47 = vrot.slane %v1602_v33, 5 }
 0x15a   : > { %v2093_v41 = vpop.f32.mrf.mxu0  ;;  %v1608_v7 = vshll.u32 %v1227_v4, 16  ;;  %v1612_v10 = vshrl.u32 %v1227_v4, 16 }
 0x15b   : > { %v2162_v55 = vadd.f32 %v2091_v22, %v1881_v8  ;;  %v1596_v22 = vrot.slane %v1594_v44, 5  ;;  %v1587_v63 = vsel %vm5010_vm2, %v1582_v31, %v1586_v34  ;;  %v673_v8 = vld [vmem:[#allocation2 + $0x88] sm:$0xff]  ;;  %v1230_v31 = vld [vmem:[%s4893_s5 + $0xc4] sm:$0xf] }
 0x15c   : > { %v1702_v21 = vunpack.c.l.b16 %v1587_v63  ;;  %v1949_v4 = vshll.u32 %v1230_v31, 16 }
 0x15d   : > { %2194 = vst [vmem:[#allocation2 + $0x30] sm:$0xff] %v2162_v55  ;;  %v1054_v12 = vpop.f32.mrf.mxu2  ;;  %v1601_v55 = vrot.slane %v1599_v6, 4 }
 0x15e   : > { %v1124_v13 = vadd.f32 %v1054_v12, %v865_v32  ;;  %v1610_v32 = vrot.slane %v1608_v7, 5  ;;  %v1614_v12 = vrot.slane %v1612_v10, 4 }
 0x15f   : > { %v798_v39 = vpop.f32.mrf.mxu1  ;;  %v1605_v9 = vor.u32 %v1604_v47, %v1601_v55  ;;  %v4573_v55 = vld [vmem:[%s4910_s23 + $0x200] sm:$0xff] }
 0x160   : > { %v1812_v50 = vpop.f32.mrf.mxu3  ;;  %v866_v56 = vadd.f32 %v798_v39, %v672_v51  ;;  %v1615_v52 = vor.u32 %v1614_v12, %v1610_v32  ;;  %v1618_v39 = vshll.u32 %v1228_v29, 16  ;;  %3423 = vmatpush.bf16.msra.mxu0 %v4573_v55 }
 0x161   : > { %v1882_v59 = vadd.f32 %v1812_v50, %v1124_v13  ;;  %v4762_v50 = vld [vmem:[%s4893_s5 + $0xb4] sm:$0xff] }
 0x162   : > { %837 = vmatmul.bf16.gmra.mxu1 %v4760_v58  ;;  %1096 = vmatmul.bf16.gmra.mxu2 %v4761_v45  ;;  %v2096_v54 = vpop.f32.mrf.mxu0  ;;  %v1592_v58 = vrot.slane %v1591_v43, 4  ;;  %v1616_v46 = vrot.slane %v1615_v52, 4  ;;  %v1620_v51 = vrot.slane %v1618_v39, 5 }
 0x163   : > { %v2163_v0 = vadd.f32 %v2093_v41, %v1882_v59  ;;  %v674_v59 = vld [vmem:[#allocation2 + $0xe8] sm:$0xff] }
 0x164   : > { %v1597_v5 = vsel %vm5010_vm2, %v1592_v58, %v1596_v22 }
 0x165   : > { %1854 = vmatmul.bf16.gmra.mxu3 %v5211_v60  ;;  %2195 = vst [vmem:[#allocation2 + $0x48] sm:$0xff] %v2163_v0  ;;  %v1057_v57 = vpop.f32.mrf.mxu2  ;;  %2135 = vmatmul.bf16.gmra.mxu0 %v5225_v49  ;;  %v1703_v23 = vunpack.c.l.b16 %v1597_v5 }
 0x166   : > { %v1125_v61 = vadd.f32 %v1057_v57, %v866_v56  ;;  %v1229_v57 = vld [vmem:[%s4893_s5 + $0xc0] sm:$0xf] }
 0x167   : > { %v800_v3 = vpop.f32.mrf.mxu1  ;;  %v5239_v13 = vpack.c.b16 %v1703_v23, %v1702_v21  ;;  %v1940_v2 = vshrl.u32 %v1229_v57, 16 }
 0x168   : > { %v1815_v11 = vpop.f32.mrf.mxu3  ;;  %v867_v18 = vadd.f32 %v800_v3, %v673_v8  ;;  %v1943_v3 = vshll.u32 %v1229_v57, 16 }
 0x169   : > { %v1883_v24 = vadd.f32 %v1815_v11, %v1125_v61  ;;  %v1621_v61 = vsel %vm5010_vm2, %v1616_v46, %v1620_v51  ;;  %v675_v11 = vld [vmem:[#allocation2 + $0xb8] sm:$0xff] }
 0x16a   : > { %v2098_v17 = vpop.f32.mrf.mxu0  ;;  %v1705_v10 = vunpack.c.l.b16 %v1621_v61 }
 0x16b   : > { %v2164_v37 = vadd.f32 %v2096_v54, %v1883_v24  ;;  %v1953_v24 = vshrl.u32 %v1230_v31, 16 }
 0x16d   : > { %2196 = vst [vmem:[#allocation2 + $0x80] sm:$0xff] %v2164_v37  ;;  %v1059_v19 = vpop.f32.mrf.mxu2  ;;  %v4506_v37 = vld [vmem:[%s4893_s5 + $0xc0] sm:$0xff]  ;;  %v1955_v21 = vrot.slane %v1953_v24, 4 }
 0x16e   : > { %v1126_v41 = vadd.f32 %v1059_v19, %v867_v18  ;;  %v1945_v18 = vrot.slane %v1943_v3, 5  ;;  %v1951_v19 = vrot.slane %v1949_v4, 5  ;;  %v2501_v3 = vld [vmem:[%s4893_s5] sm:$0xe]  ;;  %v2503_v4 = vld [vmem:[%s4893_s5 + $0x8] sm:$0x1] }
 0x16f   : > { %v803_v27 = vpop.f32.mrf.mxu1 }
 0x170   : > { %v1817_v25 = vpop.f32.mrf.mxu3  ;;  %v868_v42 = vadd.f32 %v803_v27, %v674_v59  ;;  %v1956_v29 = vor.u32 %v1955_v21, %v1951_v19  ;;  %v2611_v21 = vrot.slane %v2503_v4, 5 }
 0x171   : > { %v1884_v34 = vadd.f32 %v1817_v25, %v1126_v41  ;;  %v1231_v41 = vld [vmem:[%s4893_s5 + $0xc8] sm:$0x1] }
 0x172   : > { %842 = vmatmul.bf16.gmra.mxu1 %v4761_v45  ;;  %1101 = vmatmul.bf16.gmra.mxu2 %v4762_v50  ;;  %v2101_v40 = vpop.f32.mrf.mxu0  ;;  %v1606_v45 = vrot.slane %v1605_v9, 4  ;;  %v1957_v59 = vrot.slane %v1956_v29, 4 }
 0x173   : > { %v2165_v36 = vadd.f32 %v2098_v17, %v1884_v34  ;;  %v1942_v17 = vrot.slane %v1940_v2, 4  ;;  %v1959_v34 = vshll.u32 %v1231_v41, 16 }
 0x174   : > { %v1611_v22 = vsel %vm5010_vm2, %v1606_v45, %v1610_v32  ;;  %v676_v32 = vld [vmem:[#allocation2 + $0x60] sm:$0xff] }
 0x175   : > { %1859 = vmatmul.bf16.gmra.mxu3 %v5225_v49  ;;  %2197 = vst [vmem:[#allocation2 + $0x88] sm:$0xff] %v2165_v36  ;;  %v1062_v43 = vpop.f32.mrf.mxu2  ;;  %2140 = vmatmul.bf16.gmra.mxu0 %v5239_v13  ;;  %v1704_v7 = vunpack.c.l.b16 %v1611_v22  ;;  %v1946_v27 = vor.u32 %v1945_v18, %v1942_v17  ;;  %v2502_v45 = vld [vmem:[%s4893_s5 + $0x4] sm:$0xf]  ;;  %v678_v18 = vld [vmem:[#allocation2 + $0x8] sm:$0xff] }
 0x176   : > { %v1127_v44 = vadd.f32 %v1062_v43, %v868_v42  ;;  %v2608_v61 = vrot.slane %v2502_v45, 5 }
 0x177   : > { %v805_v54 = vpop.f32.mrf.mxu1  ;;  %v5253_v47 = vpack.c.b16 %v1705_v10, %v1704_v7  ;;  %v1947_v39 = vrot.slane %v1946_v27, 4  ;;  %v4322_v10 = vrot.slane %v2501_v3, 9  ;;  %v2509_v27 = vld [vmem:[%s4893_s5 + $0x20] sm:$0x1] }
 0x178   : > { %v1820_v0 = vpop.f32.mrf.mxu3  ;;  %v869_v63 = vadd.f32 %v805_v54, %v675_v11 }
 0x179   : > { %v1885_v56 = vadd.f32 %v1820_v0, %v1127_v44  ;;  %v677_v44 = vld [vmem:[#allocation2 + $0xf0] sm:$0xff]  ;;  %v1952_v46 = vsel %vm5010_vm2, %v1947_v39, %v1951_v19 }
 0x17a   : > { %v2103_v1 = vpop.f32.mrf.mxu0  ;;  %v2015_v11 = vunpack.c.l.b16 %v1952_v46  ;;  %v679_v46 = vld [vmem:[#allocation2 + $0x78] sm:$0xff] }
 0x17b   : > { %v2166_v58 = vadd.f32 %v2101_v40, %v1885_v56  ;;  %v1961_v40 = vrot.slane %v1959_v34, 5  ;;  %v2505_v56 = vld [vmem:[%s4893_s5 + $0x10] sm:$0xf] }
 0x17c   : > { %v2615_v24 = vrot.slane %v2505_v56, 5 }
 0x17d   : > { %2198 = vst [vmem:[#allocation2 + $0xe8] sm:$0xff] %v2166_v58  ;;  %v1064_v5 = vpop.f32.mrf.mxu2  ;;  %v1962_v51 = vsel %vm5010_vm2, %v1957_v59, %v1961_v40  ;;  %v4507_v58 = vld [vmem:[%s4893_s5 + $0xcc] sm:$0xff]  ;;  %v2625_v59 = vrot.slane %v2509_v27, 5 }
 0x17e   : > { %v1128_v6 = vadd.f32 %v1064_v5, %v869_v63  ;;  %v2504_v5 = vld [vmem:[%s4893_s5 + $0xc] sm:$0xe]  ;;  %v2617_v41 = vrot.slane %v2615_v24, 4 }
 0x17f   : > { %v808_v8 = vpop.f32.mrf.mxu1  ;;  %v4323_v55 = vrot.slane %v2504_v5, 9  ;;  %v2511_v5 = vld [vmem:[%s4893_s5 + $0x28] sm:$0xf] }
 0x180   : > { %v1822_v33 = vpop.f32.mrf.mxu3  ;;  %v870_v35 = vadd.f32 %v808_v8, %v676_v32  ;;  %v2610_v8 = vrot.slane %v2608_v61, 4 }
 0x181   : > { %v1886_v23 = vadd.f32 %v1822_v33, %v1128_v6  ;;  %v2508_v6 = vld [vmem:[%s4893_s5 + $0x1c] sm:$0xf]  ;;  %v2506_v33 = vld [vmem:[%s4893_s5 + $0x14] sm:$0x1] }
 0x182   : > { %847 = vmatmul.bf16.gmra.mxu1 %v4762_v50  ;;  %1106 = vmatmul.bf16.gmra.mxu2 %v4506_v37  ;;  %v2106_v12 = vpop.f32.mrf.mxu0  ;;  %v2618_v32 = vrot.slane %v2506_v33, 5 }
 0x183   : > { %v2167_v25 = vadd.f32 %v2103_v1, %v1886_v23  ;;  %v2016_v1 = vunpack.c.l.b16 %v1962_v51 }
 0x185   : > { %1864 = vmatmul.bf16.gmra.mxu3 %v5239_v13  ;;  %2199 = vst [vmem:[#allocation2 + $0xb8] sm:$0xff] %v2167_v25  ;;  %v1067_v36 = vpop.f32.mrf.mxu2  ;;  %2145 = vmatmul.bf16.gmra.mxu0 %v5253_v47  ;;  %v5269_v17 = vpack.c.b16 %v2016_v1, %v2015_v11 }
 0x186   : > { %v1129_v9 = vadd.f32 %v1067_v36, %v870_v35  ;;  %v2609_v36 = vsel %vm5272_vm5, %v4322_v10, %v2608_v61 }
 0x187   : > { %v810_v50 = vpop.f32.mrf.mxu1 }
 0x188   : > { %v1825_v52 = vpop.f32.mrf.mxu3  ;;  %v871_v54 = vadd.f32 %v810_v50, %v677_v44  ;;  %v2770_v44 = vunpack.c.l.b16 %v2609_v36 }
 0x189   : > { %v1887_v42 = vadd.f32 %v1825_v52, %v1129_v9  ;;  %v2612_v52 = vsel %vm5272_vm5, %v2610_v8, %v2611_v21  ;;  %v2629_v8 = vrot.slane %v2511_v5, 5  ;;  %v2510_v21 = vld [vmem:[%s4893_s5 + $0x24] sm:$0xe] }
 0x18a   : > { %v2108_v0 = vpop.f32.mrf.mxu0 }
 0x18b   : > { %v2168_v43 = vadd.f32 %v2106_v12, %v1887_v42  ;;  %v2507_v12 = vld [vmem:[%s4893_s5 + $0x18] sm:$0xe]  ;;  %v2616_v42 = vsel %vm5272_vm5, %v4323_v55, %v2615_v24 }
 0x18c   : > { %v4324_v50 = vrot.slane %v2507_v12, 9  ;;  %v2772_v51 = vunpack.c.l.b16 %v2616_v42 }
 0x18d   : > { %2200 = vst [vmem:[#allocation2 + $0x60] sm:$0xff] %v2168_v43  ;;  %v1069_v57 = vpop.f32.mrf.mxu2  ;;  %v2619_v43 = vsel %vm5272_vm5, %v2617_v41, %v2618_v32  ;;  %v4325_v32 = vrot.slane %v2510_v21, 9 }
 0x18e   : > { %v1130_v31 = vadd.f32 %v1069_v57, %v871_v54  ;;  %v2773_v54 = vunpack.c.l.b16 %v2619_v43 }
 0x18f   : > { %v813_v2 = vpop.f32.mrf.mxu1  ;;  %v2630_v36 = vsel %vm5272_vm5, %v4325_v32, %v2629_v8 }
 0x190   : > { %v1827_v22 = vpop.f32.mrf.mxu3  ;;  %v872_v25 = vadd.f32 %v813_v2, %v678_v18  ;;  %v2803_v24 = vpack.c.b16 %v2773_v54, %v2772_v51  ;;  %v682_v51 = vld [vmem:[#allocation2 + $0x40] sm:$0xff] }
 0x191   : > { %v1888_v63 = vadd.f32 %v1827_v22, %v1130_v31 }
 0x192   : > { %852 = vmatmul.bf16.gmra.mxu1 %v4506_v37  ;;  %1111 = vmatmul.bf16.gmra.mxu2 %v4507_v58  ;;  %v2111_v23 = vpop.f32.mrf.mxu0  ;;  %v2622_v37 = vrot.slane %v2508_v6, 5 }
 0x193   : > { %v2169_v7 = vadd.f32 %v2108_v0, %v1888_v63  ;;  %v2771_v0 = vunpack.c.l.b16 %v2612_v52 }
 0x194   : > { %v2624_v39 = vrot.slane %v2622_v37, 4  ;;  %v2623_v57 = vsel %vm5272_vm5, %v4324_v50, %v2622_v37 }
 0x195   : > { %1869 = vmatmul.bf16.gmra.mxu3 %v5253_v47  ;;  %2201 = vst [vmem:[#allocation2 + $0xf0] sm:$0xff] %v2169_v7  ;;  %v1072_v29 = vpop.f32.mrf.mxu2  ;;  %2150 = vmatmul.bf16.gmra.mxu0 %v5269_v17  ;;  %v2802_v11 = vpack.c.b16 %v2771_v0, %v2770_v44  ;;  %v2774_v2 = vunpack.c.l.b16 %v2623_v57  ;;  %v680_v7 = vld [vmem:[#allocation2 + $0x38] sm:$0xff]  ;;  %v2514_v0 = vld [vmem:[%s4893_s5 + $0x34] sm:$0xf] }
 0x196   : > { %v1131_v34 = vadd.f32 %v1072_v29, %v872_v25  ;;  %v2626_v31 = vsel %vm5272_vm5, %v2624_v39, %v2625_v59 }
 0x197   : > { %v815_v9 = vpop.f32.mrf.mxu1  ;;  %v2775_v3 = vunpack.c.l.b16 %v2626_v31  ;;  %v2513_v31 = vld [vmem:[%s4893_s5 + $0x30] sm:$0xe] }
 0x198   : > { %v1830_v35 = vpop.f32.mrf.mxu3  ;;  %v873_v58 = vadd.f32 %v815_v9, %v679_v46 }
 0x199   : > { %v1889_v40 = vadd.f32 %v1830_v35, %v1131_v34  ;;  %v5293_v33 = vpack.c.b16 %v2775_v3, %v2774_v2  ;;  %v681_v34 = vld [vmem:[#allocation2 + $0x58] sm:$0xff] }
 0x19a   : > { %v2113_v56 = vpop.f32.mrf.mxu0 }
 0x19b   : > { %v2170_v45 = vadd.f32 %v2111_v23, %v1889_v40  ;;  %v2512_v23 = vld [vmem:[%s4893_s5 + $0x2c] sm:$0x1]  ;;  %v2776_v40 = vunpack.c.l.b16 %v2630_v36  ;;  %v2518_v36 = vld [vmem:[%s4893_s5 + $0x44] sm:$0x1] }
 0x19c   : > { %v2632_v12 = vrot.slane %v2512_v23, 5 }
 0x19d   : > { %2202 = vst [vmem:[#allocation2 + $0x8] sm:$0xff] %v2170_v45  ;;  %v1074_v22 = vpop.f32.mrf.mxu2 }
 0x19e   : > { %v1132_v61 = vadd.f32 %v1074_v22, %v873_v58  ;;  %v2515_v58 = vld [vmem:[%s4893_s5 + $0x38] sm:$0x1] }
 0x19f   : > { %v818_v4 = vpop.f32.mrf.mxu1  ;;  %v2639_v3 = vrot.slane %v2515_v58, 5 }
 0x1a0   : > { %v1832_v1 = vpop.f32.mrf.mxu3  ;;  %v874_v18 = vadd.f32 %v818_v4, %v680_v7 }
 0x1a1   : > { %v1890_v63 = vadd.f32 %v1832_v1, %v1132_v61 }
 0x1a2   : > { %2356 = vmatmul.bf16.vlgmr.msra.gmra.mxu1 %v5040_v28  ;;  %2890 = vmatmul.bf16.vlgmr.msra.gmra.mxu2 %v2802_v11  ;;  %v2116_v10 = vpop.f32.mrf.mxu0  ;;  %v2631_v28 = vrot.slane %v2629_v8, 4 }
 0x1a3   : > { %v2171_v6 = vadd.f32 %v2113_v56, %v1890_v63  ;;  %v2636_v56 = vrot.slane %v2514_v0, 5  ;;  %v683_v63 = vld [vmem:[#allocation2 + $0xc8] sm:$0xff] }
 0x1a4   : > { %v2633_v9 = vsel %vm5272_vm5, %v2631_v28, %v2632_v12  ;;  %v684_v12 = vld [vmem:[#allocation2 + $0xe0] sm:$0xff] }
 0x1a5   : > { %3157 = vmatmul.bf16.vlgmr.msra.gmra.mxu3 %v2803_v24  ;;  %2203 = vst [vmem:[#allocation2 + $0x78] sm:$0xff] %v2171_v6  ;;  %v1077_v55 = vpop.f32.mrf.mxu2  ;;  %3424 = vmatmul.bf16.vlgmr.msra.gmra.mxu0 %v5293_v33  ;;  %v2777_v42 = vunpack.c.l.b16 %v2633_v9  ;;  %v2638_v2 = vrot.slane %v2636_v56, 4 }
 0x1a6   : > { %v1133_v41 = vadd.f32 %v1077_v55, %v874_v18 }
 0x1a7   : > { %v820_v25 = vpop.f32.mrf.mxu1  ;;  %v5304_v46 = vpack.c.b16 %v2777_v42, %v2776_v40  ;;  %v2640_v7 = vsel %vm5272_vm5, %v2638_v2, %v2639_v3  ;;  %v686_v2 = vld [vmem:[#allocation2 + $0x70] sm:$0xff] }
 0x1a8   : > { %v1835_v37 = vpop.f32.mrf.mxu3  ;;  %v875_v52 = vadd.f32 %v820_v25, %v681_v34  ;;  %v2779_v55 = vunpack.c.l.b16 %v2640_v7  ;;  %v2517_v25 = vld [vmem:[%s4893_s5 + $0x40] sm:$0xf] }
 0x1a9   : > { %v1891_v27 = vadd.f32 %v1835_v37, %v1133_v41 }
 0x1aa   : > { %v2118_v35 = vpop.f32.mrf.mxu0 }
 0x1ab   : > { %v2172_v29 = vadd.f32 %v2116_v10, %v1891_v27 }
 0x1ad   : > { %2204 = vst [vmem:[#allocation2 + $0x38] sm:$0xff] %v2172_v29  ;;  %v1079_v50 = vpop.f32.mrf.mxu2  ;;  %v2643_v29 = vrot.slane %v2517_v25, 5 }
 0x1ae   : > { %v1134_v39 = vadd.f32 %v1079_v50, %v875_v52 }
 0x1af   : > { %v823_v43 = vpop.f32.mrf.mxu1 }
 0x1b0   : > { %v1837_v59 = vpop.f32.mrf.mxu3  ;;  %v876_v57 = vadd.f32 %v823_v43, %v682_v51  ;;  %v685_v43 = vld [vmem:[#allocation2 + $0x90] sm:$0xff] }
 0x1b1   : > { %v1892_v44 = vadd.f32 %v1837_v59, %v1134_v39  ;;  %v2646_v59 = vrot.slane %v2518_v36, 5 }
 0x1b2   : > { %2361 = vmatmul.bf16.gmra.mxu1 %v5052_v53  ;;  %2895 = vmatmul.bf16.gmra.mxu2 %v2803_v24  ;;  %v2121_v54 = vpop.f32.mrf.mxu0  ;;  %v4326_v53 = vrot.slane %v2513_v31, 9 }
 0x1b3   : > { %v2173_v45 = vadd.f32 %v2118_v35, %v1892_v44  ;;  %v2516_v35 = vld [vmem:[%s4893_s5 + $0x3c] sm:$0xe] }
 0x1b4   : > { %v2637_v6 = vsel %vm5272_vm5, %v4326_v53, %v2636_v56  ;;  %v4327_v39 = vrot.slane %v2516_v35, 9 }
 0x1b5   : > { %3162 = vmatmul.bf16.gmra.mxu3 %v5293_v33  ;;  %2205 = vst [vmem:[#allocation2 + $0x58] sm:$0xff] %v2173_v45  ;;  %v1082_v22 = vpop.f32.mrf.mxu2  ;;  %3429 = vmatmul.bf16.gmra.mxu0 %v5304_v46  ;;  %v2778_v23 = vunpack.c.l.b16 %v2637_v6 }
 0x1b6   : > { %v1135_v61 = vadd.f32 %v1082_v22, %v876_v57  ;;  %v2644_v0 = vsel %vm5272_vm5, %v4327_v39, %v2643_v29  ;;  %v688_v39 = vld [vmem:[#allocation2 + $0xa8] sm:$0xff] }
 0x1b7   : > { %v825_v1 = vpop.f32.mrf.mxu1  ;;  %v5317_v28 = vpack.c.b16 %v2779_v55, %v2778_v23  ;;  %v2780_v31 = vunpack.c.l.b16 %v2644_v0  ;;  %v687_v55 = vld [vmem:[#allocation2 + $0xc0] sm:$0xff] }
 0x1b8   : > { %v1840_v11 = vpop.f32.mrf.mxu3  ;;  %v877_v10 = vadd.f32 %v825_v1, %v683_v63  ;;  %v2519_v63 = vld [vmem:[%s4893_s5 + $0x48] sm:$0xe] }
 0x1b9   : > { %v1893_v4 = vadd.f32 %v1840_v11, %v1135_v61  ;;  %v2520_v11 = vld [vmem:[%s4893_s5 + $0x4c] sm:$0xf] }
 0x1ba   : > { %v2123_v5 = vpop.f32.mrf.mxu0 }
 0x1bb   : > { %v2174_v24 = vadd.f32 %v2121_v54, %v1893_v4  ;;  %v2650_v4 = vrot.slane %v2520_v11, 5 }
 0x1bd   : > { %2206 = vst [vmem:[#allocation2 + $0x40] sm:$0xff] %v2174_v24  ;;  %v1084_v8 = vpop.f32.mrf.mxu2 }
 0x1be   : > { %v1136_v18 = vadd.f32 %v1084_v8, %v877_v10  ;;  %v4328_v8 = vrot.slane %v2519_v63, 9 }
 0x1bf   : > { %v828_v41 = vpop.f32.mrf.mxu1 }
 0x1c0   : > { %v1842_v21 = vpop.f32.mrf.mxu3  ;;  %v878_v34 = vadd.f32 %v828_v41, %v684_v12 }
 0x1c1   : > { %v1894_v37 = vadd.f32 %v1842_v21, %v1136_v18 }
 0x1c2   : > { %2366 = vmatmul.bf16.gmra.mxu1 %v5068_v16  ;;  %2900 = vmatmul.bf16.gmra.mxu2 %v5293_v33  ;;  %v2126_v27 = vpop.f32.mrf.mxu0  ;;  %v2645_v33 = vrot.slane %v2643_v29, 4 }
 0x1c3   : > { %v2175_v32 = vadd.f32 %v2123_v5, %v1894_v37  ;;  %v2521_v5 = vld [vmem:[%s4893_s5 + $0x50] sm:$0x1]  ;;  %v2651_v37 = vsel %vm5272_vm5, %v4328_v8, %v2650_v4 }
 0x1c4   : > { %v2647_v45 = vsel %vm5272_vm5, %v2645_v33, %v2646_v59  ;;  %v2653_v18 = vrot.slane %v2521_v5, 5 }
 0x1c5   : > { %3167 = vmatmul.bf16.gmra.mxu3 %v5304_v46  ;;  %2207 = vst [vmem:[#allocation2 + $0xc8] sm:$0xff] %v2175_v32  ;;  %v1087_v9 = vpop.f32.mrf.mxu2  ;;  %3434 = vmatmul.bf16.gmra.mxu0 %v5317_v28  ;;  %v2781_v58 = vunpack.c.l.b16 %v2647_v45 }
 0x1c6   : > { %v1137_v52 = vadd.f32 %v1087_v9, %v878_v34  ;;  %v2782_v34 = vunpack.c.l.b16 %v2651_v37 }
 0x1c7   : > { %v830_v16 = vpop.f32.mrf.mxu1  ;;  %v5330_v53 = vpack.c.b16 %v2781_v58, %v2780_v31  ;;  %v689_v31 = vld [vmem:[#allocation2 + $0xd0] sm:$0xff] }
 0x1c8   : > { %v1845_v50 = vpop.f32.mrf.mxu3  ;;  %v879_v51 = vadd.f32 %v830_v16, %v685_v43  ;;  %v2524_v43 = vld [vmem:[%s4893_s5 + $0x5c] sm:$0x1] }
 0x1c9   : > { %v1895_v40 = vadd.f32 %v1845_v50, %v1137_v52  ;;  %v2523_v52 = vld [vmem:[%s4893_s5 + $0x58] sm:$0xf] }
 0x1ca   : > { %v2128_v44 = vpop.f32.mrf.mxu0  ;;  %v2657_v59 = vrot.slane %v2523_v52, 5 }
 0x1cb   : > { %v2176_v42 = vadd.f32 %v2126_v27, %v1895_v40 }
 0x1cd   : > { %2208 = vst [vmem:[#allocation2 + $0xe0] sm:$0xff] %v2176_v42  ;;  %v1089_v54 = vpop.f32.mrf.mxu2  ;;  %v2522_v42 = vld [vmem:[%s4893_s5 + $0x54] sm:$0xe] }
 0x1ce   : > { %v1138_v56 = vadd.f32 %v1089_v54, %v879_v51  ;;  %v4329_v51 = vrot.slane %v2522_v42, 9  ;;  %v2660_v54 = vrot.slane %v2524_v43, 5  ;;  %v2529_v43 = vld [vmem:[%s4893_s5 + $0x70] sm:$0xf] }
 0x1cf   : > { %v833_v22 = vpop.f32.mrf.mxu1 }
 0x1d0   : > { %v1847_v57 = vpop.f32.mrf.mxu3  ;;  %v880_v24 = vadd.f32 %v833_v22, %v686_v2  ;;  %v2658_v22 = vsel %vm5272_vm5, %v4329_v51, %v2657_v59  ;;  %v2671_v51 = vrot.slane %v2529_v43, 5 }
 0x1d1   : > { %v1896_v61 = vadd.f32 %v1847_v57, %v1138_v56 }
 0x1d2   : > { %2371 = vmatmul.bf16.gmra.mxu1 %v5082_v48  ;;  %2905 = vmatmul.bf16.gmra.mxu2 %v5304_v46  ;;  %v2131_v3 = vpop.f32.mrf.mxu0  ;;  %v2652_v46 = vrot.slane %v2650_v4, 4  ;;  %v2784_v4 = vunpack.c.l.b16 %v2658_v22 }
 0x1d3   : > { %v2177_v1 = vadd.f32 %v2128_v44, %v1896_v61 }
 0x1d4   : > { %v2654_v25 = vsel %vm5272_vm5, %v2652_v46, %v2653_v18 }
 0x1d5   : > { %3172 = vmatmul.bf16.gmra.mxu3 %v5317_v28  ;;  %2209 = vst [vmem:[#allocation2 + $0x90] sm:$0xff] %v2177_v1  ;;  %v1092_v6 = vpop.f32.mrf.mxu2  ;;  %3439 = vmatmul.bf16.gmra.mxu0 %v5330_v53  ;;  %v2783_v35 = vunpack.c.l.b16 %v2654_v25 }
 0x1d6   : > { %v1139_v7 = vadd.f32 %v1092_v6, %v880_v24  ;;  %v2526_v6 = vld [vmem:[%s4893_s5 + $0x64] sm:$0xf] }
 0x1d7   : > { %v835_v48 = vpop.f32.mrf.mxu1  ;;  %v5343_v16 = vpack.c.b16 %v2783_v35, %v2782_v34  ;;  %v2664_v46 = vrot.slane %v2526_v6, 5 }
 0x1d8   : > { %v1850_v10 = vpop.f32.mrf.mxu3  ;;  %v881_v32 = vadd.f32 %v835_v48, %v687_v55  ;;  %v690_v48 = vld [vmem:[#allocation2 + $0x10] sm:$0xff] }
 0x1d9   : > { %v1897_v21 = vadd.f32 %v1850_v10, %v1139_v7 }
 0x1da   : > { %v2133_v41 = vpop.f32.mrf.mxu0 }
 0x1db   : > { %v2178_v23 = vadd.f32 %v2131_v3, %v1897_v21  ;;  %v2525_v21 = vld [vmem:[%s4893_s5 + $0x60] sm:$0xe] }
 0x1dc   : > { %v4330_v25 = vrot.slane %v2525_v21, 9  ;;  %v2532_v21 = vld [vmem:[%s4893_s5 + $0x7c] sm:$0xf] }
 0x1dd   : > { %2210 = vst [vmem:[#allocation2 + $0x70] sm:$0xff] %v2178_v23  ;;  %v1094_v12 = vpop.f32.mrf.mxu2  ;;  %v2527_v23 = vld [vmem:[%s4893_s5 + $0x68] sm:$0x1] }
 0x1de   : > { %v1140_v27 = vadd.f32 %v1094_v12, %v881_v32  ;;  %v2667_v32 = vrot.slane %v2527_v23, 5  ;;  %v2665_v35 = vsel %vm5272_vm5, %v4330_v25, %v2664_v46 }
 0x1df   : > { %v838_v36 = vpop.f32.mrf.mxu1 }
 0x1e0   : > { %v1852_v29 = vpop.f32.mrf.mxu3  ;;  %v882_v40 = vadd.f32 %v838_v36, %v688_v39 }
 0x1e1   : > { %v1898_v9 = vadd.f32 %v1852_v29, %v1140_v27  ;;  %v691_v29 = vld [vmem:[#allocation2 + $0x28] sm:$0xff] }
 0x1e2   : > { %2376 = vmatmul.bf16.gmra.mxu1 %v5102_v38  ;;  %2910 = vmatmul.bf16.gmra.mxu2 %v5317_v28  ;;  %v2136_v33 = vpop.f32.mrf.mxu0  ;;  %v2659_v28 = vrot.slane %v2657_v59, 4 }
 0x1e3   : > { %v2179_v50 = vadd.f32 %v2133_v41, %v1898_v9 }
 0x1e4   : > { %v2661_v61 = vsel %vm5272_vm5, %v2659_v28, %v2660_v54  ;;  %v2528_v54 = vld [vmem:[%s4893_s5 + $0x6c] sm:$0xe] }
 0x1e5   : > { %3177 = vmatmul.bf16.gmra.mxu3 %v5330_v53  ;;  %2211 = vst [vmem:[#allocation2 + $0xc0] sm:$0xff] %v2179_v50  ;;  %v1097_v44 = vpop.f32.mrf.mxu2  ;;  %3444 = vmatmul.bf16.gmra.mxu0 %v5343_v16  ;;  %v2785_v24 = vunpack.c.l.b16 %v2661_v61  ;;  %v4331_v22 = vrot.slane %v2528_v54, 9 }
 0x1e6   : > { %v1141_v0 = vadd.f32 %v1097_v44, %v882_v40 }
 0x1e7   : > { %v840_v38 = vpop.f32.mrf.mxu1  ;;  %v5356_v10 = vpack.c.b16 %v2785_v24, %v2784_v4  ;;  %v2672_v4 = vsel %vm5272_vm5, %v4331_v22, %v2671_v51  ;;  %v2534_v22 = vld [vmem:[%s4893_s5 + $0x84] sm:$0xe] }
 0x1e8   : > { %v1855_v45 = vpop.f32.mrf.mxu3  ;;  %v883_v11 = vadd.f32 %v840_v38, %v689_v31 }
 0x1e9   : > { %v1899_v56 = vadd.f32 %v1855_v45, %v1141_v0  ;;  %v692_v45 = vld [vmem:[#allocation2 + $0xa0] sm:$0xff] }
 0x1ea   : > { %v2138_v58 = vpop.f32.mrf.mxu0 }
 0x1eb   : > { %v2180_v57 = vadd.f32 %v2136_v33, %v1899_v56  ;;  %v2786_v33 = vunpack.c.l.b16 %v2665_v35  ;;  %v2530_v56 = vld [vmem:[%s4893_s5 + $0x74] sm:$0x1] }
 0x1ec   : > { %v2674_v61 = vrot.slane %v2530_v56, 5 }
 0x1ed   : > { %2212 = vst [vmem:[#allocation2 + $0xa8] sm:$0xff] %v2180_v57  ;;  %v1099_v1 = vpop.f32.mrf.mxu2 }
 0x1ee   : > { %v1142_v2 = vadd.f32 %v1099_v1, %v883_v11 }
 0x1ef   : > { %v843_v63 = vpop.f32.mrf.mxu1 }
 0x1f0   : > { %v1857_v3 = vpop.f32.mrf.mxu3  ;;  %v884_v18 = vadd.f32 %v843_v63, %v690_v48  ;;  %v2788_v48 = vunpack.c.l.b16 %v2672_v4 }
 0x1f1   : > { %v1900_v5 = vadd.f32 %v1857_v3, %v1142_v2  ;;  %v693_v2 = vld [vmem:[#allocation2 + $0xf8] sm:$0xff] }
 0x1f2   : > { %2381 = vmatmul.bf16.gmra.mxu1 %v5121_v26  ;;  %2915 = vmatmul.bf16.gmra.mxu2 %v5330_v53  ;;  %v2141_v8 = vpop.f32.mrf.mxu0  ;;  %v2666_v53 = vrot.slane %v2664_v46, 4 }
 0x1f3   : > { %v2181_v7 = vadd.f32 %v2138_v58, %v1900_v5 }
 0x1f4   : > { %v2668_v36 = vsel %vm5272_vm5, %v2666_v53, %v2667_v32  ;;  %v2531_v53 = vld [vmem:[%s4893_s5 + $0x78] sm:$0xe]  ;;  %v2533_v32 = vld [vmem:[%s4893_s5 + $0x80] sm:$0x1] }
 0x1f5   : > { %3182 = vmatmul.bf16.gmra.mxu3 %v5343_v16  ;;  %2213 = vst [vmem:[#allocation2 + $0xd0] sm:$0xff] %v2181_v7  ;;  %v1102_v55 = vpop.f32.mrf.mxu2  ;;  %3449 = vmatmul.bf16.gmra.mxu0 %v5356_v10  ;;  %v2787_v59 = vunpack.c.l.b16 %v2668_v36  ;;  %v2681_v35 = vrot.slane %v2533_v32, 5  ;;  %v2247_v32 = vld [vmem:[#allocation2 + $0xd8] sm:$0xff] }
 0x1f6   : > { %v1143_v41 = vadd.f32 %v1102_v55, %v884_v18 }
 0x1f7   : > { %v845_v26 = vpop.f32.mrf.mxu1  ;;  %v5369_v0 = vpack.c.b16 %v2787_v59, %v2786_v33 }
 0x1f8   : > { %v1860_v37 = vpop.f32.mrf.mxu3  ;;  %v885_v9 = vadd.f32 %v845_v26, %v691_v29  ;;  %v2678_v26 = vrot.slane %v2532_v21, 5 }
 0x1f9   : > { %v1901_v12 = vadd.f32 %v1860_v37, %v1143_v41  ;;  %v694_v41 = vld [vmem:[#allocation2 + $0x20] sm:$0xff] }
 0x1fa   : > { %v2143_v34 = vpop.f32.mrf.mxu0 }
 0x1fb   : > { %v2182_v27 = vadd.f32 %v2141_v8, %v1901_v12 }
 0x1fd   : > { %2214 = vst [vmem:[#allocation2 + $0x10] sm:$0xff] %v2182_v27  ;;  %v1104_v52 = vpop.f32.mrf.mxu2 }
 0x1fe   : > { %v1144_v50 = vadd.f32 %v1104_v52, %v885_v9  ;;  %v695_v52 = vld [vmem:[#allocation2 + $0x98] sm:$0xff] }
 0x1ff   : > { %v848_v40 = vpop.f32.mrf.mxu1 }
 0x200   : > { %v1862_v39 = vpop.f32.mrf.mxu3  ;;  %v886_v28 = vadd.f32 %v848_v40, %v692_v45 }
 0x201   : > { %v1902_v42 = vadd.f32 %v1862_v39, %v1144_v50 }
 0x202   : > { %2386 = vmatmul.bf16.gmra.mxu1 %v5141_v20  ;;  %2920 = vmatmul.bf16.gmra.mxu2 %v5343_v16  ;;  %v2146_v38 = vpop.f32.mrf.mxu0  ;;  %v2673_v16 = vrot.slane %v2671_v51, 4 }
 0x203   : > { %v2183_v44 = vadd.f32 %v2143_v34, %v1902_v42  ;;  %v4332_v34 = vrot.slane %v2531_v53, 9 }
 0x204   : > { %v2675_v24 = vsel %vm5272_vm5, %v2673_v16, %v2674_v61  ;;  %v2536_v16 = vld [vmem:[%s4893_s5 + $0x8c] sm:$0x1] }
 0x205   : > { %3187 = vmatmul.bf16.gmra.mxu3 %v5356_v10  ;;  %2215 = vst [vmem:[#allocation2 + $0x28] sm:$0xff] %v2183_v44  ;;  %v1107_v57 = vpop.f32.mrf.mxu2  ;;  %3454 = vmatmul.bf16.gmra.mxu0 %v5369_v0  ;;  %v2789_v8 = vunpack.c.l.b16 %v2675_v24  ;;  %v2679_v39 = vsel %vm5272_vm5, %v4332_v34, %v2678_v26  ;;  %v2539_v34 = vld [vmem:[%s4893_s5 + $0x98] sm:$0x1] }
 0x206   : > { %v1145_v31 = vadd.f32 %v1107_v57, %v886_v28  ;;  %v2790_v44 = vunpack.c.l.b16 %v2679_v39  ;;  %v2535_v28 = vld [vmem:[%s4893_s5 + $0x88] sm:$0xf]  ;;  %v2245_v57 = vld [vmem:[#allocation2 + $0xb0] sm:$0xff] }
 0x207   : > { %v850_v20 = vpop.f32.mrf.mxu1  ;;  %v5382_v55 = vpack.c.b16 %v2789_v8, %v2788_v48 }
 0x208   : > { %v1865_v58 = vpop.f32.mrf.mxu3  ;;  %v887_v63 = vadd.f32 %v850_v20, %v693_v2  ;;  %v4333_v2 = vrot.slane %v2534_v22, 9  ;;  %v2249_v22 = vld [vmem:[#allocation2 + $0x50] sm:$0xff] }
 0x209   : > { %v1903_v11 = vadd.f32 %v1865_v58, %v1145_v31  ;;  %v2685_v58 = vrot.slane %v2535_v28, 5 }
 0x20a   : > { %v2148_v3 = vpop.f32.mrf.mxu0 }
 0x20b   : > { %v2184_v1 = vadd.f32 %v2146_v38, %v1903_v11 }
 0x20d   : > { %2216 = vst [vmem:[#allocation2 + $0xa0] sm:$0xff] %v2184_v1  ;;  %v1109_v5 = vpop.f32.mrf.mxu2 }
 0x20e   : > { %v1146_v6 = vadd.f32 %v1109_v5, %v887_v63  ;;  %v2246_v63 = vld [vmem:[#allocation2] sm:$0xff] }
 0x20f   : > { %v853_v46 = vpop.f32.mrf.mxu1 }
 0x210   : > { %v1867_v7 = vpop.f32.mrf.mxu3  ;;  %v888_v25 = vadd.f32 %v853_v46, %v694_v41 }
 0x211   : > { %v1904_v18 = vadd.f32 %v1867_v7, %v1146_v6  ;;  %v2686_v6 = vsel %vm5272_vm5, %v4333_v2, %v2685_v58 }
 0x212   : > { %2391 = vmatmul.bf16.gmra.mxu1 %v5160_v14  ;;  %2925 = vmatmul.bf16.gmra.mxu2 %v5356_v10  ;;  %v2151_v37 = vpop.f32.mrf.mxu0  ;;  %v2680_v10 = vrot.slane %v2678_v26, 4  ;;  %v2792_v21 = vunpack.c.l.b16 %v2686_v6  ;;  %v2538_v26 = vld [vmem:[%s4893_s5 + $0x94] sm:$0xf]  ;;  %v2250_v6 = vld [vmem:[#allocation2 + $0x68] sm:$0xff] }
 0x213   : > { %v2185_v23 = vadd.f32 %v2148_v3, %v1904_v18  ;;  %v2688_v3 = vrot.slane %v2536_v16, 5 }
 0x214   : > { %v2682_v33 = vsel %vm5272_vm5, %v2680_v10, %v2681_v35 }
 0x215   : > { %3192 = vmatmul.bf16.gmra.mxu3 %v5369_v0  ;;  %2217 = vst [vmem:[#allocation2 + $0xf8] sm:$0xff] %v2185_v23  ;;  %v1112_v12 = vpop.f32.mrf.mxu2  ;;  %3459 = vmatmul.bf16.gmra.mxu0 %v5382_v55  ;;  %v2791_v45 = vunpack.c.l.b16 %v2682_v33  ;;  %v2248_v33 = vld [vmem:[#allocation2 + $0x18] sm:$0xff] }
 0x216   : > { %v1147_v27 = vadd.f32 %v1112_v12, %v888_v25 }
 0x217   : > { %v855_v14 = vpop.f32.mrf.mxu1  ;;  %v5395_v56 = vpack.c.b16 %v2791_v45, %v2790_v44 }
 0x218   : > { %v1870_v29 = vpop.f32.mrf.mxu3  ;;  %v889_v59 = vadd.f32 %v855_v14, %v695_v52  ;;  %v2537_v14 = vld [vmem:[%s4893_s5 + $0x90] sm:$0xe]  ;;  %v2695_v52 = vrot.slane %v2539_v34, 5 }
 0x219   : > { %v1905_v36 = vadd.f32 %v1870_v29, %v1147_v27  ;;  %v2692_v27 = vrot.slane %v2538_v26, 5 }
 0x21a   : > { %v2153_v50 = vpop.f32.mrf.mxu0 }
 0x21b   : > { %v2186_v9 = vadd.f32 %v2151_v37, %v1905_v36 }
 0x21d   : > { %2218 = vst [vmem:[#allocation2 + $0x20] sm:$0xff] %v2186_v9  ;;  %v1114_v40 = vpop.f32.mrf.mxu2  ;;  %v4334_v9 = vrot.slane %v2537_v14, 9 }
 0x21e   : > { %v1148_v42 = vadd.f32 %v1114_v40, %v889_v59 }
 0x21f   : > { %v2357_v38 = vpop.f32.mrf.mxu1  ;;  %v2693_v40 = vsel %vm5272_vm5, %v4334_v9, %v2692_v27 }
 0x220   : > { %v1872_v43 = vpop.f32.mrf.mxu3  ;;  %v2437_v20 = vadd.f32 %v2357_v38, %v2245_v57 }
 0x221   : > { %v1906_v51 = vadd.f32 %v1872_v43, %v1148_v42 }
 0x222   : > { %2396 = vmatmul.bf16.gmra.mxu1 %v5178_v15  ;;  %2930 = vmatmul.bf16.gmra.mxu2 %v5369_v0  ;;  %v3425_v31 = vpop.f32.mrf.mxu0  ;;  %v2687_v0 = vrot.slane %v2685_v58, 4 }
 0x223   : > { %v2187_v54 = vadd.f32 %v2153_v50, %v1906_v51  ;;  %v2794_v51 = vunpack.c.l.b16 %v2693_v40 }
 0x224   : > { %v2689_v7 = vsel %vm5272_vm5, %v2687_v0, %v2688_v3 }
 0x225   : > { %3197 = vmatmul.bf16.gmra.mxu3 %v5382_v55  ;;  %2219 = vst [vmem:[#allocation2 + $0x98] sm:$0xff] %v2187_v54  ;;  %v2891_v61 = vpop.f32.mrf.mxu2  ;;  %3464 = vmatmul.bf16.gmra.mxu0 %v5395_v56  ;;  %v2793_v23 = vunpack.c.l.b16 %v2689_v7 }
 0x226   : > { %v2971_v11 = vadd.f32 %v2891_v61, %v2437_v20 }
 0x227   : > { %v2359_v15 = vpop.f32.mrf.mxu1  ;;  %v5408_v53 = vpack.c.b16 %v2793_v23, %v2792_v21 }
 0x228   : > { %v3158_v1 = vpop.f32.mrf.mxu3  ;;  %v2438_v48 = vadd.f32 %v2359_v15, %v2246_v63  ;;  %v2542_v15 = vld [vmem:[%s4893_s5 + $0xa4] sm:$0x1] }
 0x229   : > { %v3238_v4 = vadd.f32 %v3158_v1, %v2971_v11  ;;  %v2540_v1 = vld [vmem:[%s4893_s5 + $0x9c] sm:$0xe] }
 0x22a   : > { %v3427_v5 = vpop.f32.mrf.mxu0 }
 0x22b   : > { %v3505_v24 = vadd.f32 %v3425_v31, %v3238_v4  ;;  %v2541_v31 = vld [vmem:[%s4893_s5 + $0xa0] sm:$0xf]  ;;  %v4335_v4 = vrot.slane %v2540_v1, 9 }
 0x22c   : > { %v2699_v61 = vrot.slane %v2541_v31, 5 }
 0x22d   : > { %3537 = vst [vmem:[#allocation2 + $0xb0] sm:$0xff] %v3505_v24  ;;  %v2893_v8 = vpop.f32.mrf.mxu2  ;;  %v2702_v24 = vrot.slane %v2542_v15, 5 }
 0x22e   : > { %v2972_v46 = vadd.f32 %v2893_v8, %v2438_v48  ;;  %v2700_v48 = vsel %vm5272_vm5, %v4335_v4, %v2699_v61 }
 0x22f   : > { %v2362_v41 = vpop.f32.mrf.mxu1 }
 0x230   : > { %v3160_v18 = vpop.f32.mrf.mxu3  ;;  %v2439_v29 = vadd.f32 %v2362_v41, %v2247_v32  ;;  %v2796_v41 = vunpack.c.l.b16 %v2700_v48  ;;  %v2544_v32 = vld [vmem:[%s4893_s5 + $0xac] sm:$0xf] }
 0x231   : > { %v3239_v37 = vadd.f32 %v3160_v18, %v2972_v46  ;;  %v2706_v34 = vrot.slane %v2544_v32, 5  ;;  %v2550_v32 = vld [vmem:[%s4893_s5 + $0xc4] sm:$0xf] }
 0x232   : > { %2401 = vmatmul.bf16.gmra.mxu1 %v5192_v62  ;;  %2935 = vmatmul.bf16.gmra.mxu2 %v5382_v55  ;;  %v3430_v12 = vpop.f32.mrf.mxu0  ;;  %v2694_v55 = vrot.slane %v2692_v27, 4 }
 0x233   : > { %v3506_v25 = vadd.f32 %v3427_v5, %v3239_v37 }
 0x234   : > { %v2696_v42 = vsel %vm5272_vm5, %v2694_v55, %v2695_v52 }
 0x235   : > { %3202 = vmatmul.bf16.gmra.mxu3 %v5395_v56  ;;  %3538 = vst [vmem:[#allocation2] sm:$0xff] %v3506_v25  ;;  %v2896_v10 = vpop.f32.mrf.mxu2  ;;  %3469 = vmatmul.bf16.gmra.mxu0 %v5408_v53  ;;  %v2795_v28 = vunpack.c.l.b16 %v2696_v42 }
 0x236   : > { %v2973_v35 = vadd.f32 %v2896_v10, %v2439_v29  ;;  %v2251_v29 = vld [vmem:[#allocation2 + $0x30] sm:$0xff] }
 0x237   : > { %v2364_v62 = vpop.f32.mrf.mxu1  ;;  %v5421_v20 = vpack.c.b16 %v2795_v28, %v2794_v51 }
 0x238   : > { %v3163_v36 = vpop.f32.mrf.mxu3  ;;  %v2440_v43 = vadd.f32 %v2364_v62, %v2248_v33 }
 0x239   : > { %v3240_v50 = vadd.f32 %v3163_v36, %v2973_v35  ;;  %v2543_v35 = vld [vmem:[%s4893_s5 + $0xa8] sm:$0xe]  ;;  %v2545_v36 = vld [vmem:[%s4893_s5 + $0xb0] sm:$0x1] }
 0x23a   : > { %v3432_v59 = vpop.f32.mrf.mxu0  ;;  %v4336_v52 = vrot.slane %v2543_v35, 9  ;;  %v2549_v35 = vld [vmem:[%s4893_s5 + $0xc0] sm:$0xe] }
 0x23b   : > { %v3507_v39 = vadd.f32 %v3430_v12, %v3240_v50  ;;  %v2709_v50 = vrot.slane %v2545_v36, 5  ;;  %v3040_v36 = vrot.slane %v2550_v32, 5 }
 0x23c   : > { %v2707_v42 = vsel %vm5272_vm5, %v4336_v52, %v2706_v34 }
 0x23d   : > { %3539 = vst [vmem:[#allocation2 + $0xd8] sm:$0xff] %v3507_v39  ;;  %v2898_v44 = vpop.f32.mrf.mxu2  ;;  %v2798_v28 = vunpack.c.l.b16 %v2707_v42 }
 0x23e   : > { %v2974_v45 = vadd.f32 %v2898_v44, %v2440_v43 }
 0x23f   : > { %v2367_v54 = vpop.f32.mrf.mxu1 }
 0x240   : > { %v3165_v38 = vpop.f32.mrf.mxu3  ;;  %v2441_v11 = vadd.f32 %v2367_v54, %v2249_v22 }
 0x241   : > { %v3241_v57 = vadd.f32 %v3165_v38, %v2974_v45 }
 0x242   : > { %2406 = vmatmul.bf16.gmra.mxu1 %v5211_v60  ;;  %2940 = vmatmul.bf16.gmra.mxu2 %v5395_v56  ;;  %v3435_v16 = vpop.f32.mrf.mxu0  ;;  %v2701_v56 = vrot.slane %v2699_v61, 4  ;;  %v2253_v61 = vld [vmem:[#allocation2 + $0x80] sm:$0xff] }
 0x243   : > { %v3508_v58 = vadd.f32 %v3432_v59, %v3241_v57  ;;  %v2252_v59 = vld [vmem:[#allocation2 + $0x48] sm:$0xff] }
 0x244   : > { %v2703_v8 = vsel %vm5272_vm5, %v2701_v56, %v2702_v24 }
 0x245   : > { %3207 = vmatmul.bf16.gmra.mxu3 %v5408_v53  ;;  %3540 = vst [vmem:[#allocation2 + $0x18] sm:$0xff] %v3508_v58  ;;  %v2901_v2 = vpop.f32.mrf.mxu2  ;;  %3474 = vmatmul.bf16.gmra.mxu0 %v5421_v20  ;;  %v2797_v37 = vunpack.c.l.b16 %v2703_v8  ;;  %v2547_v58 = vld [vmem:[%s4893_s5 + $0xb8] sm:$0xf] }
 0x246   : > { %v2975_v0 = vadd.f32 %v2901_v2, %v2441_v11  ;;  %v2713_v1 = vrot.slane %v2547_v58, 5  ;;  %v2546_v2 = vld [vmem:[%s4893_s5 + $0xb4] sm:$0xe] }
 0x247   : > { %v2369_v60 = vpop.f32.mrf.mxu1  ;;  %v5434_v27 = vpack.c.b16 %v2797_v37, %v2796_v41  ;;  %v4337_v56 = vrot.slane %v2546_v2, 9 }
 0x248   : > { %v3168_v3 = vpop.f32.mrf.mxu3  ;;  %v2442_v46 = vadd.f32 %v2369_v60, %v2250_v6  ;;  %v2254_v6 = vld [vmem:[#allocation2 + $0x88] sm:$0xff] }
 0x249   : > { %v3242_v63 = vadd.f32 %v3168_v3, %v2975_v0  ;;  %v2548_v0 = vld [vmem:[%s4893_s5 + $0xbc] sm:$0x1]  ;;  %v2714_v48 = vsel %vm5272_vm5, %v4337_v56, %v2713_v1 }
 0x24a   : > { %v3437_v7 = vpop.f32.mrf.mxu0  ;;  %v2716_v24 = vrot.slane %v2548_v0, 5  ;;  %v2800_v41 = vunpack.c.l.b16 %v2714_v48 }
 0x24b   : > { %v3509_v5 = vadd.f32 %v3435_v16, %v3242_v63 }
 0x24d   : > { %3541 = vst [vmem:[#allocation2 + $0x50] sm:$0xff] %v3509_v5  ;;  %v2903_v18 = vpop.f32.mrf.mxu2 }
 0x24e   : > { %v2976_v21 = vadd.f32 %v2903_v18, %v2442_v46 }
 0x24f   : > { %v2372_v26 = vpop.f32.mrf.mxu1 }
 0x250   : > { %v3170_v23 = vpop.f32.mrf.mxu3  ;;  %v2443_v10 = vadd.f32 %v2372_v26, %v2251_v29 }
 0x251   : > { %v3243_v25 = vadd.f32 %v3170_v23, %v2976_v21 }
 0x252   : > { %2411 = vmatmul.bf16.gmra.mxu1 %v5225_v49  ;;  %2945 = vmatmul.bf16.gmra.mxu2 %v5408_v53  ;;  %v3440_v14 = vpop.f32.mrf.mxu0  ;;  %v2708_v53 = vrot.slane %v2706_v34, 4 }
 0x253   : > { %v3510_v12 = vadd.f32 %v3437_v7, %v3243_v25 }
 0x254   : > { %v2710_v43 = vsel %vm5272_vm5, %v2708_v53, %v2709_v50  ;;  %v4387_v50 = vrot.slane %v2549_v35, 9 }
 0x255   : > { %3212 = vmatmul.bf16.gmra.mxu3 %v5421_v20  ;;  %3542 = vst [vmem:[#allocation2 + $0x68] sm:$0xff] %v3510_v12  ;;  %v2906_v62 = vpop.f32.mrf.mxu2  ;;  %3479 = vmatmul.bf16.gmra.mxu0 %v5434_v27  ;;  %v2799_v54 = vunpack.c.l.b16 %v2710_v43 }
 0x256   : > { %v2977_v9 = vadd.f32 %v2906_v62, %v2443_v10  ;;  %v1232_v10 = vld [vmem:[%s4893_s5 + $0xcc] sm:$0xf] }
 0x257   : > { %v2374_v49 = vpop.f32.mrf.mxu1  ;;  %v5447_v16 = vpack.c.b16 %v2799_v54, %v2798_v28 }
 0x258   : > { %v3173_v55 = vpop.f32.mrf.mxu3  ;;  %v2444_v44 = vadd.f32 %v2374_v49, %v2252_v59 }
 0x259   : > { %v3244_v39 = vadd.f32 %v3173_v55, %v2977_v9  ;;  %v1233_v9 = vld [vmem:[%s4893_s5 + $0xd0] sm:$0xf]  ;;  %v2551_v55 = vld [vmem:[%s4893_s5 + $0xc8] sm:$0x1] }
 0x25a   : > { %v3442_v40 = vpop.f32.mrf.mxu0  ;;  %v2234_v59 = vshrl.u32 %v1233_v9, 16  ;;  %v3043_v42 = vrot.slane %v2551_v55, 5 }
 0x25b   : > { %v3511_v33 = vadd.f32 %v3440_v14, %v3244_v39  ;;  %v2255_v14 = vld [vmem:[#allocation2 + $0xe8] sm:$0xff] }
 0x25d   : > { %3543 = vst [vmem:[#allocation2 + $0x30] sm:$0xff] %v3511_v33  ;;  %v2908_v45 = vpop.f32.mrf.mxu2  ;;  %v2230_v33 = vshll.u32 %v1233_v9, 16 }
 0x25e   : > { %v2978_v38 = vadd.f32 %v2908_v45, %v2444_v44 }
 0x25f   : > { %v2377_v57 = vpop.f32.mrf.mxu1  ;;  %v2232_v54 = vrot.slane %v2230_v33, 5 }
 0x260   : > { %v3175_v51 = vpop.f32.mrf.mxu3  ;;  %v2445_v15 = vadd.f32 %v2377_v57, %v2253_v61  ;;  %v2236_v57 = vrot.slane %v2234_v59, 4  ;;  %v1234_v61 = vld [vmem:[%s4893_s5 + $0xd4] sm:$0x1] }
 0x261   : > { %v3245_v31 = vadd.f32 %v3175_v51, %v2978_v38  ;;  %v2256_v51 = vld [vmem:[#allocation2 + $0xb8] sm:$0xff] }
 0x262   : > { %2416 = vmatmul.bf16.gmra.mxu1 %v5239_v13  ;;  %2950 = vmatmul.bf16.gmra.mxu2 %v5421_v20  ;;  %v3445_v11 = vpop.f32.mrf.mxu0  ;;  %v2715_v20 = vrot.slane %v2713_v1, 4 }
 0x263   : > { %v3512_v22 = vadd.f32 %v3442_v40, %v3245_v31  ;;  %v3042_v40 = vrot.slane %v3040_v36, 4  ;;  %v3041_v31 = vsel %vm5272_vm5, %v4387_v50, %v3040_v36 }
 0x264   : > { %v2717_v8 = vsel %vm5272_vm5, %v2715_v20, %v2716_v24  ;;  %v3097_v0 = vunpack.c.l.b16 %v3041_v31  ;;  %v2553_v20 = vld [vmem:[%s4893_s5 + $0xd0] sm:$0xf]  ;;  %v2260_v31 = vld [vmem:[#allocation2 + $0x78] sm:$0xff] }
 0x265   : > { %3217 = vmatmul.bf16.gmra.mxu3 %v5434_v27  ;;  %3544 = vst [vmem:[#allocation2 + $0x48] sm:$0xff] %v3512_v22  ;;  %v2911_v3 = vpop.f32.mrf.mxu2  ;;  %3484 = vmatmul.bf16.gmra.mxu0 %v5447_v16  ;;  %v2801_v37 = vunpack.c.l.b16 %v2717_v8  ;;  %v3044_v58 = vsel %vm5272_vm5, %v3042_v40, %v3043_v42 }
 0x266   : > { %v2979_v60 = vadd.f32 %v2911_v3, %v2445_v15  ;;  %v3098_v3 = vunpack.c.l.b16 %v3044_v58 }
 0x267   : > { %v2379_v13 = vpop.f32.mrf.mxu1  ;;  %v5460_v29 = vpack.c.b16 %v2801_v37, %v2800_v41 }
 0x268   : > { %v3178_v4 = vpop.f32.mrf.mxu3  ;;  %v2446_v46 = vadd.f32 %v2379_v13, %v2254_v6  ;;  %v2240_v13 = vshll.u32 %v1234_v61, 16  ;;  %v2257_v6 = vld [vmem:[#allocation2 + $0x60] sm:$0xff] }
 0x269   : > { %v3246_v63 = vadd.f32 %v3178_v4, %v2979_v60  ;;  %v2237_v4 = vor.u32 %v2236_v57, %v2232_v54 }
 0x26a   : > { %v3447_v7 = vpop.f32.mrf.mxu0  ;;  %v2242_v48 = vrot.slane %v2240_v13, 5 }
 0x26b   : > { %v3513_v5 = vadd.f32 %v3445_v11, %v3246_v63 }
 0x26d   : > { %3545 = vst [vmem:[#allocation2 + $0x80] sm:$0xff] %v3513_v5  ;;  %v2913_v18 = vpop.f32.mrf.mxu2  ;;  %v3099_v5 = vpack.c.b16 %v3098_v3, %v3097_v0  ;;  %v2261_v0 = vld [vmem:[#allocation2 + $0x38] sm:$0xff] }
 0x26e   : > { %v2980_v21 = vadd.f32 %v2913_v18, %v2446_v46  ;;  %v3307_v46 = vrot.slane %v2553_v20, 5 }
 0x26f   : > { %v2382_v26 = vpop.f32.mrf.mxu1 }
 0x270   : > { %v3180_v23 = vpop.f32.mrf.mxu3  ;;  %v2447_v62 = vadd.f32 %v2382_v26, %v2255_v14 }
 0x271   : > { %v3247_v25 = vadd.f32 %v3180_v23, %v2980_v21  ;;  %v2552_v21 = vld [vmem:[%s4893_s5 + $0xcc] sm:$0xe]  ;;  %v2554_v23 = vld [vmem:[%s4893_s5 + $0xd4] sm:$0x1] }
 0x272   : > { %2421 = vmatmul.bf16.gmra.mxu1 %v5253_v47  ;;  %2955 = vmatmul.bf16.gmra.mxu2 %v5434_v27  ;;  %v3450_v34 = vpop.f32.mrf.mxu0  ;;  %v2221_v47 = vshrl.u32 %v1232_v10, 16  ;;  %v2224_v27 = vshll.u32 %v1232_v10, 16  ;;  %v4437_v32 = vrot.slane %v2552_v21, 9  ;;  %v3310_v14 = vrot.slane %v2554_v23, 5 }
 0x273   : > { %v3514_v12 = vadd.f32 %v3447_v7, %v3247_v25  ;;  %v2238_v7 = vrot.slane %v2237_v4, 4 }
 0x274   : > { %v2223_v45 = vrot.slane %v2221_v47, 4  ;;  %v2226_v38 = vrot.slane %v2224_v27, 5  ;;  %v3308_v55 = vsel %vm5272_vm5, %v4437_v32, %v3307_v46 }
 0x275   : > { %3222 = vmatmul.bf16.gmra.mxu3 %v5447_v16  ;;  %3546 = vst [vmem:[#allocation2 + $0x88] sm:$0xff] %v3514_v12  ;;  %v2916_v49 = vpop.f32.mrf.mxu2  ;;  %3489 = vmatmul.bf16.gmra.mxu0 %v5460_v29  ;;  %v2243_v25 = vsel %vm5010_vm2, %v2238_v7, %v2242_v48  ;;  %v3309_v12 = vrot.slane %v3307_v46, 4  ;;  %v3364_v50 = vunpack.c.l.b16 %v3308_v55 }
 0x276   : > { %v2981_v52 = vadd.f32 %v2916_v49, %v2447_v62  ;;  %v2227_v2 = vor.u32 %v2226_v38, %v2223_v45  ;;  %v2297_v35 = vunpack.c.l.b16 %v2243_v25  ;;  %v2258_v62 = vld [vmem:[#allocation2 + $0xf0] sm:$0xff] }
 0x277   : > { %v2384_v39 = vpop.f32.mrf.mxu1  ;;  %v3311_v49 = vsel %vm5272_vm5, %v3309_v12, %v3310_v14 }
 0x278   : > { %v3183_v53 = vpop.f32.mrf.mxu3  ;;  %v2448_v22 = vadd.f32 %v2384_v39, %v2256_v51  ;;  %v2228_v63 = vrot.slane %v2227_v2, 4  ;;  %v3365_v39 = vunpack.c.l.b16 %v3311_v49 }
 0x279   : > { %v3248_v43 = vadd.f32 %v3183_v53, %v2981_v52 }
 0x27a   : > { %v3452_v28 = vpop.f32.mrf.mxu0  ;;  %v3366_v42 = vpack.c.b16 %v3365_v39, %v3364_v50 }
 0x27b   : > { %v3515_v44 = vadd.f32 %v3450_v34, %v3248_v43  ;;  %v2259_v43 = vld [vmem:[#allocation2 + $0x8] sm:$0xff] }
 0x27d   : > { %3547 = vst [vmem:[#allocation2 + $0xe8] sm:$0xff] %v3515_v44  ;;  %v2918_v11 = vpop.f32.mrf.mxu2 }
 0x27e   : > { %v2982_v1 = vadd.f32 %v2918_v11, %v2448_v22 }
 0x27f   : > { %v2387_v60 = vpop.f32.mrf.mxu1 }
 0x280   : > { %v3185_v15 = vpop.f32.mrf.mxu3  ;;  %v2449_v18 = vadd.f32 %v2387_v60, %v2257_v6 }
 0x281   : > { %v3249_v56 = vadd.f32 %v3185_v15, %v2982_v1 }
 0x282   : > { %2426 = vmatmul.bf16.gmra.mxu1 %v5269_v17  ;;  %2960 = vmatmul.bf16.gmra.mxu2 %v5447_v16  ;;  %v3455_v8 = vpop.f32.mrf.mxu0  ;;  %v2233_v17 = vsel %vm5010_vm2, %v2228_v63, %v2232_v54 }
 0x283   : > { %v3516_v24 = vadd.f32 %v3452_v28, %v3249_v56  ;;  %v2296_v10 = vunpack.c.l.b16 %v2233_v17 }
 0x285   : > { %3227 = vmatmul.bf16.gmra.mxu3 %v5460_v29  ;;  %3548 = vst [vmem:[#allocation2 + $0xb8] sm:$0xff] %v3516_v24  ;;  %v2921_v41 = vpop.f32.mrf.mxu2  ;;  %3494 = vmatmul.bf16.gmra.mxu0 %v3099_v5  ;;  %v2298_v47 = vpack.c.b16 %v2297_v35, %v2296_v10 }
 0x286   : > { %v2983_v37 = vadd.f32 %v2921_v41, %v2449_v18  ;;  %v2263_v41 = vld [vmem:[#allocation2 + $0x40] sm:$0xff] }
 0x287   : > { %v2389_v16 = vpop.f32.mrf.mxu1 }
 0x288   : > { %v3188_v26 = vpop.f32.mrf.mxu3  ;;  %v2450_v52 = vadd.f32 %v2389_v16, %v2258_v62 }
 0x289   : > { %v3250_v34 = vadd.f32 %v3188_v26, %v2983_v37 }
 0x28a   : > { %v3457_v9 = vpop.f32.mrf.mxu0 }
 0x28b   : > { %v3517_v36 = vadd.f32 %v3455_v8, %v3250_v34  ;;  %v2264_v34 = vld [vmem:[#allocation2 + $0xc8] sm:$0xff] }
 0x28d   : > { %3549 = vst [vmem:[#allocation2 + $0x60] sm:$0xff] %v3517_v36  ;;  %v2923_v53 = vpop.f32.mrf.mxu2 }
 0x28e   : > { %v2984_v30 = vadd.f32 %v2923_v53, %v2450_v52  ;;  %v2265_v53 = vld [vmem:[#allocation2 + $0xe0] sm:$0xff] }
 0x28f   : > { %v2392_v33 = vpop.f32.mrf.mxu1 }
 0x290   : > { %v3190_v27 = vpop.f32.mrf.mxu3  ;;  %v2451_v19 = vadd.f32 %v2392_v33, %v2259_v43 }
 0x291   : > { %v3251_v59 = vadd.f32 %v3190_v27, %v2984_v30 }
 0x292   : > { %2431 = vmatmul.bf16.gmra.mxu1 %v2298_v47  ;;  %2965 = vmatmul.bf16.gmra.mxu2 %v5460_v29  ;;  %v3460_v44 = vpop.f32.mrf.mxu0 }
 0x293   : > { %v3518_v40 = vadd.f32 %v3457_v9, %v3251_v59 }
 0x295   : > { %3232 = vmatmul.bf16.gmra.mxu3 %v3099_v5  ;;  %3550 = vst [vmem:[#allocation2 + $0xf0] sm:$0xff] %v3518_v40  ;;  %v2926_v45 = vpop.f32.mrf.mxu2  ;;  %3499 = vmatmul.bf16.gmra.mxu0 %v3366_v42  ;;  %v2262_v5 = vld [vmem:[#allocation2 + $0x58] sm:$0xff]  ;;  %v2266_v42 = vld [vmem:[#allocation2 + $0x90] sm:$0xff] }
 0x296   : > { %v2985_v38 = vadd.f32 %v2926_v45, %v2451_v19 }
 0x297   : > { %v2394_v28 = vpop.f32.mrf.mxu1 }
 0x298   : > { %v3193_v51 = vpop.f32.mrf.mxu3  ;;  %v2452_v22 = vadd.f32 %v2394_v28, %v2260_v31 }
 0x299   : > { %v3252_v54 = vadd.f32 %v3193_v51, %v2985_v38 }
 0x29a   : > { %v3462_v58 = vpop.f32.mrf.mxu0 }
 0x29b   : > { %v3519_v57 = vadd.f32 %v3460_v44, %v3252_v54 }
 0x29d   : > { %3551 = vst [vmem:[#allocation2 + $0x8] sm:$0xff] %v3519_v57  ;;  %v2928_v61 = vpop.f32.mrf.mxu2  ;;  %v2267_v57 = vld [vmem:[#allocation2 + $0x70] sm:$0xff] }
 0x29e   : > { %v2986_v29 = vadd.f32 %v2928_v61, %v2452_v22 }
 0x29f   : > { %v2397_v1 = vpop.f32.mrf.mxu1 }
 0x2a0   : > { %v3195_v11 = vpop.f32.mrf.mxu3  ;;  %v2453_v60 = vadd.f32 %v2397_v1, %v2261_v0 }
 0x2a1   : > { %v3253_v15 = vadd.f32 %v3195_v11, %v2986_v29 }
 0x2a2   : > { %v3465_v3 = vpop.f32.mrf.mxu0 }
 0x2a3   : > { %v3520_v2 = vadd.f32 %v3462_v58, %v3253_v15 }
 0x2a5   : > { %3552 = vst [vmem:[#allocation2 + $0x78] sm:$0xff] %v3520_v2  ;;  %v2931_v4 = vpop.f32.mrf.mxu2  ;;  %v2268_v2 = vld [vmem:[#allocation2 + $0xc0] sm:$0xff] }
 0x2a6   : > { %v2987_v13 = vadd.f32 %v2931_v4, %v2453_v60 }
 0x2a7   : > { %v2399_v20 = vpop.f32.mrf.mxu1 }
 0x2a8   : > { %v3198_v56 = vpop.f32.mrf.mxu3  ;;  %v2454_v7 = vadd.f32 %v2399_v20, %v2262_v5 }
 0x2a9   : > { %v3254_v24 = vadd.f32 %v3198_v56, %v2987_v13 }
 0x2aa   : > { %v3467_v6 = vpop.f32.mrf.mxu0 }
 0x2ab   : > { %v3521_v63 = vadd.f32 %v3465_v3, %v3254_v24 }
 0x2ad   : > { %3553 = vst [vmem:[#allocation2 + $0x38] sm:$0xff] %v3521_v63  ;;  %v2933_v48 = vpop.f32.mrf.mxu2  ;;  %v2269_v63 = vld [vmem:[#allocation2 + $0xa8] sm:$0xff] }
 0x2ae   : > { %v2988_v8 = vadd.f32 %v2933_v48, %v2454_v7 }
 0x2af   : > { %v2402_v18 = vpop.f32.mrf.mxu1 }
 0x2b0   : > { %v3200_v46 = vpop.f32.mrf.mxu3  ;;  %v2455_v26 = vadd.f32 %v2402_v18, %v2263_v41 }
 0x2b1   : > { %v3255_v21 = vadd.f32 %v3200_v46, %v2988_v8 }
 0x2b2   : > { %v3470_v37 = vpop.f32.mrf.mxu0 }
 0x2b3   : > { %v3522_v23 = vadd.f32 %v3467_v6, %v3255_v21 }
 0x2b5   : > { %3554 = vst [vmem:[#allocation2 + $0x58] sm:$0xff] %v3522_v23  ;;  %v2936_v17 = vpop.f32.mrf.mxu2  ;;  %v2270_v23 = vld [vmem:[#allocation2 + $0xd0] sm:$0xff] }
 0x2b6   : > { %v2989_v16 = vadd.f32 %v2936_v17, %v2455_v26 }
 0x2b7   : > { %v2404_v32 = vpop.f32.mrf.mxu1 }
 0x2b8   : > { %v3203_v25 = vpop.f32.mrf.mxu3  ;;  %v2456_v35 = vadd.f32 %v2404_v32, %v2264_v34 }
 0x2b9   : > { %v3256_v12 = vadd.f32 %v3203_v25, %v2989_v16 }
 0x2ba   : > { %v3472_v10 = vpop.f32.mrf.mxu0 }
 0x2bb   : > { %v3523_v14 = vadd.f32 %v3470_v37, %v3256_v12 }
 0x2bd   : > { %3555 = vst [vmem:[#allocation2 + $0x40] sm:$0xff] %v3523_v14  ;;  %v2938_v36 = vpop.f32.mrf.mxu2  ;;  %v2271_v14 = vld [vmem:[#allocation2 + $0x10] sm:$0xff] }
 0x2be   : > { %v2990_v62 = vadd.f32 %v2938_v36, %v2456_v35 }
 0x2bf   : > { %v2407_v55 = vpop.f32.mrf.mxu1 }
 0x2c0   : > { %v3205_v9 = vpop.f32.mrf.mxu3  ;;  %v2457_v47 = vadd.f32 %v2407_v55, %v2265_v53 }
 0x2c1   : > { %v3257_v49 = vadd.f32 %v3205_v9, %v2990_v62 }
 0x2c2   : > { %v3475_v30 = vpop.f32.mrf.mxu0 }
 0x2c3   : > { %v3524_v52 = vadd.f32 %v3472_v10, %v3257_v49 }
 0x2c5   : > { %3556 = vst [vmem:[#allocation2 + $0xc8] sm:$0xff] %v3524_v52  ;;  %v2941_v27 = vpop.f32.mrf.mxu2  ;;  %v2272_v52 = vld [vmem:[#allocation2 + $0x28] sm:$0xff] }
 0x2c6   : > { %v2991_v50 = vadd.f32 %v2941_v27, %v2457_v47 }
 0x2c7   : > { %v2409_v33 = vpop.f32.mrf.mxu1 }
 0x2c8   : > { %v3208_v39 = vpop.f32.mrf.mxu3  ;;  %v2458_v44 = vadd.f32 %v2409_v33, %v2266_v42 }
 0x2c9   : > { %v3258_v59 = vadd.f32 %v3208_v39, %v2991_v50 }
 0x2ca   : > { %v3477_v43 = vpop.f32.mrf.mxu0 }
 0x2cb   : > { %v3525_v40 = vadd.f32 %v3475_v30, %v3258_v59 }
 0x2cd   : > { %3557 = vst [vmem:[#allocation2 + $0xe0] sm:$0xff] %v3525_v40  ;;  %v2943_v19 = vpop.f32.mrf.mxu2  ;;  %v2273_v40 = vld [vmem:[#allocation2 + $0xa0] sm:$0xff] }
 0x2ce   : > { %v2992_v45 = vadd.f32 %v2943_v19, %v2458_v44 }
 0x2cf   : > { %v2412_v51 = vpop.f32.mrf.mxu1 }
 0x2d0   : > { %v3210_v38 = vpop.f32.mrf.mxu3  ;;  %v2459_v58 = vadd.f32 %v2412_v51, %v2267_v57 }
 0x2d1   : > { %v3259_v28 = vadd.f32 %v3210_v38, %v2992_v45 }
 0x2d2   : > { %v3480_v31 = vpop.f32.mrf.mxu0 }
 0x2d3   : > { %v3526_v54 = vadd.f32 %v3477_v43, %v3259_v28 }
 0x2d5   : > { %3558 = vst [vmem:[#allocation2 + $0x90] sm:$0xff] %v3526_v54  ;;  %v2946_v22 = vpop.f32.mrf.mxu2  ;;  %v2274_v54 = vld [vmem:[#allocation2 + $0xf8] sm:$0xff] }
 0x2d6   : > { %v2993_v61 = vadd.f32 %v2946_v22, %v2459_v58 }
 0x2d7   : > { %v2414_v11 = vpop.f32.mrf.mxu1 }
 0x2d8   : > { %v3213_v29 = vpop.f32.mrf.mxu3  ;;  %v2460_v3 = vadd.f32 %v2414_v11, %v2268_v2 }
 0x2d9   : > { %v3260_v1 = vadd.f32 %v3213_v29, %v2993_v61 }
 0x2da   : > { %v3482_v0 = vpop.f32.mrf.mxu0 }
 0x2db   : > { %v3527_v15 = vadd.f32 %v3480_v31, %v3260_v1 }
 0x2dd   : > { %3559 = vst [vmem:[#allocation2 + $0x70] sm:$0xff] %v3527_v15  ;;  %v2948_v60 = vpop.f32.mrf.mxu2  ;;  %v2275_v15 = vld [vmem:[#allocation2 + $0x20] sm:$0xff] }
 0x2de   : > { %v2994_v4 = vadd.f32 %v2948_v60, %v2460_v3 }
 0x2df   : > { %v2417_v56 = vpop.f32.mrf.mxu1 }
 0x2e0   : > { %v3215_v13 = vpop.f32.mrf.mxu3  ;;  %v2461_v6 = vadd.f32 %v2417_v56, %v2269_v63 }
 0x2e1   : > { %v3261_v20 = vadd.f32 %v3215_v13, %v2994_v4 }
 0x2e2   : > { %v3485_v5 = vpop.f32.mrf.mxu0 }
 0x2e3   : > { %v3528_v24 = vadd.f32 %v3482_v0, %v3261_v20 }
 0x2e5   : > { %3560 = vst [vmem:[#allocation2 + $0xc0] sm:$0xff] %v3528_v24  ;;  %v2951_v7 = vpop.f32.mrf.mxu2  ;;  %v2276_v24 = vld [vmem:[#allocation2 + $0x98] sm:$0xff] }
 0x2e6   : > { %v2995_v48 = vadd.f32 %v2951_v7, %v2461_v6 }
 0x2e7   : > { %v2419_v46 = vpop.f32.mrf.mxu1 }
 0x2e8   : > { %v3218_v8 = vpop.f32.mrf.mxu3  ;;  %v2462_v37 = vadd.f32 %v2419_v46, %v2270_v23 }
 0x2e9   : > { %v3262_v18 = vadd.f32 %v3218_v8, %v2995_v48 }
 0x2ea   : > { %v3487_v41 = vpop.f32.mrf.mxu0 }
 0x2eb   : > { %v3529_v21 = vadd.f32 %v3485_v5, %v3262_v18 }
 0x2ed   : > { %3561 = vst [vmem:[#allocation2 + $0xa8] sm:$0xff] %v3529_v21  ;;  %v2953_v26 = vpop.f32.mrf.mxu2 }
 0x2ee   : > { %v2996_v17 = vadd.f32 %v2953_v26, %v2462_v37 }
 0x2ef   : > { %v2422_v25 = vpop.f32.mrf.mxu1 }
 0x2f0   : > { %v3220_v16 = vpop.f32.mrf.mxu3  ;;  %v2463_v10 = vadd.f32 %v2422_v25, %v2271_v14 }
 0x2f1   : > { %v3263_v32 = vadd.f32 %v3220_v16, %v2996_v17 }
 0x2f2   : > { %v3490_v34 = vpop.f32.mrf.mxu0 }
 0x2f3   : > { %v3530_v12 = vadd.f32 %v3487_v41, %v3263_v32 }
 0x2f5   : > { %3562 = vst [vmem:[#allocation2 + $0xd0] sm:$0xff] %v3530_v12  ;;  %v2956_v35 = vpop.f32.mrf.mxu2 }
 0x2f6   : > { %v2997_v36 = vadd.f32 %v2956_v35, %v2463_v10 }
 0x2f7   : > { %v2424_v9 = vpop.f32.mrf.mxu1 }
 0x2f8   : > { %v3223_v62 = vpop.f32.mrf.mxu3  ;;  %v2464_v30 = vadd.f32 %v2424_v9, %v2272_v52 }
 0x2f9   : > { %v3264_v55 = vadd.f32 %v3223_v62, %v2997_v36 }
 0x2fa   : > { %v3492_v53 = vpop.f32.mrf.mxu0 }
 0x2fb   : > { %v3531_v49 = vadd.f32 %v3490_v34, %v3264_v55 }
 0x2fd   : > { %3563 = vst [vmem:[#allocation2 + $0x10] sm:$0xff] %v3531_v49  ;;  %v2958_v47 = vpop.f32.mrf.mxu2 }
 0x2fe   : > { %v2998_v27 = vadd.f32 %v2958_v47, %v2464_v30 }
 0x2ff   : > { %v2427_v39 = vpop.f32.mrf.mxu1 }
 0x300   : > { %v3225_v50 = vpop.f32.mrf.mxu3  ;;  %v2465_v43 = vadd.f32 %v2427_v39, %v2273_v40 }
 0x301   : > { %v3265_v33 = vadd.f32 %v3225_v50, %v2998_v27 }
 0x302   : > { %v3495_v42 = vpop.f32.mrf.mxu0 }
 0x303   : > { %v3532_v59 = vadd.f32 %v3492_v53, %v3265_v33 }
 0x305   : > { %3564 = vst [vmem:[#allocation2 + $0x28] sm:$0xff] %v3532_v59  ;;  %v2961_v44 = vpop.f32.mrf.mxu2 }
 0x306   : > { %v2999_v19 = vadd.f32 %v2961_v44, %v2465_v43 }
 0x307   : > { %v2429_v38 = vpop.f32.mrf.mxu1 }
 0x308   : > { %v3228_v45 = vpop.f32.mrf.mxu3  ;;  %v2466_v57 = vadd.f32 %v2429_v38, %v2274_v54 }
 0x309   : > { %v3266_v51 = vadd.f32 %v3228_v45, %v2999_v19 }
 0x30a   : > { %v3497_v58 = vpop.f32.mrf.mxu0 }
 0x30b   : > { %v3533_v28 = vadd.f32 %v3495_v42, %v3266_v51 }
 0x30d   : > { %3565 = vst [vmem:[#allocation2 + $0xa0] sm:$0xff] %v3533_v28  ;;  %v2963_v31 = vpop.f32.mrf.mxu2 }
 0x30e   : > { %v3000_v22 = vadd.f32 %v2963_v31, %v2466_v57 }
 0x30f   : > { %v2432_v29 = vpop.f32.mrf.mxu1 }
 0x310   : > { %v3230_v61 = vpop.f32.mrf.mxu3  ;;  %v2467_v2 = vadd.f32 %v2432_v29, %v2275_v15 }
 0x311   : > { %v3267_v11 = vadd.f32 %v3230_v61, %v3000_v22 }
 0x312   : > { %v3500_v4 = vpop.f32.mrf.mxu0 }
 0x313   : > { %v3534_v1 = vadd.f32 %v3497_v58, %v3267_v11 }
 0x315   : > { %3566 = vst [vmem:[#allocation2 + $0xf8] sm:$0xff] %v3534_v1  ;;  %v2966_v0 = vpop.f32.mrf.mxu2 }
 0x316   : > { %v3001_v3 = vadd.f32 %v2966_v0, %v2467_v2 }
 0x317   : > { %v2434_v56 = vpop.f32.mrf.mxu1 }
 0x318   : > { %v3233_v60 = vpop.f32.mrf.mxu3  ;;  %v2468_v63 = vadd.f32 %v2434_v56, %v2276_v24 }
 0x319   : > { %v3268_v13 = vadd.f32 %v3233_v60, %v3001_v3 }
 0x31a   : > { %v3502_v8 = vpop.f32.mrf.mxu0 }
 0x31b   : > { %v3535_v20 = vadd.f32 %v3500_v4, %v3268_v13 }
 0x31d   : > { %3567 = vst [vmem:[#allocation2 + $0x20] sm:$0xff] %v3535_v20  ;;  %v2968_v5 = vpop.f32.mrf.mxu2 }
 0x31e   : > { %v3002_v6 = vadd.f32 %v2968_v5, %v2468_v63 }
 0x320   : > { %v3235_v7 = vpop.f32.mrf.mxu3 }
 0x321   : > { %v3269_v48 = vadd.f32 %v3235_v7, %v3002_v6  ;;  %3572 = sbr.rel (%p4487_p10) target bundleno = 884 (0x374), region = 36 }
 0x323   : > { %v3536_v46 = vadd.f32 %v3502_v8, %v3269_v48 }
 0x325   : > { %3568 = vst [vmem:[#allocation2 + $0x98] sm:$0xff] %v3536_v46 }
 0x326   : > { %v3573_v18 = vld [vmem:[#allocation2 + $0xb0] sm:$0xff]  ;;  %v3574_v21 = vld [vmem:[#allocation2] sm:$0xff]  ;;  %v3575_v23 = vld [vmem:[#allocation2 + $0xd8] sm:$0xff] }
 0x327   : > { %v4584_v41 = vpack.c.bf16 %v3574_v21, %v3573_v18  ;;  %v3669_v37 = vadd.f32 %v3574_v21, %v3573_v18  ;;  %v3707_v26 = vmul.f32 %v3573_v18, %v3573_v18  ;;  %v3708_v17 = vmul.f32 %v3574_v21, %v3574_v21  ;;  %v3576_v16 = vld [vmem:[#allocation2 + $0x18] sm:$0xff]  ;;  %v3577_v25 = vld [vmem:[#allocation2 + $0x50] sm:$0xff]  ;;  %v3578_v32 = vld [vmem:[#allocation2 + $0x68] sm:$0xff] }
 0x328   : > { %v4589_v12 = vpack.c.bf16 %v3576_v16, %v3575_v23  ;;  %v3709_v14 = vmul.f32 %v3575_v23, %v3575_v23  ;;  %v4594_v34 = vpack.c.bf16 %v3578_v32, %v3577_v25  ;;  %v3579_v10 = vld [vmem:[#allocation2 + $0x30] sm:$0xff]  ;;  %v3710_v62 = vmul.f32 %v3576_v16, %v3576_v16  ;;  %v3580_v9 = vld [vmem:[#allocation2 + $0x48] sm:$0xff]  ;;  %v3581_v55 = vld [vmem:[#allocation2 + $0x80] sm:$0xff] }
 0x329   : > { %4585 = vst [vmem:[%s4898_s11] sm:$0xff] %v4584_v41   ;;  %v3739_v35 = vadd.f32 %v3708_v17, %v3707_v26  ;;  %v3670_v36 = vadd.f32 %v3669_v37, %v3575_v23  ;;  %v3582_v49 = vld [vmem:[#allocation2 + $0x88] sm:$0xff]  ;;  %v4599_v52 = vpack.c.bf16 %v3580_v9, %v3579_v10  ;;  %v3711_v50 = vmul.f32 %v3577_v25, %v3577_v25  ;;  %v3584_v39 = vld [vmem:[#allocation2 + $0xb8] sm:$0xff]  ;;  %v3585_v33 = vld [vmem:[#allocation2 + $0x60] sm:$0xff] }
 0x32a   : > { %4661 = vst [vmem:[%s4898_s11 + $0x8] sm:$0xff] %v4589_v12   ;;  %v4604_v53 = vpack.c.bf16 %v3582_v49, %v3581_v55  ;;  %v3583_v30 = vld [vmem:[#allocation2 + $0xe8] sm:$0xff]  ;;  %v5492_v59 = vld [vmem:[#allocation2 + $0xf0] sm:$0xff]  ;;  %v3712_v45 = vmul.f32 %v3578_v32, %v3578_v32  ;;  %v5499_v38 = vld [vmem:[#allocation2 + $0x78] sm:$0xff]  ;;  %v3713_v61 = vmul.f32 %v3579_v10, %v3579_v10  ;;  %v3714_v60 = vmul.f32 %v3580_v9, %v3580_v9 }
 0x32b   : > { %v3671_v47 = vadd.f32 %v3670_v36, %v3576_v16  ;;  %v3740_v27 = vadd.f32 %v3739_v35, %v3709_v14  ;;  %4662 = vst [vmem:[%s4898_s11 + $0x10] sm:$0xff] %v4594_v34   ;;  %v4609_v40 = vpack.c.bf16 %v3584_v39, %v3583_v30  ;;  %v4614_v42 = vpack.c.bf16 %v5492_v59, %v3585_v33  ;;  %v5496_v43 = vld [vmem:[#allocation2 + $0x8] sm:$0xff]  ;;  %v5501_v51 = vld [vmem:[#allocation2 + $0x38] sm:$0xff]  ;;  %v5510_v31 = vld [vmem:[#allocation2 + $0x40] sm:$0xff] }
 0x32c   : > { %4663 = vst [vmem:[%s4898_s11 + $0x18] sm:$0xff] %v4599_v52   ;;  %v5503_v28 = vld [vmem:[#allocation2 + $0x58] sm:$0xff]  ;;  %v4619_v54 = vpack.c.bf16 %v5499_v38, %v5496_v43  ;;  %v5513_v29 = vld [vmem:[#allocation2 + $0xc8] sm:$0xff]  ;;  %v5515_v11 = vld [vmem:[#allocation2 + $0xe0] sm:$0xff]  ;;  %v3715_v63 = vmul.f32 %v3581_v55, %v3581_v55  ;;  %v3716_v7 = vmul.f32 %v3582_v49, %v3582_v49  ;;  %v3717_v23 = vmul.f32 %v3583_v30, %v3583_v30 }
 0x32d   : > { %v3741_v44 = vadd.f32 %v3740_v27, %v3710_v62  ;;  %v3672_v19 = vadd.f32 %v3671_v47, %v3577_v25  ;;  %4664 = vst [vmem:[%s4898_s11 + $0x20] sm:$0xff] %v4604_v53   ;;  %v4624_v57 = vpack.c.bf16 %v5503_v28, %v5501_v51  ;;  %v5517_v1 = vld [vmem:[#allocation2 + $0x90] sm:$0xff]  ;;  %v4629_v15 = vpack.c.bf16 %v5513_v29, %v5510_v31  ;;  %v5527_v13 = vld [vmem:[#allocation2 + $0xc0] sm:$0xff]  ;;  %v3597_v48 = vld [vmem:[#allocation2 + $0xa8] sm:$0xff] }
 0x32e   : > { %4665 = vst [vmem:[%s4898_s11 + $0x28] sm:$0xff] %v4609_v40   ;;  %v4634_v2 = vpack.c.bf16 %v5517_v1, %v5515_v11  ;;  %v5525_v4 = vld [vmem:[#allocation2 + $0x70] sm:$0xff]  ;;  %v3718_v26 = vmul.f32 %v3584_v39, %v3584_v39  ;;  %v3600_v16 = vld [vmem:[#allocation2 + $0x28] sm:$0xff]  ;;  %v3719_v14 = vmul.f32 %v3585_v33, %v3585_v33  ;;  %v3720_v35 = vmul.f32 %v5492_v59, %v5492_v59  ;;  %v3601_v36 = vld [vmem:[#allocation2 + $0xa0] sm:$0xff] }
 0x32f   : > { %v3673_v58 = vadd.f32 %v3672_v19, %v3578_v32  ;;  %v3742_v22 = vadd.f32 %v3741_v44, %v3711_v50  ;;  %4666 = vst [vmem:[%s4898_s11 + $0x30] sm:$0xff] %v4614_v42   ;;  %v4639_v56 = vpack.c.bf16 %v5527_v13, %v5525_v4  ;;  %v5534_v8 = vld [vmem:[#allocation2 + $0xd0] sm:$0xff]  ;;  %v3602_v62 = vld [vmem:[#allocation2 + $0xf8] sm:$0xff]  ;;  %v3721_v52 = vmul.f32 %v5496_v43, %v5496_v43  ;;  %v3603_v27 = vld [vmem:[#allocation2 + $0x20] sm:$0xff] }
 0x330   : > { %4667 = vst [vmem:[%s4898_s11 + $0x38] sm:$0xff] %v4619_v54   ;;  %v4644_v46 = vpack.c.bf16 %v5534_v8, %v3597_v48  ;;  %v3599_v17 = vld [vmem:[#allocation2 + $0x10] sm:$0xff]  ;;  %v3722_v47 = vmul.f32 %v5499_v38, %v5499_v38  ;;  %v3604_v50 = vld [vmem:[#allocation2 + $0x98] sm:$0xff]  ;;  %v3724_v19 = vmul.f32 %v5503_v28, %v5503_v28  ;;  %v3725_v54 = vmul.f32 %v5510_v31, %v5510_v31 }
 0x331   : > { %v3743_v0 = vadd.f32 %v3742_v22, %v3712_v45  ;;  %v3674_v3 = vadd.f32 %v3673_v58, %v3579_v10  ;;  %4668 = vst [vmem:[%s4898_s11 + $0x40] sm:$0xff] %v4624_v57   ;;  %v4649_v25 = vpack.c.bf16 %v3600_v16, %v3599_v17  ;;  %v3726_v58 = vmul.f32 %v5513_v29, %v5513_v29 }
 0x332   : > { %4669 = vst [vmem:[%s4898_s11 + $0x48] sm:$0xff] %v4629_v15  }
 0x333   : > { %v3675_v20 = vadd.f32 %v3674_v3, %v3580_v9  ;;  %v3744_v24 = vadd.f32 %v3743_v0, %v3713_v61  ;;  %4670 = vst [vmem:[%s4898_s11 + $0x50] sm:$0xff] %v4634_v2   ;;  %v4654_v9 = vpack.c.bf16 %v3602_v62, %v3601_v36 }
 0x334   : > { %4671 = vst [vmem:[%s4898_s11 + $0x58] sm:$0xff] %v4639_v56  }
 0x335   : > { %v3745_v5 = vadd.f32 %v3744_v24, %v3714_v60  ;;  %v3676_v6 = vadd.f32 %v3675_v20, %v3581_v55  ;;  %4672 = vst [vmem:[%s4898_s11 + $0x60] sm:$0xff] %v4644_v46   ;;  %v3733_v46 = vmul.f32 %v3599_v17, %v3599_v17 }
 0x336   : > { %4673 = vst [vmem:[%s4898_s11 + $0x68] sm:$0xff] %v4649_v25  }
 0x337   : > { %v3677_v18 = vadd.f32 %v3676_v6, %v3582_v49  ;;  %v3746_v21 = vadd.f32 %v3745_v5, %v3715_v63  ;;  %4674 = vst [vmem:[%s4898_s11 + $0x70] sm:$0xff] %v4654_v9   ;;  %v3731_v63 = vmul.f32 %v3597_v48, %v3597_v48  ;;  %v3732_v6 = vmul.f32 %v5534_v8, %v5534_v8 }
 0x339   : > { %v3747_v41 = vadd.f32 %v3746_v21, %v3716_v7  ;;  %v3678_v37 = vadd.f32 %v3677_v18, %v3583_v30 }
 0x33b   : > { %v3679_v32 = vadd.f32 %v3678_v37, %v3584_v39  ;;  %v3748_v12 = vadd.f32 %v3747_v41, %v3717_v23  ;;  %v4659_v39 = vpack.c.bf16 %v3604_v50, %v3603_v27  ;;  %v3734_v23 = vmul.f32 %v3600_v16, %v3600_v16 }
 0x33c   : > { %v3735_v37 = vmul.f32 %v3601_v36, %v3601_v36 }
 0x33d   : > { %v3749_v34 = vadd.f32 %v3748_v12, %v3718_v26  ;;  %v3680_v10 = vadd.f32 %v3679_v32, %v3585_v33  ;;  %4675 = vst [vmem:[%s4898_s11 + $0x78] sm:$0xff] %v4659_v39  }
 0x33f   : > { %v3681_v55 = vadd.f32 %v3680_v10, %v5492_v59  ;;  %v3750_v49 = vadd.f32 %v3749_v34, %v3719_v14  ;;  %v3723_v59 = vmul.f32 %v5501_v51, %v5501_v51  ;;  %v3737_v14 = vmul.f32 %v3603_v27, %v3603_v27 }
 0x340   : > { %v3738_v10 = vmul.f32 %v3604_v50, %v3604_v50 }
 0x341   : > { %v3751_v53 = vadd.f32 %v3750_v49, %v3720_v35  ;;  %v3682_v30 = vadd.f32 %v3681_v55, %v5496_v43 }
 0x343   : > { %v3683_v33 = vadd.f32 %v3682_v30, %v5499_v38  ;;  %v3752_v40 = vadd.f32 %v3751_v53, %v3721_v52 }
 0x345   : > { %v3753_v42 = vadd.f32 %v3752_v40, %v3722_v47  ;;  %v3684_v44 = vadd.f32 %v3683_v33, %v5501_v51  ;;  %v3727_v51 = vmul.f32 %v5515_v11, %v5515_v11 }
 0x347   : > { %v3685_v43 = vadd.f32 %v3684_v44, %v5503_v28  ;;  %v3754_v45 = vadd.f32 %v3753_v42, %v3723_v59  ;;  %v3728_v28 = vmul.f32 %v5517_v1, %v5517_v1 }
 0x349   : > { %v3755_v57 = vadd.f32 %v3754_v45, %v3724_v19  ;;  %v3686_v38 = vadd.f32 %v3685_v43, %v5510_v31  ;;  %v3729_v31 = vmul.f32 %v5525_v4, %v5525_v4 }
 0x34b   : > { %v3687_v22 = vadd.f32 %v3686_v38, %v5513_v29  ;;  %v3756_v61 = vadd.f32 %v3755_v57, %v3725_v54  ;;  %v3730_v29 = vmul.f32 %v5527_v13, %v5527_v13 }
 0x34d   : > { %v3757_v15 = vadd.f32 %v3756_v61, %v3726_v58  ;;  %v3688_v2 = vadd.f32 %v3687_v22, %v5515_v11 }
 0x34f   : > { %v3689_v0 = vadd.f32 %v3688_v2, %v5517_v1  ;;  %v3758_v3 = vadd.f32 %v3757_v15, %v3727_v51 }
 0x351   : > { %v3759_v60 = vadd.f32 %v3758_v3, %v3728_v28  ;;  %v3690_v56 = vadd.f32 %v3689_v0, %v5525_v4 }
 0x353   : > { %v3691_v20 = vadd.f32 %v3690_v56, %v5527_v13  ;;  %v3760_v24 = vadd.f32 %v3759_v60, %v3729_v31  ;;  %v3736_v13 = vmul.f32 %v3602_v62, %v3602_v62 }
 0x355   : > { %v3761_v11 = vadd.f32 %v3760_v24, %v3730_v29  ;;  %v3692_v5 = vadd.f32 %v3691_v20, %v3597_v48 }
 0x357   : > { %v3693_v1 = vadd.f32 %v3692_v5, %v5534_v8  ;;  %v3762_v7 = vadd.f32 %v3761_v11, %v3731_v63 }
 0x359   : > { %v3763_v18 = vadd.f32 %v3762_v7, %v3732_v6  ;;  %v3694_v21 = vadd.f32 %v3693_v1, %v3599_v17 }
 0x35b   : > { %v3695_v4 = vadd.f32 %v3694_v21, %v3600_v16  ;;  %v3764_v41 = vadd.f32 %v3763_v18, %v3733_v46 }
 0x35d   : > { %v3765_v26 = vadd.f32 %v3764_v41, %v3734_v23  ;;  %v3696_v25 = vadd.f32 %v3695_v4, %v3601_v36 }
 0x35f   : > { %v3697_v32 = vadd.f32 %v3696_v25, %v3602_v62  ;;  %v3766_v12 = vadd.f32 %v3765_v26, %v3735_v37 }
 0x361   : > { %v3767_v48 = vadd.f32 %v3766_v12, %v3736_v13  ;;  %v3698_v34 = vadd.f32 %v3697_v32, %v3603_v27 }
 0x363   : > { %v3699_v35 = vadd.f32 %v3698_v34, %v3604_v50  ;;  %v3768_v8 = vadd.f32 %v3767_v48, %v3737_v14 }
 0x365   : > { %v3700_v9 = vrot.slane %v3699_v35, 4  ;;  %v3769_v55 = vadd.f32 %v3768_v8, %v3738_v10 }
 0x367   : > { %v3701_v17 = vadd.f32 %v3700_v9, %v3699_v35  ;;  %v3770_v49 = vrot.slane %v3769_v55, 4 }
 0x369   : > { %v3702_v16 = vrot.slane %v3701_v17, 2  ;;  %v3771_v52 = vadd.f32 %v3770_v49, %v3769_v55 }
 0x36b   : > { %v3703_v53 = vadd.f32 %v3702_v16, %v3701_v17  ;;  %v3772_v30 = vrot.slane %v3771_v52, 2 }
 0x36d   : > { %v3704_v36 = vrot.slane %v3703_v53, 1  ;;  %v3773_v47 = vadd.f32 %v3772_v30, %v3771_v52 }
 0x36f   : > { %v3705_v62 = vadd.f32 %v3704_v36, %v3703_v53  ;;  %v3774_v39 = vrot.slane %v3773_v47, 1 }
 0x371   : > { %3706 = vst [vmem:[%s4903_s14] sm:$0x1] %v3705_v62  ;;  %v3775_v33 = vadd.f32 %v3774_v39, %v3773_v47 }
 0x373   : > { %3776 = vst [vmem:[%s4903_s14 + $0x1] sm:$0x1] %v3775_v33 }
 0x374 PF: > { %s14_s18 = sadd.s32 1, %s4817_s18   ;;  %s5610_s24 = sld [smem:[#allocation3_spill]] }
 0x375   : > { %p11_p11 = scmp.ge.s32.totalorder %s14_s18, 98   ;;  %s5611_s25 = sld [smem:[#allocation4_spill]] }
 0x376   : > { %s5612_s12 = smov %s4805_s15  ;;  %s5613_s13 = smov %s4809_s16 }
 0x377   : > { %s5614_s14 = smov %s4813_s17  ;;  %s5615_s15 = smov %s5619_s19 }
 0x378   :  { %13 = sbr.rel (!%p11_p11) target bundleno = 4 (0x4), region = 87 }
 0x37a   : > { %s5616_s16 = smov %s5610_s24 }
 0x37b   : > { %s5617_s17 = smov %s5611_s25 }

</bundles_post_ra>
